<compile_context>
chip_gen: v7x
topology: tpu7x:2x2x1
jax: 0.10.0
libtpu: 0.0.40
codegen_flags: <defaults>
</compile_context>

<pallas_src>
import functools
import math

import jax
import jax.numpy as jnp
from jax import lax
from jax.experimental import pallas as pl
from jax.experimental.pallas import tpu as pltpu

NEG_INF = -1e30
LN_EPS = 1e-5

_WEIGHT_NAMES = (
    "sa_in_w", "sa_in_b", "sa_out_w", "sa_out_b", "ln1_g", "ln1_b",
    "ca_q_w", "ca_q_b", "ca_kv_w", "ca_kv_b", "ca_out_w", "ca_out_b",
    "ln2_g", "ln2_b",
    "ff1_w", "ff1_b", "ff2_w", "ff2_b", "ln3_g", "ln3_b",
)


# ----------------------- fused whole-stack decoder kernel ------------------- #

def _fused_decoder_kernel(
        x0_ref, mem_ref,
        sa_in_w, sa_in_b, sa_out_w, sa_out_b, ln1_g, ln1_b,
        ca_q_w, ca_q_b, ca_kv_w, ca_kv_b, ca_out_w, ca_out_b, ln2_g, ln2_b,
        ff1_w, ff1_b, ff2_w, ff2_b, ln3_g, ln3_b,
        o_ref, x_acc,
        *, batch, tgt_len, mem_len, num_heads):
    l = pl.program_id(0)
    n_layers = pl.num_programs(0)
    B, T, S, H = batch, tgt_len, mem_len, num_heads
    d = x0_ref.shape[-1]
    dh = d // H
    scale = 1.0 / math.sqrt(dh)

    # Seed the VMEM-resident activation from the (once-DMA'd) input at layer 0.
    @pl.when(l == 0)
    def _():
        x_acc[...] = x0_ref[...]

    x = x_acc[...]                    # (B*T, d) f32, carried across layers in VMEM
    mem = mem_ref[...]                # (B*S, d) f32

    def wdot(a_f32, w_ref, b_ref):
        # bf16 operands straight to the MXU, f32 accumulation, f32 bias add.
        return jnp.dot(a_f32.astype(jnp.bfloat16), w_ref[0],
                       preferred_element_type=jnp.float32) + b_ref[0]

    def layer_norm(v, g_ref, b_ref):
        mu = jnp.mean(v, axis=-1, keepdims=True)
        var = jnp.mean(jnp.square(v - mu), axis=-1, keepdims=True)
        return (v - mu) * lax.rsqrt(var + LN_EPS) * g_ref[0] + b_ref[0]

    def softmax(s):
        m = jnp.max(s, axis=-1, keepdims=True)
        p = jnp.exp(s - m)
        return p * pl.reciprocal(jnp.sum(p, axis=-1, keepdims=True), approx=True)

    def attend(q, k, v, kv_rows, mask):
        # q:(B*T,d), k/v:(B*kv_rows,d).  Per-batch, per-head score/ctx dots (tiny,
        # block-diagonal by construction); head contexts are concatenated into a
        # lane-dense (B*T, d) slab so the output projection is ONE big dot.
        rows = []
        for b in range(B):                                # static unroll
            qb = q[b * T:(b + 1) * T, :]
            kb = k[b * kv_rows:(b + 1) * kv_rows, :]
            vb = v[b * kv_rows:(b + 1) * kv_rows, :]
            parts = []
            for h in range(H):                            # static unroll
                lo = h * dh
                sc = jnp.dot(qb[:, lo:lo + dh], kb[:, lo:lo + dh].T,
                             preferred_element_type=jnp.float32) * scale
                if mask is not None:
                    sc = sc + mask
                p = softmax(sc)
                parts.append(jnp.dot(p, vb[:, lo:lo + dh],
                                     preferred_element_type=jnp.float32))
            rows.append(jnp.concatenate(parts, axis=-1))  # (T, d)
        return jnp.concatenate(rows, axis=0)              # (B*T, d)

    # Causal mask, built in-kernel (tiny).
    row = lax.broadcasted_iota(jnp.int32, (T, T), 0)
    col = lax.broadcasted_iota(jnp.int32, (T, T), 1)
    causal = jnp.where(col > row, NEG_INF, 0.0).astype(jnp.float32)

    # --- self-attention block (post-norm) ---
    qkv = wdot(x, sa_in_w, sa_in_b)                               # (B*T, 3d)
    ctx = attend(qkv[:, :d], qkv[:, d:2 * d], qkv[:, 2 * d:], T, causal)
    sa = wdot(ctx, sa_out_w, sa_out_b)
    x = layer_norm(x + sa, ln1_g, ln1_b)

    # --- cross-attention block (no mask) ---
    qc = wdot(x, ca_q_w, ca_q_b)                                  # (B*T, d)
    kv = wdot(mem, ca_kv_w, ca_kv_b)                              # (B*S, 2d)
    ctx = attend(qc, kv[:, :d], kv[:, d:], S, None)
    ca = wdot(ctx, ca_out_w, ca_out_b)
    x = layer_norm(x + ca, ln2_g, ln2_b)

    # --- feed-forward block (ReLU; dropout = identity) ---
    f = jnp.maximum(wdot(x, ff1_w, ff1_b), 0.0)                   # (B*T, dff)
    f = wdot(f, ff2_w, ff2_b)
    x = layer_norm(x + f, ln3_g, ln3_b)

    x_acc[...] = x
    # Single lane-contiguous writeback at the last layer (output block index is
    # constant, so HBM writeback happens once at grid end).
    @pl.when(l == n_layers - 1)
    def _():
        o_ref[...] = x


def _run_decoder_stack(x0, mem, stacked, *, num_layers, num_heads,
                       batch, tgt_len, mem_len):
    BT, d = x0.shape
    weights = [stacked[n] for n in _WEIGHT_NAMES]
    # Each stacked weight is (L, r, c); walk the layer axis so Pallas prefetches
    # layer l+1 weights while layer l computes.
    w_specs = [pl.BlockSpec((1,) + w.shape[1:], lambda l: (l, 0, 0))
               for w in weights]

    kernel = functools.partial(
        _fused_decoder_kernel, batch=batch, tgt_len=tgt_len,
        mem_len=mem_len, num_heads=num_heads)

    return pl.pallas_call(
        kernel,
        out_shape=jax.ShapeDtypeStruct((BT, d), jnp.float32),
        grid=(num_layers,),
        in_specs=[pl.BlockSpec((BT, d), lambda l: (0, 0)),
                  pl.BlockSpec(mem.shape, lambda l: (0, 0))] + w_specs,
        out_specs=pl.BlockSpec((BT, d), lambda l: (0, 0)),
        scratch_shapes=[pltpu.VMEM((BT, d), jnp.float32)],
        compiler_params=pltpu.CompilerParams(
            dimension_semantics=("arbitrary",)),          # sequential layer axis
    )(x0, mem, *weights)


# ------------------------------- glue (JAX) -------------------------------- #

def decoder_forward(params, inp, memory, num_predicted_frames, num_heads=8):
    B = inp.shape[0]
    d = params["fc1_w"].shape[1]
    T = num_predicted_frames
    S = memory.shape[1]
    L = params["stacked"]["ff1_w"].shape[0]

    # fc1 + leaky_relu in plain XLA (a (2,32)@(32,64) matmul is launch-overhead
    # bound as a kernel), then expand across predicted frames.
    h = jnp.dot(inp, params["fc1_w"]) + params["fc1_b"]
    h = jnp.where(h >= 0, h, 0.01 * h)                    # F.leaky_relu default slope
    x0 = jnp.broadcast_to(h[:, None, :], (B, T, d)).reshape(B * T, d)
    mem = memory.reshape(B * S, d)

    out = _run_decoder_stack(x0, mem, params["stacked"],
                             num_layers=L, num_heads=num_heads,
                             batch=B, tgt_len=T, mem_len=S)
    return out.reshape(B, T, d)


# --------------------------- parameter creation ----------------------------- #

def _kaiming(key, fan_in, shape, dtype=jnp.bfloat16):
    # kaiming_normal_ with gain sqrt(2), fan_in mode.  Weight matrices stored in
    # bf16 (halves HBM traffic); compute accumulates in f32 in-kernel.
    w = math.sqrt(2.0 / fan_in) * jax.random.normal(key, shape, jnp.float32)
    return w.astype(dtype)


def init_params(key, input_dim, hidden_dim, dff, num_layers=2):
    d = hidden_dim
    keys = iter(jax.random.split(key, 2 + num_layers * 6))

    params = {
        "fc1_w": _kaiming(next(keys), input_dim, (input_dim, d), jnp.float32),
        "fc1_b": jax.random.uniform(next(keys), (d,), jnp.float32,
                                    -1.0 / math.sqrt(input_dim),
                                    1.0 / math.sqrt(input_dim)),
    }
    zeros = lambda n: jnp.zeros((1, n), jnp.float32)
    ones = lambda n: jnp.ones((1, n), jnp.float32)

    per_layer = []
    for _ in range(num_layers):
        sa_in = _kaiming(next(keys), d, (d, 3 * d))
        sa_out = _kaiming(next(keys), d, (d, d))
        ca_in = _kaiming(next(keys), d, (d, 3 * d))
        ca_out = _kaiming(next(keys), d, (d, d))
        ff1 = _kaiming(next(keys), d, (d, dff))
        ff2 = _kaiming(next(keys), dff, (dff, d))
        per_layer.append({
            "sa_in_w": sa_in, "sa_in_b": zeros(3 * d),
            "sa_out_w": sa_out, "sa_out_b": zeros(d),
            "ln1_g": ones(d), "ln1_b": zeros(d),
            "ca_q_w": ca_in[:, :d], "ca_q_b": zeros(d),
            "ca_kv_w": ca_in[:, d:], "ca_kv_b": zeros(2 * d),
            "ca_out_w": ca_out, "ca_out_b": zeros(d),
            "ln2_g": ones(d), "ln2_b": zeros(d),
            "ff1_w": ff1, "ff1_b": zeros(dff),
            "ff2_w": ff2, "ff2_b": zeros(d),
            "ln3_g": ones(d), "ln3_b": zeros(d),
        })

    # Stack per-layer params into (L, ...) arrays so ONE pallas_call walks the
    # layer axis and double-buffers next-layer weights under current-layer compute.
    params["stacked"] = {
        name: jnp.stack([lp[name] for lp in per_layer], axis=0)
        for name in _WEIGHT_NAMES
    }
    return params


# ---------------------------------- main ------------------------------------ #

if __name__ == "__main__":
    input_dim = 32
    hidden_dim = 64            # d_model; 8 heads -> head_dim = 8
    dff = 2048                 # hard-coded in the PyTorch module
    num_predicted_frames = 8
    num_heads = 8
    B, S_mem = 2, 8

    key = jax.random.PRNGKey(0)
    kp, kx, km = jax.random.split(key, 3)

    params = init_params(kp, input_dim, hidden_dim, dff, num_layers=2)
    x = jax.random.normal(kx, (B, input_dim), jnp.float32)
    memory = jax.random.normal(km, (B, S_mem, hidden_dim), jnp.float32)

    fwd = jax.jit(functools.partial(decoder_forward,
                                    num_predicted_frames=num_predicted_frames,
                                    num_heads=num_heads))
    out = jax.block_until_ready(fwd(params, x, memory))

    assert out.shape == (B, num_predicted_frames, hidden_dim)
    assert jnp.all(jnp.isfinite(out))
    print("KERNEL_OK")
</pallas_src>

<mosaic_0001>
module attributes {stable_mosaic.version = 11 : i64} {
  func.func @_fused_decoder_kernel(%arg0: i32, %arg1: memref<16x64xf32, #tpu.memory_space<vmem>>, %arg2: memref<16x64xf32, #tpu.memory_space<vmem>>, %arg3: memref<1x64x192xbf16, #tpu.memory_space<vmem>>, %arg4: memref<1x1x192xf32, #tpu.memory_space<vmem>>, %arg5: memref<1x64x64xbf16, #tpu.memory_space<vmem>>, %arg6: memref<1x1x64xf32, #tpu.memory_space<vmem>>, %arg7: memref<1x1x64xf32, #tpu.memory_space<vmem>>, %arg8: memref<1x1x64xf32, #tpu.memory_space<vmem>>, %arg9: memref<1x64x64xbf16, #tpu.memory_space<vmem>>, %arg10: memref<1x1x64xf32, #tpu.memory_space<vmem>>, %arg11: memref<1x64x128xbf16, #tpu.memory_space<vmem>>, %arg12: memref<1x1x128xf32, #tpu.memory_space<vmem>>, %arg13: memref<1x64x64xbf16, #tpu.memory_space<vmem>>, %arg14: memref<1x1x64xf32, #tpu.memory_space<vmem>>, %arg15: memref<1x1x64xf32, #tpu.memory_space<vmem>>, %arg16: memref<1x1x64xf32, #tpu.memory_space<vmem>>, %arg17: memref<1x64x2048xbf16, #tpu.memory_space<vmem>>, %arg18: memref<1x1x2048xf32, #tpu.memory_space<vmem>>, %arg19: memref<1x2048x64xbf16, #tpu.memory_space<vmem>>, %arg20: memref<1x1x64xf32, #tpu.memory_space<vmem>>, %arg21: memref<1x1x64xf32, #tpu.memory_space<vmem>>, %arg22: memref<1x1x64xf32, #tpu.memory_space<vmem>>, %arg23: memref<16x64xf32, #tpu.memory_space<vmem>>, %arg24: memref<16x64xf32, #tpu.memory_space<vmem>>) attributes {dimension_semantics = [#tpu.dimension_semantics<arbitrary>], iteration_bounds = array<i64: 2>, scalar_prefetch = 0 : i64, scratch_operands = 1 : i64, tpu.core_type = #tpu.core_type<tc>, window_params = [{pipeline_mode = #tpu.pipeline_mode<synchronous>, transform_indices = @transform_0, window_bounds = array<i64: 16, 64>}, {pipeline_mode = #tpu.pipeline_mode<synchronous>, transform_indices = @transform_1, window_bounds = array<i64: 16, 64>}, {transform_indices = @transform_2, window_bounds = array<i64: 1, 64, 192>}, {transform_indices = @transform_3, window_bounds = array<i64: 1, 1, 192>}, {transform_indices = @transform_4, window_bounds = array<i64: 1, 64, 64>}, {transform_indices = @transform_5, window_bounds = array<i64: 1, 1, 64>}, {transform_indices = @transform_6, window_bounds = array<i64: 1, 1, 64>}, {transform_indices = @transform_7, window_bounds = array<i64: 1, 1, 64>}, {transform_indices = @transform_8, window_bounds = array<i64: 1, 64, 64>}, {transform_indices = @transform_9, window_bounds = array<i64: 1, 1, 64>}, {transform_indices = @transform_10, window_bounds = array<i64: 1, 64, 128>}, {transform_indices = @transform_11, window_bounds = array<i64: 1, 1, 128>}, {transform_indices = @transform_12, window_bounds = array<i64: 1, 64, 64>}, {transform_indices = @transform_13, window_bounds = array<i64: 1, 1, 64>}, {transform_indices = @transform_14, window_bounds = array<i64: 1, 1, 64>}, {transform_indices = @transform_15, window_bounds = array<i64: 1, 1, 64>}, {transform_indices = @transform_16, window_bounds = array<i64: 1, 64, 2048>}, {transform_indices = @transform_17, window_bounds = array<i64: 1, 1, 2048>}, {transform_indices = @transform_18, window_bounds = array<i64: 1, 2048, 64>}, {transform_indices = @transform_19, window_bounds = array<i64: 1, 1, 64>}, {transform_indices = @transform_20, window_bounds = array<i64: 1, 1, 64>}, {transform_indices = @transform_21, window_bounds = array<i64: 1, 1, 64>}, {pipeline_mode = #tpu.pipeline_mode<synchronous>, transform_indices = @transform_22, window_bounds = array<i64: 16, 64>}]} {
    %c0_i32 = arith.constant 0 : i32
    %0 = arith.cmpi eq, %arg0, %c0_i32 : i32
    %1 = arith.extui %0 : i1 to i32
    %c0_i32_0 = arith.constant 0 : i32
    %2 = arith.cmpi ne, %1, %c0_i32_0 : i32
    scf.if %2 {
      %c0_251 = arith.constant 0 : index
      %c0_252 = arith.constant 0 : index
      %769 = vector.load %arg1[%c0_251, %c0_252] : memref<16x64xf32, #tpu.memory_space<vmem>>, vector<16x64xf32>
      %c0_253 = arith.constant 0 : index
      %c0_254 = arith.constant 0 : index
      %770 = vector.load %arg24[%c0_253, %c0_254] : memref<16x64xf32, #tpu.memory_space<vmem>>, vector<16x64xf32>
      tpu.vector_store %arg24[%c0_253, %c0_254], %769 {strides = array<i32>} : memref<16x64xf32, #tpu.memory_space<vmem>>, vector<16x64xf32>,
    } else {
    }
    %c0 = arith.constant 0 : index
    %c0_1 = arith.constant 0 : index
    %3 = vector.load %arg24[%c0, %c0_1] : memref<16x64xf32, #tpu.memory_space<vmem>>, vector<16x64xf32>
    %c0_2 = arith.constant 0 : index
    %c0_3 = arith.constant 0 : index
    %4 = vector.load %arg2[%c0_2, %c0_3] : memref<16x64xf32, #tpu.memory_space<vmem>>, vector<16x64xf32>
    %5 = tpu.iota {dimensions = array<i32: 0>} : vector<8x8xi32>
    %6 = tpu.iota {dimensions = array<i32: 1>} : vector<8x8xi32>
    %7 = arith.cmpi sgt, %6, %5 : vector<8x8xi32>
    %cst = arith.constant -1.000000e+30 : f32
    %cst_4 = arith.constant 0.000000e+00 : f32
    %8 = vector.broadcast %cst : f32 to vector<8x8xf32>
    %9 = vector.broadcast %cst_4 : f32 to vector<8x8xf32>
    %10 = arith.select %7, %8, %9 : vector<8x8xi1>, vector<8x8xf32>
    %11 = arith.truncf %3 : vector<16x64xf32> to vector<16x64xbf16>
    %c0_5 = arith.constant 0 : index
    %c0_6 = arith.constant 0 : index
    %c0_7 = arith.constant 0 : index
    %12 = vector.load %arg3[%c0_5, %c0_6, %c0_7] : memref<1x64x192xbf16, #tpu.memory_space<vmem>>, vector<1x64x192xbf16>
    %13 = vector.shape_cast %12 : vector<1x64x192xbf16> to vector<64x192xbf16>
    %cst_8 = arith.constant dense<0.000000e+00> : vector<16x192xf32>
    %14 = tpu.matmul %11, %13, %cst_8 {dimension_numbers = #tpu.dot_dimension_numbers<[1], [0], [0], [1], [0, 0, 1, 1], [], []>} : vector<16x64xbf16>, vector<64x192xbf16>, vector<16x192xf32> -> vector<16x192xf32>
    %c0_9 = arith.constant 0 : index
    %c0_10 = arith.constant 0 : index
    %c0_11 = arith.constant 0 : index
    %15 = vector.load %arg4[%c0_9, %c0_10, %c0_11] : memref<1x1x192xf32, #tpu.memory_space<vmem>>, vector<1x1x192xf32>
    %16 = vector.shape_cast %15 : vector<1x1x192xf32> to vector<1x192xf32>
    %17 = vector.broadcast %16 : vector<1x192xf32> to vector<16x192xf32>
    %18 = arith.addf %14, %17 : vector<16x192xf32>
    %19 = vector.extract_strided_slice %18 {offsets = [0, 0], sizes = [16, 64], strides = [1, 1]} : vector<16x192xf32> to vector<16x64xf32>
    %20 = vector.extract_strided_slice %18 {offsets = [0, 64], sizes = [16, 64], strides = [1, 1]} : vector<16x192xf32> to vector<16x64xf32>
    %21 = vector.extract_strided_slice %18 {offsets = [0, 128], sizes = [16, 64], strides = [1, 1]} : vector<16x192xf32> to vector<16x64xf32>
    %22 = vector.extract_strided_slice %19 {offsets = [0, 0], sizes = [8, 64], strides = [1, 1]} : vector<16x64xf32> to vector<8x64xf32>
    %23 = vector.extract_strided_slice %20 {offsets = [0, 0], sizes = [8, 64], strides = [1, 1]} : vector<16x64xf32> to vector<8x64xf32>
    %24 = vector.extract_strided_slice %21 {offsets = [0, 0], sizes = [8, 64], strides = [1, 1]} : vector<16x64xf32> to vector<8x64xf32>
    %25 = vector.extract_strided_slice %22 {offsets = [0, 0], sizes = [8, 8], strides = [1, 1]} : vector<8x64xf32> to vector<8x8xf32>
    %26 = vector.extract_strided_slice %23 {offsets = [0, 0], sizes = [8, 8], strides = [1, 1]} : vector<8x64xf32> to vector<8x8xf32>
    %27 = tpu.transpose %26, [1, 0] : vector<8x8xf32> -> vector<8x8xf32>
    %cst_12 = arith.constant dense<0.000000e+00> : vector<8x8xf32>
    %28 = tpu.matmul %25, %27, %cst_12 {dimension_numbers = #tpu.dot_dimension_numbers<[1], [0], [0], [1], [0, 0, 1, 1], [], []>} : vector<8x8xf32>, vector<8x8xf32>, vector<8x8xf32> -> vector<8x8xf32>
    %cst_13 = arith.constant 0.353553385 : f32
    %29 = vector.broadcast %cst_13 : f32 to vector<8x8xf32>
    %30 = arith.mulf %28, %29 : vector<8x8xf32>
    %31 = arith.addf %30, %10 : vector<8x8xf32>
    %cst_14 = arith.constant dense<0xFF800000> : vector<8xf32>
    %32 = vector.multi_reduction <maximumf>, %31, %cst_14 [1] : vector<8x8xf32> to vector<8xf32>
    %33 = vector.shape_cast %32 : vector<8xf32> to vector<8x1xf32>
    %34 = vector.broadcast %33 : vector<8x1xf32> to vector<8x8xf32>
    %35 = arith.subf %31, %34 : vector<8x8xf32>
    %36 = math.exp %35 : vector<8x8xf32>
    %cst_15 = arith.constant dense<0.000000e+00> : vector<8xf32>
    %37 = vector.multi_reduction <add>, %36, %cst_15 [1] : vector<8x8xf32> to vector<8xf32>
    %38 = vector.shape_cast %37 : vector<8xf32> to vector<8x1xf32>
    %39 = tpu.reciprocal %38 {approx = true} : vector<8x1xf32> -> vector<8x1xf32>
    %40 = vector.broadcast %39 : vector<8x1xf32> to vector<8x8xf32>
    %41 = arith.mulf %36, %40 : vector<8x8xf32>
    %42 = vector.extract_strided_slice %24 {offsets = [0, 0], sizes = [8, 8], strides = [1, 1]} : vector<8x64xf32> to vector<8x8xf32>
    %cst_16 = arith.constant dense<0.000000e+00> : vector<8x8xf32>
    %43 = tpu.matmul %41, %42, %cst_16 {dimension_numbers = #tpu.dot_dimension_numbers<[1], [0], [0], [1], [0, 0, 1, 1], [], []>} : vector<8x8xf32>, vector<8x8xf32>, vector<8x8xf32> -> vector<8x8xf32>
    %44 = vector.extract_strided_slice %22 {offsets = [0, 8], sizes = [8, 8], strides = [1, 1]} : vector<8x64xf32> to vector<8x8xf32>
    %45 = vector.extract_strided_slice %23 {offsets = [0, 8], sizes = [8, 8], strides = [1, 1]} : vector<8x64xf32> to vector<8x8xf32>
    %46 = tpu.transpose %45, [1, 0] : vector<8x8xf32> -> vector<8x8xf32>
    %cst_17 = arith.constant dense<0.000000e+00> : vector<8x8xf32>
    %47 = tpu.matmul %44, %46, %cst_17 {dimension_numbers = #tpu.dot_dimension_numbers<[1], [0], [0], [1], [0, 0, 1, 1], [], []>} : vector<8x8xf32>, vector<8x8xf32>, vector<8x8xf32> -> vector<8x8xf32>
    %cst_18 = arith.constant 0.353553385 : f32
    %48 = vector.broadcast %cst_18 : f32 to vector<8x8xf32>
    %49 = arith.mulf %47, %48 : vector<8x8xf32>
    %50 = arith.addf %49, %10 : vector<8x8xf32>
    %cst_19 = arith.constant dense<0xFF800000> : vector<8xf32>
    %51 = vector.multi_reduction <maximumf>, %50, %cst_19 [1] : vector<8x8xf32> to vector<8xf32>
    %52 = vector.shape_cast %51 : vector<8xf32> to vector<8x1xf32>
    %53 = vector.broadcast %52 : vector<8x1xf32> to vector<8x8xf32>
    %54 = arith.subf %50, %53 : vector<8x8xf32>
    %55 = math.exp %54 : vector<8x8xf32>
    %cst_20 = arith.constant dense<0.000000e+00> : vector<8xf32>
    %56 = vector.multi_reduction <add>, %55, %cst_20 [1] : vector<8x8xf32> to vector<8xf32>
    %57 = vector.shape_cast %56 : vector<8xf32> to vector<8x1xf32>
    %58 = tpu.reciprocal %57 {approx = true} : vector<8x1xf32> -> vector<8x1xf32>
    %59 = vector.broadcast %58 : vector<8x1xf32> to vector<8x8xf32>
    %60 = arith.mulf %55, %59 : vector<8x8xf32>
    %61 = vector.extract_strided_slice %24 {offsets = [0, 8], sizes = [8, 8], strides = [1, 1]} : vector<8x64xf32> to vector<8x8xf32>
    %cst_21 = arith.constant dense<0.000000e+00> : vector<8x8xf32>
    %62 = tpu.matmul %60, %61, %cst_21 {dimension_numbers = #tpu.dot_dimension_numbers<[1], [0], [0], [1], [0, 0, 1, 1], [], []>} : vector<8x8xf32>, vector<8x8xf32>, vector<8x8xf32> -> vector<8x8xf32>
    %63 = vector.extract_strided_slice %22 {offsets = [0, 16], sizes = [8, 8], strides = [1, 1]} : vector<8x64xf32> to vector<8x8xf32>
    %64 = vector.extract_strided_slice %23 {offsets = [0, 16], sizes = [8, 8], strides = [1, 1]} : vector<8x64xf32> to vector<8x8xf32>
    %65 = tpu.transpose %64, [1, 0] : vector<8x8xf32> -> vector<8x8xf32>
    %cst_22 = arith.constant dense<0.000000e+00> : vector<8x8xf32>
    %66 = tpu.matmul %63, %65, %cst_22 {dimension_numbers = #tpu.dot_dimension_numbers<[1], [0], [0], [1], [0, 0, 1, 1], [], []>} : vector<8x8xf32>, vector<8x8xf32>, vector<8x8xf32> -> vector<8x8xf32>
    %cst_23 = arith.constant 0.353553385 : f32
    %67 = vector.broadcast %cst_23 : f32 to vector<8x8xf32>
    %68 = arith.mulf %66, %67 : vector<8x8xf32>
    %69 = arith.addf %68, %10 : vector<8x8xf32>
    %cst_24 = arith.constant dense<0xFF800000> : vector<8xf32>
    %70 = vector.multi_reduction <maximumf>, %69, %cst_24 [1] : vector<8x8xf32> to vector<8xf32>
    %71 = vector.shape_cast %70 : vector<8xf32> to vector<8x1xf32>
    %72 = vector.broadcast %71 : vector<8x1xf32> to vector<8x8xf32>
    %73 = arith.subf %69, %72 : vector<8x8xf32>
    %74 = math.exp %73 : vector<8x8xf32>
    %cst_25 = arith.constant dense<0.000000e+00> : vector<8xf32>
    %75 = vector.multi_reduction <add>, %74, %cst_25 [1] : vector<8x8xf32> to vector<8xf32>
    %76 = vector.shape_cast %75 : vector<8xf32> to vector<8x1xf32>
    %77 = tpu.reciprocal %76 {approx = true} : vector<8x1xf32> -> vector<8x1xf32>
    %78 = vector.broadcast %77 : vector<8x1xf32> to vector<8x8xf32>
    %79 = arith.mulf %74, %78 : vector<8x8xf32>
    %80 = vector.extract_strided_slice %24 {offsets = [0, 16], sizes = [8, 8], strides = [1, 1]} : vector<8x64xf32> to vector<8x8xf32>
    %cst_26 = arith.constant dense<0.000000e+00> : vector<8x8xf32>
    %81 = tpu.matmul %79, %80, %cst_26 {dimension_numbers = #tpu.dot_dimension_numbers<[1], [0], [0], [1], [0, 0, 1, 1], [], []>} : vector<8x8xf32>, vector<8x8xf32>, vector<8x8xf32> -> vector<8x8xf32>
    %82 = vector.extract_strided_slice %22 {offsets = [0, 24], sizes = [8, 8], strides = [1, 1]} : vector<8x64xf32> to vector<8x8xf32>
    %83 = vector.extract_strided_slice %23 {offsets = [0, 24], sizes = [8, 8], strides = [1, 1]} : vector<8x64xf32> to vector<8x8xf32>
    %84 = tpu.transpose %83, [1, 0] : vector<8x8xf32> -> vector<8x8xf32>
    %cst_27 = arith.constant dense<0.000000e+00> : vector<8x8xf32>
    %85 = tpu.matmul %82, %84, %cst_27 {dimension_numbers = #tpu.dot_dimension_numbers<[1], [0], [0], [1], [0, 0, 1, 1], [], []>} : vector<8x8xf32>, vector<8x8xf32>, vector<8x8xf32> -> vector<8x8xf32>
    %cst_28 = arith.constant 0.353553385 : f32
    %86 = vector.broadcast %cst_28 : f32 to vector<8x8xf32>
    %87 = arith.mulf %85, %86 : vector<8x8xf32>
    %88 = arith.addf %87, %10 : vector<8x8xf32>
    %cst_29 = arith.constant dense<0xFF800000> : vector<8xf32>
    %89 = vector.multi_reduction <maximumf>, %88, %cst_29 [1] : vector<8x8xf32> to vector<8xf32>
    %90 = vector.shape_cast %89 : vector<8xf32> to vector<8x1xf32>
    %91 = vector.broadcast %90 : vector<8x1xf32> to vector<8x8xf32>
    %92 = arith.subf %88, %91 : vector<8x8xf32>
    %93 = math.exp %92 : vector<8x8xf32>
    %cst_30 = arith.constant dense<0.000000e+00> : vector<8xf32>
    %94 = vector.multi_reduction <add>, %93, %cst_30 [1] : vector<8x8xf32> to vector<8xf32>
    %95 = vector.shape_cast %94 : vector<8xf32> to vector<8x1xf32>
    %96 = tpu.reciprocal %95 {approx = true} : vector<8x1xf32> -> vector<8x1xf32>
    %97 = vector.broadcast %96 : vector<8x1xf32> to vector<8x8xf32>
    %98 = arith.mulf %93, %97 : vector<8x8xf32>
    %99 = vector.extract_strided_slice %24 {offsets = [0, 24], sizes = [8, 8], strides = [1, 1]} : vector<8x64xf32> to vector<8x8xf32>
    %cst_31 = arith.constant dense<0.000000e+00> : vector<8x8xf32>
    %100 = tpu.matmul %98, %99, %cst_31 {dimension_numbers = #tpu.dot_dimension_numbers<[1], [0], [0], [1], [0, 0, 1, 1], [], []>} : vector<8x8xf32>, vector<8x8xf32>, vector<8x8xf32> -> vector<8x8xf32>
    %101 = vector.extract_strided_slice %22 {offsets = [0, 32], sizes = [8, 8], strides = [1, 1]} : vector<8x64xf32> to vector<8x8xf32>
    %102 = vector.extract_strided_slice %23 {offsets = [0, 32], sizes = [8, 8], strides = [1, 1]} : vector<8x64xf32> to vector<8x8xf32>
    %103 = tpu.transpose %102, [1, 0] : vector<8x8xf32> -> vector<8x8xf32>
    %cst_32 = arith.constant dense<0.000000e+00> : vector<8x8xf32>
    %104 = tpu.matmul %101, %103, %cst_32 {dimension_numbers = #tpu.dot_dimension_numbers<[1], [0], [0], [1], [0, 0, 1, 1], [], []>} : vector<8x8xf32>, vector<8x8xf32>, vector<8x8xf32> -> vector<8x8xf32>
    %cst_33 = arith.constant 0.353553385 : f32
    %105 = vector.broadcast %cst_33 : f32 to vector<8x8xf32>
    %106 = arith.mulf %104, %105 : vector<8x8xf32>
    %107 = arith.addf %106, %10 : vector<8x8xf32>
    %cst_34 = arith.constant dense<0xFF800000> : vector<8xf32>
    %108 = vector.multi_reduction <maximumf>, %107, %cst_34 [1] : vector<8x8xf32> to vector<8xf32>
    %109 = vector.shape_cast %108 : vector<8xf32> to vector<8x1xf32>
    %110 = vector.broadcast %109 : vector<8x1xf32> to vector<8x8xf32>
    %111 = arith.subf %107, %110 : vector<8x8xf32>
    %112 = math.exp %111 : vector<8x8xf32>
    %cst_35 = arith.constant dense<0.000000e+00> : vector<8xf32>
    %113 = vector.multi_reduction <add>, %112, %cst_35 [1] : vector<8x8xf32> to vector<8xf32>
    %114 = vector.shape_cast %113 : vector<8xf32> to vector<8x1xf32>
    %115 = tpu.reciprocal %114 {approx = true} : vector<8x1xf32> -> vector<8x1xf32>
    %116 = vector.broadcast %115 : vector<8x1xf32> to vector<8x8xf32>
    %117 = arith.mulf %112, %116 : vector<8x8xf32>
    %118 = vector.extract_strided_slice %24 {offsets = [0, 32], sizes = [8, 8], strides = [1, 1]} : vector<8x64xf32> to vector<8x8xf32>
    %cst_36 = arith.constant dense<0.000000e+00> : vector<8x8xf32>
    %119 = tpu.matmul %117, %118, %cst_36 {dimension_numbers = #tpu.dot_dimension_numbers<[1], [0], [0], [1], [0, 0, 1, 1], [], []>} : vector<8x8xf32>, vector<8x8xf32>, vector<8x8xf32> -> vector<8x8xf32>
    %120 = vector.extract_strided_slice %22 {offsets = [0, 40], sizes = [8, 8], strides = [1, 1]} : vector<8x64xf32> to vector<8x8xf32>
    %121 = vector.extract_strided_slice %23 {offsets = [0, 40], sizes = [8, 8], strides = [1, 1]} : vector<8x64xf32> to vector<8x8xf32>
    %122 = tpu.transpose %121, [1, 0] : vector<8x8xf32> -> vector<8x8xf32>
    %cst_37 = arith.constant dense<0.000000e+00> : vector<8x8xf32>
    %123 = tpu.matmul %120, %122, %cst_37 {dimension_numbers = #tpu.dot_dimension_numbers<[1], [0], [0], [1], [0, 0, 1, 1], [], []>} : vector<8x8xf32>, vector<8x8xf32>, vector<8x8xf32> -> vector<8x8xf32>
    %cst_38 = arith.constant 0.353553385 : f32
    %124 = vector.broadcast %cst_38 : f32 to vector<8x8xf32>
    %125 = arith.mulf %123, %124 : vector<8x8xf32>
    %126 = arith.addf %125, %10 : vector<8x8xf32>
    %cst_39 = arith.constant dense<0xFF800000> : vector<8xf32>
    %127 = vector.multi_reduction <maximumf>, %126, %cst_39 [1] : vector<8x8xf32> to vector<8xf32>
    %128 = vector.shape_cast %127 : vector<8xf32> to vector<8x1xf32>
    %129 = vector.broadcast %128 : vector<8x1xf32> to vector<8x8xf32>
    %130 = arith.subf %126, %129 : vector<8x8xf32>
    %131 = math.exp %130 : vector<8x8xf32>
    %cst_40 = arith.constant dense<0.000000e+00> : vector<8xf32>
    %132 = vector.multi_reduction <add>, %131, %cst_40 [1] : vector<8x8xf32> to vector<8xf32>
    %133 = vector.shape_cast %132 : vector<8xf32> to vector<8x1xf32>
    %134 = tpu.reciprocal %133 {approx = true} : vector<8x1xf32> -> vector<8x1xf32>
    %135 = vector.broadcast %134 : vector<8x1xf32> to vector<8x8xf32>
    %136 = arith.mulf %131, %135 : vector<8x8xf32>
    %137 = vector.extract_strided_slice %24 {offsets = [0, 40], sizes = [8, 8], strides = [1, 1]} : vector<8x64xf32> to vector<8x8xf32>
    %cst_41 = arith.constant dense<0.000000e+00> : vector<8x8xf32>
    %138 = tpu.matmul %136, %137, %cst_41 {dimension_numbers = #tpu.dot_dimension_numbers<[1], [0], [0], [1], [0, 0, 1, 1], [], []>} : vector<8x8xf32>, vector<8x8xf32>, vector<8x8xf32> -> vector<8x8xf32>
    %139 = vector.extract_strided_slice %22 {offsets = [0, 48], sizes = [8, 8], strides = [1, 1]} : vector<8x64xf32> to vector<8x8xf32>
    %140 = vector.extract_strided_slice %23 {offsets = [0, 48], sizes = [8, 8], strides = [1, 1]} : vector<8x64xf32> to vector<8x8xf32>
    %141 = tpu.transpose %140, [1, 0] : vector<8x8xf32> -> vector<8x8xf32>
    %cst_42 = arith.constant dense<0.000000e+00> : vector<8x8xf32>
    %142 = tpu.matmul %139, %141, %cst_42 {dimension_numbers = #tpu.dot_dimension_numbers<[1], [0], [0], [1], [0, 0, 1, 1], [], []>} : vector<8x8xf32>, vector<8x8xf32>, vector<8x8xf32> -> vector<8x8xf32>
    %cst_43 = arith.constant 0.353553385 : f32
    %143 = vector.broadcast %cst_43 : f32 to vector<8x8xf32>
    %144 = arith.mulf %142, %143 : vector<8x8xf32>
    %145 = arith.addf %144, %10 : vector<8x8xf32>
    %cst_44 = arith.constant dense<0xFF800000> : vector<8xf32>
    %146 = vector.multi_reduction <maximumf>, %145, %cst_44 [1] : vector<8x8xf32> to vector<8xf32>
    %147 = vector.shape_cast %146 : vector<8xf32> to vector<8x1xf32>
    %148 = vector.broadcast %147 : vector<8x1xf32> to vector<8x8xf32>
    %149 = arith.subf %145, %148 : vector<8x8xf32>
    %150 = math.exp %149 : vector<8x8xf32>
    %cst_45 = arith.constant dense<0.000000e+00> : vector<8xf32>
    %151 = vector.multi_reduction <add>, %150, %cst_45 [1] : vector<8x8xf32> to vector<8xf32>
    %152 = vector.shape_cast %151 : vector<8xf32> to vector<8x1xf32>
    %153 = tpu.reciprocal %152 {approx = true} : vector<8x1xf32> -> vector<8x1xf32>
    %154 = vector.broadcast %153 : vector<8x1xf32> to vector<8x8xf32>
    %155 = arith.mulf %150, %154 : vector<8x8xf32>
    %156 = vector.extract_strided_slice %24 {offsets = [0, 48], sizes = [8, 8], strides = [1, 1]} : vector<8x64xf32> to vector<8x8xf32>
    %cst_46 = arith.constant dense<0.000000e+00> : vector<8x8xf32>
    %157 = tpu.matmul %155, %156, %cst_46 {dimension_numbers = #tpu.dot_dimension_numbers<[1], [0], [0], [1], [0, 0, 1, 1], [], []>} : vector<8x8xf32>, vector<8x8xf32>, vector<8x8xf32> -> vector<8x8xf32>
    %158 = vector.extract_strided_slice %22 {offsets = [0, 56], sizes = [8, 8], strides = [1, 1]} : vector<8x64xf32> to vector<8x8xf32>
    %159 = vector.extract_strided_slice %23 {offsets = [0, 56], sizes = [8, 8], strides = [1, 1]} : vector<8x64xf32> to vector<8x8xf32>
    %160 = tpu.transpose %159, [1, 0] : vector<8x8xf32> -> vector<8x8xf32>
    %cst_47 = arith.constant dense<0.000000e+00> : vector<8x8xf32>
    %161 = tpu.matmul %158, %160, %cst_47 {dimension_numbers = #tpu.dot_dimension_numbers<[1], [0], [0], [1], [0, 0, 1, 1], [], []>} : vector<8x8xf32>, vector<8x8xf32>, vector<8x8xf32> -> vector<8x8xf32>
    %cst_48 = arith.constant 0.353553385 : f32
    %162 = vector.broadcast %cst_48 : f32 to vector<8x8xf32>
    %163 = arith.mulf %161, %162 : vector<8x8xf32>
    %164 = arith.addf %163, %10 : vector<8x8xf32>
    %cst_49 = arith.constant dense<0xFF800000> : vector<8xf32>
    %165 = vector.multi_reduction <maximumf>, %164, %cst_49 [1] : vector<8x8xf32> to vector<8xf32>
    %166 = vector.shape_cast %165 : vector<8xf32> to vector<8x1xf32>
    %167 = vector.broadcast %166 : vector<8x1xf32> to vector<8x8xf32>
    %168 = arith.subf %164, %167 : vector<8x8xf32>
    %169 = math.exp %168 : vector<8x8xf32>
    %cst_50 = arith.constant dense<0.000000e+00> : vector<8xf32>
    %170 = vector.multi_reduction <add>, %169, %cst_50 [1] : vector<8x8xf32> to vector<8xf32>
    %171 = vector.shape_cast %170 : vector<8xf32> to vector<8x1xf32>
    %172 = tpu.reciprocal %171 {approx = true} : vector<8x1xf32> -> vector<8x1xf32>
    %173 = vector.broadcast %172 : vector<8x1xf32> to vector<8x8xf32>
    %174 = arith.mulf %169, %173 : vector<8x8xf32>
    %175 = vector.extract_strided_slice %24 {offsets = [0, 56], sizes = [8, 8], strides = [1, 1]} : vector<8x64xf32> to vector<8x8xf32>
    %cst_51 = arith.constant dense<0.000000e+00> : vector<8x8xf32>
    %176 = tpu.matmul %174, %175, %cst_51 {dimension_numbers = #tpu.dot_dimension_numbers<[1], [0], [0], [1], [0, 0, 1, 1], [], []>} : vector<8x8xf32>, vector<8x8xf32>, vector<8x8xf32> -> vector<8x8xf32>
    %177 = tpu.concatenate %43, %62, %81, %100, %119, %138, %157, %176 in 1 : vector<8x8xf32>, vector<8x8xf32>, vector<8x8xf32>, vector<8x8xf32>, vector<8x8xf32>, vector<8x8xf32>, vector<8x8xf32>, vector<8x8xf32> -> vector<8x64xf32>
    %178 = vector.extract_strided_slice %19 {offsets = [8, 0], sizes = [8, 64], strides = [1, 1]} : vector<16x64xf32> to vector<8x64xf32>
    %179 = vector.extract_strided_slice %20 {offsets = [8, 0], sizes = [8, 64], strides = [1, 1]} : vector<16x64xf32> to vector<8x64xf32>
    %180 = vector.extract_strided_slice %21 {offsets = [8, 0], sizes = [8, 64], strides = [1, 1]} : vector<16x64xf32> to vector<8x64xf32>
    %181 = vector.extract_strided_slice %178 {offsets = [0, 0], sizes = [8, 8], strides = [1, 1]} : vector<8x64xf32> to vector<8x8xf32>
    %182 = vector.extract_strided_slice %179 {offsets = [0, 0], sizes = [8, 8], strides = [1, 1]} : vector<8x64xf32> to vector<8x8xf32>
    %183 = tpu.transpose %182, [1, 0] : vector<8x8xf32> -> vector<8x8xf32>
    %cst_52 = arith.constant dense<0.000000e+00> : vector<8x8xf32>
    %184 = tpu.matmul %181, %183, %cst_52 {dimension_numbers = #tpu.dot_dimension_numbers<[1], [0], [0], [1], [0, 0, 1, 1], [], []>} : vector<8x8xf32>, vector<8x8xf32>, vector<8x8xf32> -> vector<8x8xf32>
    %cst_53 = arith.constant 0.353553385 : f32
    %185 = vector.broadcast %cst_53 : f32 to vector<8x8xf32>
    %186 = arith.mulf %184, %185 : vector<8x8xf32>
    %187 = arith.addf %186, %10 : vector<8x8xf32>
    %cst_54 = arith.constant dense<0xFF800000> : vector<8xf32>
    %188 = vector.multi_reduction <maximumf>, %187, %cst_54 [1] : vector<8x8xf32> to vector<8xf32>
    %189 = vector.shape_cast %188 : vector<8xf32> to vector<8x1xf32>
    %190 = vector.broadcast %189 : vector<8x1xf32> to vector<8x8xf32>
    %191 = arith.subf %187, %190 : vector<8x8xf32>
    %192 = math.exp %191 : vector<8x8xf32>
    %cst_55 = arith.constant dense<0.000000e+00> : vector<8xf32>
    %193 = vector.multi_reduction <add>, %192, %cst_55 [1] : vector<8x8xf32> to vector<8xf32>
    %194 = vector.shape_cast %193 : vector<8xf32> to vector<8x1xf32>
    %195 = tpu.reciprocal %194 {approx = true} : vector<8x1xf32> -> vector<8x1xf32>
    %196 = vector.broadcast %195 : vector<8x1xf32> to vector<8x8xf32>
    %197 = arith.mulf %192, %196 : vector<8x8xf32>
    %198 = vector.extract_strided_slice %180 {offsets = [0, 0], sizes = [8, 8], strides = [1, 1]} : vector<8x64xf32> to vector<8x8xf32>
    %cst_56 = arith.constant dense<0.000000e+00> : vector<8x8xf32>
    %199 = tpu.matmul %197, %198, %cst_56 {dimension_numbers = #tpu.dot_dimension_numbers<[1], [0], [0], [1], [0, 0, 1, 1], [], []>} : vector<8x8xf32>, vector<8x8xf32>, vector<8x8xf32> -> vector<8x8xf32>
    %200 = vector.extract_strided_slice %178 {offsets = [0, 8], sizes = [8, 8], strides = [1, 1]} : vector<8x64xf32> to vector<8x8xf32>
    %201 = vector.extract_strided_slice %179 {offsets = [0, 8], sizes = [8, 8], strides = [1, 1]} : vector<8x64xf32> to vector<8x8xf32>
    %202 = tpu.transpose %201, [1, 0] : vector<8x8xf32> -> vector<8x8xf32>
    %cst_57 = arith.constant dense<0.000000e+00> : vector<8x8xf32>
    %203 = tpu.matmul %200, %202, %cst_57 {dimension_numbers = #tpu.dot_dimension_numbers<[1], [0], [0], [1], [0, 0, 1, 1], [], []>} : vector<8x8xf32>, vector<8x8xf32>, vector<8x8xf32> -> vector<8x8xf32>
    %cst_58 = arith.constant 0.353553385 : f32
    %204 = vector.broadcast %cst_58 : f32 to vector<8x8xf32>
    %205 = arith.mulf %203, %204 : vector<8x8xf32>
    %206 = arith.addf %205, %10 : vector<8x8xf32>
    %cst_59 = arith.constant dense<0xFF800000> : vector<8xf32>
    %207 = vector.multi_reduction <maximumf>, %206, %cst_59 [1] : vector<8x8xf32> to vector<8xf32>
    %208 = vector.shape_cast %207 : vector<8xf32> to vector<8x1xf32>
    %209 = vector.broadcast %208 : vector<8x1xf32> to vector<8x8xf32>
    %210 = arith.subf %206, %209 : vector<8x8xf32>
    %211 = math.exp %210 : vector<8x8xf32>
    %cst_60 = arith.constant dense<0.000000e+00> : vector<8xf32>
    %212 = vector.multi_reduction <add>, %211, %cst_60 [1] : vector<8x8xf32> to vector<8xf32>
    %213 = vector.shape_cast %212 : vector<8xf32> to vector<8x1xf32>
    %214 = tpu.reciprocal %213 {approx = true} : vector<8x1xf32> -> vector<8x1xf32>
    %215 = vector.broadcast %214 : vector<8x1xf32> to vector<8x8xf32>
    %216 = arith.mulf %211, %215 : vector<8x8xf32>
    %217 = vector.extract_strided_slice %180 {offsets = [0, 8], sizes = [8, 8], strides = [1, 1]} : vector<8x64xf32> to vector<8x8xf32>
    %cst_61 = arith.constant dense<0.000000e+00> : vector<8x8xf32>
    %218 = tpu.matmul %216, %217, %cst_61 {dimension_numbers = #tpu.dot_dimension_numbers<[1], [0], [0], [1], [0, 0, 1, 1], [], []>} : vector<8x8xf32>, vector<8x8xf32>, vector<8x8xf32> -> vector<8x8xf32>
    %219 = vector.extract_strided_slice %178 {offsets = [0, 16], sizes = [8, 8], strides = [1, 1]} : vector<8x64xf32> to vector<8x8xf32>
    %220 = vector.extract_strided_slice %179 {offsets = [0, 16], sizes = [8, 8], strides = [1, 1]} : vector<8x64xf32> to vector<8x8xf32>
    %221 = tpu.transpose %220, [1, 0] : vector<8x8xf32> -> vector<8x8xf32>
    %cst_62 = arith.constant dense<0.000000e+00> : vector<8x8xf32>
    %222 = tpu.matmul %219, %221, %cst_62 {dimension_numbers = #tpu.dot_dimension_numbers<[1], [0], [0], [1], [0, 0, 1, 1], [], []>} : vector<8x8xf32>, vector<8x8xf32>, vector<8x8xf32> -> vector<8x8xf32>
    %cst_63 = arith.constant 0.353553385 : f32
    %223 = vector.broadcast %cst_63 : f32 to vector<8x8xf32>
    %224 = arith.mulf %222, %223 : vector<8x8xf32>
    %225 = arith.addf %224, %10 : vector<8x8xf32>
    %cst_64 = arith.constant dense<0xFF800000> : vector<8xf32>
    %226 = vector.multi_reduction <maximumf>, %225, %cst_64 [1] : vector<8x8xf32> to vector<8xf32>
    %227 = vector.shape_cast %226 : vector<8xf32> to vector<8x1xf32>
    %228 = vector.broadcast %227 : vector<8x1xf32> to vector<8x8xf32>
    %229 = arith.subf %225, %228 : vector<8x8xf32>
    %230 = math.exp %229 : vector<8x8xf32>
    %cst_65 = arith.constant dense<0.000000e+00> : vector<8xf32>
    %231 = vector.multi_reduction <add>, %230, %cst_65 [1] : vector<8x8xf32> to vector<8xf32>
    %232 = vector.shape_cast %231 : vector<8xf32> to vector<8x1xf32>
    %233 = tpu.reciprocal %232 {approx = true} : vector<8x1xf32> -> vector<8x1xf32>
    %234 = vector.broadcast %233 : vector<8x1xf32> to vector<8x8xf32>
    %235 = arith.mulf %230, %234 : vector<8x8xf32>
    %236 = vector.extract_strided_slice %180 {offsets = [0, 16], sizes = [8, 8], strides = [1, 1]} : vector<8x64xf32> to vector<8x8xf32>
    %cst_66 = arith.constant dense<0.000000e+00> : vector<8x8xf32>
    %237 = tpu.matmul %235, %236, %cst_66 {dimension_numbers = #tpu.dot_dimension_numbers<[1], [0], [0], [1], [0, 0, 1, 1], [], []>} : vector<8x8xf32>, vector<8x8xf32>, vector<8x8xf32> -> vector<8x8xf32>
    %238 = vector.extract_strided_slice %178 {offsets = [0, 24], sizes = [8, 8], strides = [1, 1]} : vector<8x64xf32> to vector<8x8xf32>
    %239 = vector.extract_strided_slice %179 {offsets = [0, 24], sizes = [8, 8], strides = [1, 1]} : vector<8x64xf32> to vector<8x8xf32>
    %240 = tpu.transpose %239, [1, 0] : vector<8x8xf32> -> vector<8x8xf32>
    %cst_67 = arith.constant dense<0.000000e+00> : vector<8x8xf32>
    %241 = tpu.matmul %238, %240, %cst_67 {dimension_numbers = #tpu.dot_dimension_numbers<[1], [0], [0], [1], [0, 0, 1, 1], [], []>} : vector<8x8xf32>, vector<8x8xf32>, vector<8x8xf32> -> vector<8x8xf32>
    %cst_68 = arith.constant 0.353553385 : f32
    %242 = vector.broadcast %cst_68 : f32 to vector<8x8xf32>
    %243 = arith.mulf %241, %242 : vector<8x8xf32>
    %244 = arith.addf %243, %10 : vector<8x8xf32>
    %cst_69 = arith.constant dense<0xFF800000> : vector<8xf32>
    %245 = vector.multi_reduction <maximumf>, %244, %cst_69 [1] : vector<8x8xf32> to vector<8xf32>
    %246 = vector.shape_cast %245 : vector<8xf32> to vector<8x1xf32>
    %247 = vector.broadcast %246 : vector<8x1xf32> to vector<8x8xf32>
    %248 = arith.subf %244, %247 : vector<8x8xf32>
    %249 = math.exp %248 : vector<8x8xf32>
    %cst_70 = arith.constant dense<0.000000e+00> : vector<8xf32>
    %250 = vector.multi_reduction <add>, %249, %cst_70 [1] : vector<8x8xf32> to vector<8xf32>
    %251 = vector.shape_cast %250 : vector<8xf32> to vector<8x1xf32>
    %252 = tpu.reciprocal %251 {approx = true} : vector<8x1xf32> -> vector<8x1xf32>
    %253 = vector.broadcast %252 : vector<8x1xf32> to vector<8x8xf32>
    %254 = arith.mulf %249, %253 : vector<8x8xf32>
    %255 = vector.extract_strided_slice %180 {offsets = [0, 24], sizes = [8, 8], strides = [1, 1]} : vector<8x64xf32> to vector<8x8xf32>
    %cst_71 = arith.constant dense<0.000000e+00> : vector<8x8xf32>
    %256 = tpu.matmul %254, %255, %cst_71 {dimension_numbers = #tpu.dot_dimension_numbers<[1], [0], [0], [1], [0, 0, 1, 1], [], []>} : vector<8x8xf32>, vector<8x8xf32>, vector<8x8xf32> -> vector<8x8xf32>
    %257 = vector.extract_strided_slice %178 {offsets = [0, 32], sizes = [8, 8], strides = [1, 1]} : vector<8x64xf32> to vector<8x8xf32>
    %258 = vector.extract_strided_slice %179 {offsets = [0, 32], sizes = [8, 8], strides = [1, 1]} : vector<8x64xf32> to vector<8x8xf32>
    %259 = tpu.transpose %258, [1, 0] : vector<8x8xf32> -> vector<8x8xf32>
    %cst_72 = arith.constant dense<0.000000e+00> : vector<8x8xf32>
    %260 = tpu.matmul %257, %259, %cst_72 {dimension_numbers = #tpu.dot_dimension_numbers<[1], [0], [0], [1], [0, 0, 1, 1], [], []>} : vector<8x8xf32>, vector<8x8xf32>, vector<8x8xf32> -> vector<8x8xf32>
    %cst_73 = arith.constant 0.353553385 : f32
    %261 = vector.broadcast %cst_73 : f32 to vector<8x8xf32>
    %262 = arith.mulf %260, %261 : vector<8x8xf32>
    %263 = arith.addf %262, %10 : vector<8x8xf32>
    %cst_74 = arith.constant dense<0xFF800000> : vector<8xf32>
    %264 = vector.multi_reduction <maximumf>, %263, %cst_74 [1] : vector<8x8xf32> to vector<8xf32>
    %265 = vector.shape_cast %264 : vector<8xf32> to vector<8x1xf32>
    %266 = vector.broadcast %265 : vector<8x1xf32> to vector<8x8xf32>
    %267 = arith.subf %263, %266 : vector<8x8xf32>
    %268 = math.exp %267 : vector<8x8xf32>
    %cst_75 = arith.constant dense<0.000000e+00> : vector<8xf32>
    %269 = vector.multi_reduction <add>, %268, %cst_75 [1] : vector<8x8xf32> to vector<8xf32>
    %270 = vector.shape_cast %269 : vector<8xf32> to vector<8x1xf32>
    %271 = tpu.reciprocal %270 {approx = true} : vector<8x1xf32> -> vector<8x1xf32>
    %272 = vector.broadcast %271 : vector<8x1xf32> to vector<8x8xf32>
    %273 = arith.mulf %268, %272 : vector<8x8xf32>
    %274 = vector.extract_strided_slice %180 {offsets = [0, 32], sizes = [8, 8], strides = [1, 1]} : vector<8x64xf32> to vector<8x8xf32>
    %cst_76 = arith.constant dense<0.000000e+00> : vector<8x8xf32>
    %275 = tpu.matmul %273, %274, %cst_76 {dimension_numbers = #tpu.dot_dimension_numbers<[1], [0], [0], [1], [0, 0, 1, 1], [], []>} : vector<8x8xf32>, vector<8x8xf32>, vector<8x8xf32> -> vector<8x8xf32>
    %276 = vector.extract_strided_slice %178 {offsets = [0, 40], sizes = [8, 8], strides = [1, 1]} : vector<8x64xf32> to vector<8x8xf32>
    %277 = vector.extract_strided_slice %179 {offsets = [0, 40], sizes = [8, 8], strides = [1, 1]} : vector<8x64xf32> to vector<8x8xf32>
    %278 = tpu.transpose %277, [1, 0] : vector<8x8xf32> -> vector<8x8xf32>
    %cst_77 = arith.constant dense<0.000000e+00> : vector<8x8xf32>
    %279 = tpu.matmul %276, %278, %cst_77 {dimension_numbers = #tpu.dot_dimension_numbers<[1], [0], [0], [1], [0, 0, 1, 1], [], []>} : vector<8x8xf32>, vector<8x8xf32>, vector<8x8xf32> -> vector<8x8xf32>
    %cst_78 = arith.constant 0.353553385 : f32
    %280 = vector.broadcast %cst_78 : f32 to vector<8x8xf32>
    %281 = arith.mulf %279, %280 : vector<8x8xf32>
    %282 = arith.addf %281, %10 : vector<8x8xf32>
    %cst_79 = arith.constant dense<0xFF800000> : vector<8xf32>
    %283 = vector.multi_reduction <maximumf>, %282, %cst_79 [1] : vector<8x8xf32> to vector<8xf32>
    %284 = vector.shape_cast %283 : vector<8xf32> to vector<8x1xf32>
    %285 = vector.broadcast %284 : vector<8x1xf32> to vector<8x8xf32>
    %286 = arith.subf %282, %285 : vector<8x8xf32>
    %287 = math.exp %286 : vector<8x8xf32>
    %cst_80 = arith.constant dense<0.000000e+00> : vector<8xf32>
    %288 = vector.multi_reduction <add>, %287, %cst_80 [1] : vector<8x8xf32> to vector<8xf32>
    %289 = vector.shape_cast %288 : vector<8xf32> to vector<8x1xf32>
    %290 = tpu.reciprocal %289 {approx = true} : vector<8x1xf32> -> vector<8x1xf32>
    %291 = vector.broadcast %290 : vector<8x1xf32> to vector<8x8xf32>
    %292 = arith.mulf %287, %291 : vector<8x8xf32>
    %293 = vector.extract_strided_slice %180 {offsets = [0, 40], sizes = [8, 8], strides = [1, 1]} : vector<8x64xf32> to vector<8x8xf32>
    %cst_81 = arith.constant dense<0.000000e+00> : vector<8x8xf32>
    %294 = tpu.matmul %292, %293, %cst_81 {dimension_numbers = #tpu.dot_dimension_numbers<[1], [0], [0], [1], [0, 0, 1, 1], [], []>} : vector<8x8xf32>, vector<8x8xf32>, vector<8x8xf32> -> vector<8x8xf32>
    %295 = vector.extract_strided_slice %178 {offsets = [0, 48], sizes = [8, 8], strides = [1, 1]} : vector<8x64xf32> to vector<8x8xf32>
    %296 = vector.extract_strided_slice %179 {offsets = [0, 48], sizes = [8, 8], strides = [1, 1]} : vector<8x64xf32> to vector<8x8xf32>
    %297 = tpu.transpose %296, [1, 0] : vector<8x8xf32> -> vector<8x8xf32>
    %cst_82 = arith.constant dense<0.000000e+00> : vector<8x8xf32>
    %298 = tpu.matmul %295, %297, %cst_82 {dimension_numbers = #tpu.dot_dimension_numbers<[1], [0], [0], [1], [0, 0, 1, 1], [], []>} : vector<8x8xf32>, vector<8x8xf32>, vector<8x8xf32> -> vector<8x8xf32>
    %cst_83 = arith.constant 0.353553385 : f32
    %299 = vector.broadcast %cst_83 : f32 to vector<8x8xf32>
    %300 = arith.mulf %298, %299 : vector<8x8xf32>
    %301 = arith.addf %300, %10 : vector<8x8xf32>
    %cst_84 = arith.constant dense<0xFF800000> : vector<8xf32>
    %302 = vector.multi_reduction <maximumf>, %301, %cst_84 [1] : vector<8x8xf32> to vector<8xf32>
    %303 = vector.shape_cast %302 : vector<8xf32> to vector<8x1xf32>
    %304 = vector.broadcast %303 : vector<8x1xf32> to vector<8x8xf32>
    %305 = arith.subf %301, %304 : vector<8x8xf32>
    %306 = math.exp %305 : vector<8x8xf32>
    %cst_85 = arith.constant dense<0.000000e+00> : vector<8xf32>
    %307 = vector.multi_reduction <add>, %306, %cst_85 [1] : vector<8x8xf32> to vector<8xf32>
    %308 = vector.shape_cast %307 : vector<8xf32> to vector<8x1xf32>
    %309 = tpu.reciprocal %308 {approx = true} : vector<8x1xf32> -> vector<8x1xf32>
    %310 = vector.broadcast %309 : vector<8x1xf32> to vector<8x8xf32>
    %311 = arith.mulf %306, %310 : vector<8x8xf32>
    %312 = vector.extract_strided_slice %180 {offsets = [0, 48], sizes = [8, 8], strides = [1, 1]} : vector<8x64xf32> to vector<8x8xf32>
    %cst_86 = arith.constant dense<0.000000e+00> : vector<8x8xf32>
    %313 = tpu.matmul %311, %312, %cst_86 {dimension_numbers = #tpu.dot_dimension_numbers<[1], [0], [0], [1], [0, 0, 1, 1], [], []>} : vector<8x8xf32>, vector<8x8xf32>, vector<8x8xf32> -> vector<8x8xf32>
    %314 = vector.extract_strided_slice %178 {offsets = [0, 56], sizes = [8, 8], strides = [1, 1]} : vector<8x64xf32> to vector<8x8xf32>
    %315 = vector.extract_strided_slice %179 {offsets = [0, 56], sizes = [8, 8], strides = [1, 1]} : vector<8x64xf32> to vector<8x8xf32>
    %316 = tpu.transpose %315, [1, 0] : vector<8x8xf32> -> vector<8x8xf32>
    %cst_87 = arith.constant dense<0.000000e+00> : vector<8x8xf32>
    %317 = tpu.matmul %314, %316, %cst_87 {dimension_numbers = #tpu.dot_dimension_numbers<[1], [0], [0], [1], [0, 0, 1, 1], [], []>} : vector<8x8xf32>, vector<8x8xf32>, vector<8x8xf32> -> vector<8x8xf32>
    %cst_88 = arith.constant 0.353553385 : f32
    %318 = vector.broadcast %cst_88 : f32 to vector<8x8xf32>
    %319 = arith.mulf %317, %318 : vector<8x8xf32>
    %320 = arith.addf %319, %10 : vector<8x8xf32>
    %cst_89 = arith.constant dense<0xFF800000> : vector<8xf32>
    %321 = vector.multi_reduction <maximumf>, %320, %cst_89 [1] : vector<8x8xf32> to vector<8xf32>
    %322 = vector.shape_cast %321 : vector<8xf32> to vector<8x1xf32>
    %323 = vector.broadcast %322 : vector<8x1xf32> to vector<8x8xf32>
    %324 = arith.subf %320, %323 : vector<8x8xf32>
    %325 = math.exp %324 : vector<8x8xf32>
    %cst_90 = arith.constant dense<0.000000e+00> : vector<8xf32>
    %326 = vector.multi_reduction <add>, %325, %cst_90 [1] : vector<8x8xf32> to vector<8xf32>
    %327 = vector.shape_cast %326 : vector<8xf32> to vector<8x1xf32>
    %328 = tpu.reciprocal %327 {approx = true} : vector<8x1xf32> -> vector<8x1xf32>
    %329 = vector.broadcast %328 : vector<8x1xf32> to vector<8x8xf32>
    %330 = arith.mulf %325, %329 : vector<8x8xf32>
    %331 = vector.extract_strided_slice %180 {offsets = [0, 56], sizes = [8, 8], strides = [1, 1]} : vector<8x64xf32> to vector<8x8xf32>
    %cst_91 = arith.constant dense<0.000000e+00> : vector<8x8xf32>
    %332 = tpu.matmul %330, %331, %cst_91 {dimension_numbers = #tpu.dot_dimension_numbers<[1], [0], [0], [1], [0, 0, 1, 1], [], []>} : vector<8x8xf32>, vector<8x8xf32>, vector<8x8xf32> -> vector<8x8xf32>
    %333 = tpu.concatenate %199, %218, %237, %256, %275, %294, %313, %332 in 1 : vector<8x8xf32>, vector<8x8xf32>, vector<8x8xf32>, vector<8x8xf32>, vector<8x8xf32>, vector<8x8xf32>, vector<8x8xf32>, vector<8x8xf32> -> vector<8x64xf32>
    %334 = tpu.concatenate %177, %333 in 0 : vector<8x64xf32>, vector<8x64xf32> -> vector<16x64xf32>
    %335 = arith.truncf %334 : vector<16x64xf32> to vector<16x64xbf16>
    %c0_92 = arith.constant 0 : index
    %c0_93 = arith.constant 0 : index
    %c0_94 = arith.constant 0 : index
    %336 = vector.load %arg5[%c0_92, %c0_93, %c0_94] : memref<1x64x64xbf16, #tpu.memory_space<vmem>>, vector<1x64x64xbf16>
    %337 = vector.shape_cast %336 : vector<1x64x64xbf16> to vector<64x64xbf16>
    %cst_95 = arith.constant dense<0.000000e+00> : vector<16x64xf32>
    %338 = tpu.matmul %335, %337, %cst_95 {dimension_numbers = #tpu.dot_dimension_numbers<[1], [0], [0], [1], [0, 0, 1, 1], [], []>} : vector<16x64xbf16>, vector<64x64xbf16>, vector<16x64xf32> -> vector<16x64xf32>
    %c0_96 = arith.constant 0 : index
    %c0_97 = arith.constant 0 : index
    %c0_98 = arith.constant 0 : index
    %339 = vector.load %arg6[%c0_96, %c0_97, %c0_98] : memref<1x1x64xf32, #tpu.memory_space<vmem>>, vector<1x1x64xf32>
    %340 = vector.shape_cast %339 : vector<1x1x64xf32> to vector<1x64xf32>
    %341 = vector.broadcast %340 : vector<1x64xf32> to vector<16x64xf32>
    %342 = arith.addf %338, %341 : vector<16x64xf32>
    %343 = arith.addf %3, %342 : vector<16x64xf32>
    %cst_99 = arith.constant dense<0.000000e+00> : vector<16xf32>
    %344 = vector.multi_reduction <add>, %343, %cst_99 [1] : vector<16x64xf32> to vector<16xf32>
    %345 = vector.shape_cast %344 : vector<16xf32> to vector<16x1xf32>
    %cst_100 = arith.constant 6.400000e+01 : f32
    %346 = vector.broadcast %cst_100 : f32 to vector<16x1xf32>
    %347 = arith.divf %345, %346 : vector<16x1xf32>
    %348 = vector.broadcast %347 : vector<16x1xf32> to vector<16x64xf32>
    %349 = arith.subf %343, %348 : vector<16x64xf32>
    %350 = arith.mulf %349, %349 : vector<16x64xf32>
    %cst_101 = arith.constant dense<0.000000e+00> : vector<16xf32>
    %351 = vector.multi_reduction <add>, %350, %cst_101 [1] : vector<16x64xf32> to vector<16xf32>
    %352 = vector.shape_cast %351 : vector<16xf32> to vector<16x1xf32>
    %cst_102 = arith.constant 6.400000e+01 : f32
    %353 = vector.broadcast %cst_102 : f32 to vector<16x1xf32>
    %354 = arith.divf %352, %353 : vector<16x1xf32>
    %355 = vector.broadcast %347 : vector<16x1xf32> to vector<16x64xf32>
    %356 = arith.subf %343, %355 : vector<16x64xf32>
    %cst_103 = arith.constant 9.99999974E-6 : f32
    %357 = vector.broadcast %cst_103 : f32 to vector<16x1xf32>
    %358 = arith.addf %354, %357 : vector<16x1xf32>
    %359 = math.rsqrt %358 : vector<16x1xf32>
    %360 = vector.broadcast %359 : vector<16x1xf32> to vector<16x64xf32>
    %361 = arith.mulf %356, %360 : vector<16x64xf32>
    %c0_104 = arith.constant 0 : index
    %c0_105 = arith.constant 0 : index
    %c0_106 = arith.constant 0 : index
    %362 = vector.load %arg7[%c0_104, %c0_105, %c0_106] : memref<1x1x64xf32, #tpu.memory_space<vmem>>, vector<1x1x64xf32>
    %363 = vector.shape_cast %362 : vector<1x1x64xf32> to vector<1x64xf32>
    %364 = vector.broadcast %363 : vector<1x64xf32> to vector<16x64xf32>
    %365 = arith.mulf %361, %364 : vector<16x64xf32>
    %c0_107 = arith.constant 0 : index
    %c0_108 = arith.constant 0 : index
    %c0_109 = arith.constant 0 : index
    %366 = vector.load %arg8[%c0_107, %c0_108, %c0_109] : memref<1x1x64xf32, #tpu.memory_space<vmem>>, vector<1x1x64xf32>
    %367 = vector.shape_cast %366 : vector<1x1x64xf32> to vector<1x64xf32>
    %368 = vector.broadcast %367 : vector<1x64xf32> to vector<16x64xf32>
    %369 = arith.addf %365, %368 : vector<16x64xf32>
    %370 = arith.truncf %369 : vector<16x64xf32> to vector<16x64xbf16>
    %c0_110 = arith.constant 0 : index
    %c0_111 = arith.constant 0 : index
    %c0_112 = arith.constant 0 : index
    %371 = vector.load %arg9[%c0_110, %c0_111, %c0_112] : memref<1x64x64xbf16, #tpu.memory_space<vmem>>, vector<1x64x64xbf16>
    %372 = vector.shape_cast %371 : vector<1x64x64xbf16> to vector<64x64xbf16>
    %cst_113 = arith.constant dense<0.000000e+00> : vector<16x64xf32>
    %373 = tpu.matmul %370, %372, %cst_113 {dimension_numbers = #tpu.dot_dimension_numbers<[1], [0], [0], [1], [0, 0, 1, 1], [], []>} : vector<16x64xbf16>, vector<64x64xbf16>, vector<16x64xf32> -> vector<16x64xf32>
    %c0_114 = arith.constant 0 : index
    %c0_115 = arith.constant 0 : index
    %c0_116 = arith.constant 0 : index
    %374 = vector.load %arg10[%c0_114, %c0_115, %c0_116] : memref<1x1x64xf32, #tpu.memory_space<vmem>>, vector<1x1x64xf32>
    %375 = vector.shape_cast %374 : vector<1x1x64xf32> to vector<1x64xf32>
    %376 = vector.broadcast %375 : vector<1x64xf32> to vector<16x64xf32>
    %377 = arith.addf %373, %376 : vector<16x64xf32>
    %378 = arith.truncf %4 : vector<16x64xf32> to vector<16x64xbf16>
    %c0_117 = arith.constant 0 : index
    %c0_118 = arith.constant 0 : index
    %c0_119 = arith.constant 0 : index
    %379 = vector.load %arg11[%c0_117, %c0_118, %c0_119] : memref<1x64x128xbf16, #tpu.memory_space<vmem>>, vector<1x64x128xbf16>
    %380 = vector.shape_cast %379 : vector<1x64x128xbf16> to vector<64x128xbf16>
    %cst_120 = arith.constant dense<0.000000e+00> : vector<16x128xf32>
    %381 = tpu.matmul %378, %380, %cst_120 {dimension_numbers = #tpu.dot_dimension_numbers<[1], [0], [0], [1], [0, 0, 1, 1], [], []>} : vector<16x64xbf16>, vector<64x128xbf16>, vector<16x128xf32> -> vector<16x128xf32>
    %c0_121 = arith.constant 0 : index
    %c0_122 = arith.constant 0 : index
    %c0_123 = arith.constant 0 : index
    %382 = vector.load %arg12[%c0_121, %c0_122, %c0_123] : memref<1x1x128xf32, #tpu.memory_space<vmem>>, vector<1x1x128xf32>
    %383 = vector.shape_cast %382 : vector<1x1x128xf32> to vector<1x128xf32>
    %384 = vector.broadcast %383 : vector<1x128xf32> to vector<16x128xf32>
    %385 = arith.addf %381, %384 : vector<16x128xf32>
    %386 = vector.extract_strided_slice %385 {offsets = [0, 0], sizes = [16, 64], strides = [1, 1]} : vector<16x128xf32> to vector<16x64xf32>
    %387 = vector.extract_strided_slice %385 {offsets = [0, 64], sizes = [16, 64], strides = [1, 1]} : vector<16x128xf32> to vector<16x64xf32>
    %388 = vector.extract_strided_slice %377 {offsets = [0, 0], sizes = [8, 64], strides = [1, 1]} : vector<16x64xf32> to vector<8x64xf32>
    %389 = vector.extract_strided_slice %386 {offsets = [0, 0], sizes = [8, 64], strides = [1, 1]} : vector<16x64xf32> to vector<8x64xf32>
    %390 = vector.extract_strided_slice %387 {offsets = [0, 0], sizes = [8, 64], strides = [1, 1]} : vector<16x64xf32> to vector<8x64xf32>
    %391 = vector.extract_strided_slice %388 {offsets = [0, 0], sizes = [8, 8], strides = [1, 1]} : vector<8x64xf32> to vector<8x8xf32>
    %392 = vector.extract_strided_slice %389 {offsets = [0, 0], sizes = [8, 8], strides = [1, 1]} : vector<8x64xf32> to vector<8x8xf32>
    %393 = tpu.transpose %392, [1, 0] : vector<8x8xf32> -> vector<8x8xf32>
    %cst_124 = arith.constant dense<0.000000e+00> : vector<8x8xf32>
    %394 = tpu.matmul %391, %393, %cst_124 {dimension_numbers = #tpu.dot_dimension_numbers<[1], [0], [0], [1], [0, 0, 1, 1], [], []>} : vector<8x8xf32>, vector<8x8xf32>, vector<8x8xf32> -> vector<8x8xf32>
    %cst_125 = arith.constant 0.353553385 : f32
    %395 = vector.broadcast %cst_125 : f32 to vector<8x8xf32>
    %396 = arith.mulf %394, %395 : vector<8x8xf32>
    %cst_126 = arith.constant dense<0xFF800000> : vector<8xf32>
    %397 = vector.multi_reduction <maximumf>, %396, %cst_126 [1] : vector<8x8xf32> to vector<8xf32>
    %398 = vector.shape_cast %397 : vector<8xf32> to vector<8x1xf32>
    %399 = vector.broadcast %398 : vector<8x1xf32> to vector<8x8xf32>
    %400 = arith.subf %396, %399 : vector<8x8xf32>
    %401 = math.exp %400 : vector<8x8xf32>
    %cst_127 = arith.constant dense<0.000000e+00> : vector<8xf32>
    %402 = vector.multi_reduction <add>, %401, %cst_127 [1] : vector<8x8xf32> to vector<8xf32>
    %403 = vector.shape_cast %402 : vector<8xf32> to vector<8x1xf32>
    %404 = tpu.reciprocal %403 {approx = true} : vector<8x1xf32> -> vector<8x1xf32>
    %405 = vector.broadcast %404 : vector<8x1xf32> to vector<8x8xf32>
    %406 = arith.mulf %401, %405 : vector<8x8xf32>
    %407 = vector.extract_strided_slice %390 {offsets = [0, 0], sizes = [8, 8], strides = [1, 1]} : vector<8x64xf32> to vector<8x8xf32>
    %cst_128 = arith.constant dense<0.000000e+00> : vector<8x8xf32>
    %408 = tpu.matmul %406, %407, %cst_128 {dimension_numbers = #tpu.dot_dimension_numbers<[1], [0], [0], [1], [0, 0, 1, 1], [], []>} : vector<8x8xf32>, vector<8x8xf32>, vector<8x8xf32> -> vector<8x8xf32>
    %409 = vector.extract_strided_slice %388 {offsets = [0, 8], sizes = [8, 8], strides = [1, 1]} : vector<8x64xf32> to vector<8x8xf32>
    %410 = vector.extract_strided_slice %389 {offsets = [0, 8], sizes = [8, 8], strides = [1, 1]} : vector<8x64xf32> to vector<8x8xf32>
    %411 = tpu.transpose %410, [1, 0] : vector<8x8xf32> -> vector<8x8xf32>
    %cst_129 = arith.constant dense<0.000000e+00> : vector<8x8xf32>
    %412 = tpu.matmul %409, %411, %cst_129 {dimension_numbers = #tpu.dot_dimension_numbers<[1], [0], [0], [1], [0, 0, 1, 1], [], []>} : vector<8x8xf32>, vector<8x8xf32>, vector<8x8xf32> -> vector<8x8xf32>
    %cst_130 = arith.constant 0.353553385 : f32
    %413 = vector.broadcast %cst_130 : f32 to vector<8x8xf32>
    %414 = arith.mulf %412, %413 : vector<8x8xf32>
    %cst_131 = arith.constant dense<0xFF800000> : vector<8xf32>
    %415 = vector.multi_reduction <maximumf>, %414, %cst_131 [1] : vector<8x8xf32> to vector<8xf32>
    %416 = vector.shape_cast %415 : vector<8xf32> to vector<8x1xf32>
    %417 = vector.broadcast %416 : vector<8x1xf32> to vector<8x8xf32>
    %418 = arith.subf %414, %417 : vector<8x8xf32>
    %419 = math.exp %418 : vector<8x8xf32>
    %cst_132 = arith.constant dense<0.000000e+00> : vector<8xf32>
    %420 = vector.multi_reduction <add>, %419, %cst_132 [1] : vector<8x8xf32> to vector<8xf32>
    %421 = vector.shape_cast %420 : vector<8xf32> to vector<8x1xf32>
    %422 = tpu.reciprocal %421 {approx = true} : vector<8x1xf32> -> vector<8x1xf32>
    %423 = vector.broadcast %422 : vector<8x1xf32> to vector<8x8xf32>
    %424 = arith.mulf %419, %423 : vector<8x8xf32>
    %425 = vector.extract_strided_slice %390 {offsets = [0, 8], sizes = [8, 8], strides = [1, 1]} : vector<8x64xf32> to vector<8x8xf32>
    %cst_133 = arith.constant dense<0.000000e+00> : vector<8x8xf32>
    %426 = tpu.matmul %424, %425, %cst_133 {dimension_numbers = #tpu.dot_dimension_numbers<[1], [0], [0], [1], [0, 0, 1, 1], [], []>} : vector<8x8xf32>, vector<8x8xf32>, vector<8x8xf32> -> vector<8x8xf32>
    %427 = vector.extract_strided_slice %388 {offsets = [0, 16], sizes = [8, 8], strides = [1, 1]} : vector<8x64xf32> to vector<8x8xf32>
    %428 = vector.extract_strided_slice %389 {offsets = [0, 16], sizes = [8, 8], strides = [1, 1]} : vector<8x64xf32> to vector<8x8xf32>
    %429 = tpu.transpose %428, [1, 0] : vector<8x8xf32> -> vector<8x8xf32>
    %cst_134 = arith.constant dense<0.000000e+00> : vector<8x8xf32>
    %430 = tpu.matmul %427, %429, %cst_134 {dimension_numbers = #tpu.dot_dimension_numbers<[1], [0], [0], [1], [0, 0, 1, 1], [], []>} : vector<8x8xf32>, vector<8x8xf32>, vector<8x8xf32> -> vector<8x8xf32>
    %cst_135 = arith.constant 0.353553385 : f32
    %431 = vector.broadcast %cst_135 : f32 to vector<8x8xf32>
    %432 = arith.mulf %430, %431 : vector<8x8xf32>
    %cst_136 = arith.constant dense<0xFF800000> : vector<8xf32>
    %433 = vector.multi_reduction <maximumf>, %432, %cst_136 [1] : vector<8x8xf32> to vector<8xf32>
    %434 = vector.shape_cast %433 : vector<8xf32> to vector<8x1xf32>
    %435 = vector.broadcast %434 : vector<8x1xf32> to vector<8x8xf32>
    %436 = arith.subf %432, %435 : vector<8x8xf32>
    %437 = math.exp %436 : vector<8x8xf32>
    %cst_137 = arith.constant dense<0.000000e+00> : vector<8xf32>
    %438 = vector.multi_reduction <add>, %437, %cst_137 [1] : vector<8x8xf32> to vector<8xf32>
    %439 = vector.shape_cast %438 : vector<8xf32> to vector<8x1xf32>
    %440 = tpu.reciprocal %439 {approx = true} : vector<8x1xf32> -> vector<8x1xf32>
    %441 = vector.broadcast %440 : vector<8x1xf32> to vector<8x8xf32>
    %442 = arith.mulf %437, %441 : vector<8x8xf32>
    %443 = vector.extract_strided_slice %390 {offsets = [0, 16], sizes = [8, 8], strides = [1, 1]} : vector<8x64xf32> to vector<8x8xf32>
    %cst_138 = arith.constant dense<0.000000e+00> : vector<8x8xf32>
    %444 = tpu.matmul %442, %443, %cst_138 {dimension_numbers = #tpu.dot_dimension_numbers<[1], [0], [0], [1], [0, 0, 1, 1], [], []>} : vector<8x8xf32>, vector<8x8xf32>, vector<8x8xf32> -> vector<8x8xf32>
    %445 = vector.extract_strided_slice %388 {offsets = [0, 24], sizes = [8, 8], strides = [1, 1]} : vector<8x64xf32> to vector<8x8xf32>
    %446 = vector.extract_strided_slice %389 {offsets = [0, 24], sizes = [8, 8], strides = [1, 1]} : vector<8x64xf32> to vector<8x8xf32>
    %447 = tpu.transpose %446, [1, 0] : vector<8x8xf32> -> vector<8x8xf32>
    %cst_139 = arith.constant dense<0.000000e+00> : vector<8x8xf32>
    %448 = tpu.matmul %445, %447, %cst_139 {dimension_numbers = #tpu.dot_dimension_numbers<[1], [0], [0], [1], [0, 0, 1, 1], [], []>} : vector<8x8xf32>, vector<8x8xf32>, vector<8x8xf32> -> vector<8x8xf32>
    %cst_140 = arith.constant 0.353553385 : f32
    %449 = vector.broadcast %cst_140 : f32 to vector<8x8xf32>
    %450 = arith.mulf %448, %449 : vector<8x8xf32>
    %cst_141 = arith.constant dense<0xFF800000> : vector<8xf32>
    %451 = vector.multi_reduction <maximumf>, %450, %cst_141 [1] : vector<8x8xf32> to vector<8xf32>
    %452 = vector.shape_cast %451 : vector<8xf32> to vector<8x1xf32>
    %453 = vector.broadcast %452 : vector<8x1xf32> to vector<8x8xf32>
    %454 = arith.subf %450, %453 : vector<8x8xf32>
    %455 = math.exp %454 : vector<8x8xf32>
    %cst_142 = arith.constant dense<0.000000e+00> : vector<8xf32>
    %456 = vector.multi_reduction <add>, %455, %cst_142 [1] : vector<8x8xf32> to vector<8xf32>
    %457 = vector.shape_cast %456 : vector<8xf32> to vector<8x1xf32>
    %458 = tpu.reciprocal %457 {approx = true} : vector<8x1xf32> -> vector<8x1xf32>
    %459 = vector.broadcast %458 : vector<8x1xf32> to vector<8x8xf32>
    %460 = arith.mulf %455, %459 : vector<8x8xf32>
    %461 = vector.extract_strided_slice %390 {offsets = [0, 24], sizes = [8, 8], strides = [1, 1]} : vector<8x64xf32> to vector<8x8xf32>
    %cst_143 = arith.constant dense<0.000000e+00> : vector<8x8xf32>
    %462 = tpu.matmul %460, %461, %cst_143 {dimension_numbers = #tpu.dot_dimension_numbers<[1], [0], [0], [1], [0, 0, 1, 1], [], []>} : vector<8x8xf32>, vector<8x8xf32>, vector<8x8xf32> -> vector<8x8xf32>
    %463 = vector.extract_strided_slice %388 {offsets = [0, 32], sizes = [8, 8], strides = [1, 1]} : vector<8x64xf32> to vector<8x8xf32>
    %464 = vector.extract_strided_slice %389 {offsets = [0, 32], sizes = [8, 8], strides = [1, 1]} : vector<8x64xf32> to vector<8x8xf32>
    %465 = tpu.transpose %464, [1, 0] : vector<8x8xf32> -> vector<8x8xf32>
    %cst_144 = arith.constant dense<0.000000e+00> : vector<8x8xf32>
    %466 = tpu.matmul %463, %465, %cst_144 {dimension_numbers = #tpu.dot_dimension_numbers<[1], [0], [0], [1], [0, 0, 1, 1], [], []>} : vector<8x8xf32>, vector<8x8xf32>, vector<8x8xf32> -> vector<8x8xf32>
    %cst_145 = arith.constant 0.353553385 : f32
    %467 = vector.broadcast %cst_145 : f32 to vector<8x8xf32>
    %468 = arith.mulf %466, %467 : vector<8x8xf32>
    %cst_146 = arith.constant dense<0xFF800000> : vector<8xf32>
    %469 = vector.multi_reduction <maximumf>, %468, %cst_146 [1] : vector<8x8xf32> to vector<8xf32>
    %470 = vector.shape_cast %469 : vector<8xf32> to vector<8x1xf32>
    %471 = vector.broadcast %470 : vector<8x1xf32> to vector<8x8xf32>
    %472 = arith.subf %468, %471 : vector<8x8xf32>
    %473 = math.exp %472 : vector<8x8xf32>
    %cst_147 = arith.constant dense<0.000000e+00> : vector<8xf32>
    %474 = vector.multi_reduction <add>, %473, %cst_147 [1] : vector<8x8xf32> to vector<8xf32>
    %475 = vector.shape_cast %474 : vector<8xf32> to vector<8x1xf32>
    %476 = tpu.reciprocal %475 {approx = true} : vector<8x1xf32> -> vector<8x1xf32>
    %477 = vector.broadcast %476 : vector<8x1xf32> to vector<8x8xf32>
    %478 = arith.mulf %473, %477 : vector<8x8xf32>
    %479 = vector.extract_strided_slice %390 {offsets = [0, 32], sizes = [8, 8], strides = [1, 1]} : vector<8x64xf32> to vector<8x8xf32>
    %cst_148 = arith.constant dense<0.000000e+00> : vector<8x8xf32>
    %480 = tpu.matmul %478, %479, %cst_148 {dimension_numbers = #tpu.dot_dimension_numbers<[1], [0], [0], [1], [0, 0, 1, 1], [], []>} : vector<8x8xf32>, vector<8x8xf32>, vector<8x8xf32> -> vector<8x8xf32>
    %481 = vector.extract_strided_slice %388 {offsets = [0, 40], sizes = [8, 8], strides = [1, 1]} : vector<8x64xf32> to vector<8x8xf32>
    %482 = vector.extract_strided_slice %389 {offsets = [0, 40], sizes = [8, 8], strides = [1, 1]} : vector<8x64xf32> to vector<8x8xf32>
    %483 = tpu.transpose %482, [1, 0] : vector<8x8xf32> -> vector<8x8xf32>
    %cst_149 = arith.constant dense<0.000000e+00> : vector<8x8xf32>
    %484 = tpu.matmul %481, %483, %cst_149 {dimension_numbers = #tpu.dot_dimension_numbers<[1], [0], [0], [1], [0, 0, 1, 1], [], []>} : vector<8x8xf32>, vector<8x8xf32>, vector<8x8xf32> -> vector<8x8xf32>
    %cst_150 = arith.constant 0.353553385 : f32
    %485 = vector.broadcast %cst_150 : f32 to vector<8x8xf32>
    %486 = arith.mulf %484, %485 : vector<8x8xf32>
    %cst_151 = arith.constant dense<0xFF800000> : vector<8xf32>
    %487 = vector.multi_reduction <maximumf>, %486, %cst_151 [1] : vector<8x8xf32> to vector<8xf32>
    %488 = vector.shape_cast %487 : vector<8xf32> to vector<8x1xf32>
    %489 = vector.broadcast %488 : vector<8x1xf32> to vector<8x8xf32>
    %490 = arith.subf %486, %489 : vector<8x8xf32>
    %491 = math.exp %490 : vector<8x8xf32>
    %cst_152 = arith.constant dense<0.000000e+00> : vector<8xf32>
    %492 = vector.multi_reduction <add>, %491, %cst_152 [1] : vector<8x8xf32> to vector<8xf32>
    %493 = vector.shape_cast %492 : vector<8xf32> to vector<8x1xf32>
    %494 = tpu.reciprocal %493 {approx = true} : vector<8x1xf32> -> vector<8x1xf32>
    %495 = vector.broadcast %494 : vector<8x1xf32> to vector<8x8xf32>
    %496 = arith.mulf %491, %495 : vector<8x8xf32>
    %497 = vector.extract_strided_slice %390 {offsets = [0, 40], sizes = [8, 8], strides = [1, 1]} : vector<8x64xf32> to vector<8x8xf32>
    %cst_153 = arith.constant dense<0.000000e+00> : vector<8x8xf32>
    %498 = tpu.matmul %496, %497, %cst_153 {dimension_numbers = #tpu.dot_dimension_numbers<[1], [0], [0], [1], [0, 0, 1, 1], [], []>} : vector<8x8xf32>, vector<8x8xf32>, vector<8x8xf32> -> vector<8x8xf32>
    %499 = vector.extract_strided_slice %388 {offsets = [0, 48], sizes = [8, 8], strides = [1, 1]} : vector<8x64xf32> to vector<8x8xf32>
    %500 = vector.extract_strided_slice %389 {offsets = [0, 48], sizes = [8, 8], strides = [1, 1]} : vector<8x64xf32> to vector<8x8xf32>
    %501 = tpu.transpose %500, [1, 0] : vector<8x8xf32> -> vector<8x8xf32>
    %cst_154 = arith.constant dense<0.000000e+00> : vector<8x8xf32>
    %502 = tpu.matmul %499, %501, %cst_154 {dimension_numbers = #tpu.dot_dimension_numbers<[1], [0], [0], [1], [0, 0, 1, 1], [], []>} : vector<8x8xf32>, vector<8x8xf32>, vector<8x8xf32> -> vector<8x8xf32>
    %cst_155 = arith.constant 0.353553385 : f32
    %503 = vector.broadcast %cst_155 : f32 to vector<8x8xf32>
    %504 = arith.mulf %502, %503 : vector<8x8xf32>
    %cst_156 = arith.constant dense<0xFF800000> : vector<8xf32>
    %505 = vector.multi_reduction <maximumf>, %504, %cst_156 [1] : vector<8x8xf32> to vector<8xf32>
    %506 = vector.shape_cast %505 : vector<8xf32> to vector<8x1xf32>
    %507 = vector.broadcast %506 : vector<8x1xf32> to vector<8x8xf32>
    %508 = arith.subf %504, %507 : vector<8x8xf32>
    %509 = math.exp %508 : vector<8x8xf32>
    %cst_157 = arith.constant dense<0.000000e+00> : vector<8xf32>
    %510 = vector.multi_reduction <add>, %509, %cst_157 [1] : vector<8x8xf32> to vector<8xf32>
    %511 = vector.shape_cast %510 : vector<8xf32> to vector<8x1xf32>
    %512 = tpu.reciprocal %511 {approx = true} : vector<8x1xf32> -> vector<8x1xf32>
    %513 = vector.broadcast %512 : vector<8x1xf32> to vector<8x8xf32>
    %514 = arith.mulf %509, %513 : vector<8x8xf32>
    %515 = vector.extract_strided_slice %390 {offsets = [0, 48], sizes = [8, 8], strides = [1, 1]} : vector<8x64xf32> to vector<8x8xf32>
    %cst_158 = arith.constant dense<0.000000e+00> : vector<8x8xf32>
    %516 = tpu.matmul %514, %515, %cst_158 {dimension_numbers = #tpu.dot_dimension_numbers<[1], [0], [0], [1], [0, 0, 1, 1], [], []>} : vector<8x8xf32>, vector<8x8xf32>, vector<8x8xf32> -> vector<8x8xf32>
    %517 = vector.extract_strided_slice %388 {offsets = [0, 56], sizes = [8, 8], strides = [1, 1]} : vector<8x64xf32> to vector<8x8xf32>
    %518 = vector.extract_strided_slice %389 {offsets = [0, 56], sizes = [8, 8], strides = [1, 1]} : vector<8x64xf32> to vector<8x8xf32>
    %519 = tpu.transpose %518, [1, 0] : vector<8x8xf32> -> vector<8x8xf32>
    %cst_159 = arith.constant dense<0.000000e+00> : vector<8x8xf32>
    %520 = tpu.matmul %517, %519, %cst_159 {dimension_numbers = #tpu.dot_dimension_numbers<[1], [0], [0], [1], [0, 0, 1, 1], [], []>} : vector<8x8xf32>, vector<8x8xf32>, vector<8x8xf32> -> vector<8x8xf32>
    %cst_160 = arith.constant 0.353553385 : f32
    %521 = vector.broadcast %cst_160 : f32 to vector<8x8xf32>
    %522 = arith.mulf %520, %521 : vector<8x8xf32>
    %cst_161 = arith.constant dense<0xFF800000> : vector<8xf32>
    %523 = vector.multi_reduction <maximumf>, %522, %cst_161 [1] : vector<8x8xf32> to vector<8xf32>
    %524 = vector.shape_cast %523 : vector<8xf32> to vector<8x1xf32>
    %525 = vector.broadcast %524 : vector<8x1xf32> to vector<8x8xf32>
    %526 = arith.subf %522, %525 : vector<8x8xf32>
    %527 = math.exp %526 : vector<8x8xf32>
    %cst_162 = arith.constant dense<0.000000e+00> : vector<8xf32>
    %528 = vector.multi_reduction <add>, %527, %cst_162 [1] : vector<8x8xf32> to vector<8xf32>
    %529 = vector.shape_cast %528 : vector<8xf32> to vector<8x1xf32>
    %530 = tpu.reciprocal %529 {approx = true} : vector<8x1xf32> -> vector<8x1xf32>
    %531 = vector.broadcast %530 : vector<8x1xf32> to vector<8x8xf32>
    %532 = arith.mulf %527, %531 : vector<8x8xf32>
    %533 = vector.extract_strided_slice %390 {offsets = [0, 56], sizes = [8, 8], strides = [1, 1]} : vector<8x64xf32> to vector<8x8xf32>
    %cst_163 = arith.constant dense<0.000000e+00> : vector<8x8xf32>
    %534 = tpu.matmul %532, %533, %cst_163 {dimension_numbers = #tpu.dot_dimension_numbers<[1], [0], [0], [1], [0, 0, 1, 1], [], []>} : vector<8x8xf32>, vector<8x8xf32>, vector<8x8xf32> -> vector<8x8xf32>
    %535 = tpu.concatenate %408, %426, %444, %462, %480, %498, %516, %534 in 1 : vector<8x8xf32>, vector<8x8xf32>, vector<8x8xf32>, vector<8x8xf32>, vector<8x8xf32>, vector<8x8xf32>, vector<8x8xf32>, vector<8x8xf32> -> vector<8x64xf32>
    %536 = vector.extract_strided_slice %377 {offsets = [8, 0], sizes = [8, 64], strides = [1, 1]} : vector<16x64xf32> to vector<8x64xf32>
    %537 = vector.extract_strided_slice %386 {offsets = [8, 0], sizes = [8, 64], strides = [1, 1]} : vector<16x64xf32> to vector<8x64xf32>
    %538 = vector.extract_strided_slice %387 {offsets = [8, 0], sizes = [8, 64], strides = [1, 1]} : vector<16x64xf32> to vector<8x64xf32>
    %539 = vector.extract_strided_slice %536 {offsets = [0, 0], sizes = [8, 8], strides = [1, 1]} : vector<8x64xf32> to vector<8x8xf32>
    %540 = vector.extract_strided_slice %537 {offsets = [0, 0], sizes = [8, 8], strides = [1, 1]} : vector<8x64xf32> to vector<8x8xf32>
    %541 = tpu.transpose %540, [1, 0] : vector<8x8xf32> -> vector<8x8xf32>
    %cst_164 = arith.constant dense<0.000000e+00> : vector<8x8xf32>
    %542 = tpu.matmul %539, %541, %cst_164 {dimension_numbers = #tpu.dot_dimension_numbers<[1], [0], [0], [1], [0, 0, 1, 1], [], []>} : vector<8x8xf32>, vector<8x8xf32>, vector<8x8xf32> -> vector<8x8xf32>
    %cst_165 = arith.constant 0.353553385 : f32
    %543 = vector.broadcast %cst_165 : f32 to vector<8x8xf32>
    %544 = arith.mulf %542, %543 : vector<8x8xf32>
    %cst_166 = arith.constant dense<0xFF800000> : vector<8xf32>
    %545 = vector.multi_reduction <maximumf>, %544, %cst_166 [1] : vector<8x8xf32> to vector<8xf32>
    %546 = vector.shape_cast %545 : vector<8xf32> to vector<8x1xf32>
    %547 = vector.broadcast %546 : vector<8x1xf32> to vector<8x8xf32>
    %548 = arith.subf %544, %547 : vector<8x8xf32>
    %549 = math.exp %548 : vector<8x8xf32>
    %cst_167 = arith.constant dense<0.000000e+00> : vector<8xf32>
    %550 = vector.multi_reduction <add>, %549, %cst_167 [1] : vector<8x8xf32> to vector<8xf32>
    %551 = vector.shape_cast %550 : vector<8xf32> to vector<8x1xf32>
    %552 = tpu.reciprocal %551 {approx = true} : vector<8x1xf32> -> vector<8x1xf32>
    %553 = vector.broadcast %552 : vector<8x1xf32> to vector<8x8xf32>
    %554 = arith.mulf %549, %553 : vector<8x8xf32>
    %555 = vector.extract_strided_slice %538 {offsets = [0, 0], sizes = [8, 8], strides = [1, 1]} : vector<8x64xf32> to vector<8x8xf32>
    %cst_168 = arith.constant dense<0.000000e+00> : vector<8x8xf32>
    %556 = tpu.matmul %554, %555, %cst_168 {dimension_numbers = #tpu.dot_dimension_numbers<[1], [0], [0], [1], [0, 0, 1, 1], [], []>} : vector<8x8xf32>, vector<8x8xf32>, vector<8x8xf32> -> vector<8x8xf32>
    %557 = vector.extract_strided_slice %536 {offsets = [0, 8], sizes = [8, 8], strides = [1, 1]} : vector<8x64xf32> to vector<8x8xf32>
    %558 = vector.extract_strided_slice %537 {offsets = [0, 8], sizes = [8, 8], strides = [1, 1]} : vector<8x64xf32> to vector<8x8xf32>
    %559 = tpu.transpose %558, [1, 0] : vector<8x8xf32> -> vector<8x8xf32>
    %cst_169 = arith.constant dense<0.000000e+00> : vector<8x8xf32>
    %560 = tpu.matmul %557, %559, %cst_169 {dimension_numbers = #tpu.dot_dimension_numbers<[1], [0], [0], [1], [0, 0, 1, 1], [], []>} : vector<8x8xf32>, vector<8x8xf32>, vector<8x8xf32> -> vector<8x8xf32>
    %cst_170 = arith.constant 0.353553385 : f32
    %561 = vector.broadcast %cst_170 : f32 to vector<8x8xf32>
    %562 = arith.mulf %560, %561 : vector<8x8xf32>
    %cst_171 = arith.constant dense<0xFF800000> : vector<8xf32>
    %563 = vector.multi_reduction <maximumf>, %562, %cst_171 [1] : vector<8x8xf32> to vector<8xf32>
    %564 = vector.shape_cast %563 : vector<8xf32> to vector<8x1xf32>
    %565 = vector.broadcast %564 : vector<8x1xf32> to vector<8x8xf32>
    %566 = arith.subf %562, %565 : vector<8x8xf32>
    %567 = math.exp %566 : vector<8x8xf32>
    %cst_172 = arith.constant dense<0.000000e+00> : vector<8xf32>
    %568 = vector.multi_reduction <add>, %567, %cst_172 [1] : vector<8x8xf32> to vector<8xf32>
    %569 = vector.shape_cast %568 : vector<8xf32> to vector<8x1xf32>
    %570 = tpu.reciprocal %569 {approx = true} : vector<8x1xf32> -> vector<8x1xf32>
    %571 = vector.broadcast %570 : vector<8x1xf32> to vector<8x8xf32>
    %572 = arith.mulf %567, %571 : vector<8x8xf32>
    %573 = vector.extract_strided_slice %538 {offsets = [0, 8], sizes = [8, 8], strides = [1, 1]} : vector<8x64xf32> to vector<8x8xf32>
    %cst_173 = arith.constant dense<0.000000e+00> : vector<8x8xf32>
    %574 = tpu.matmul %572, %573, %cst_173 {dimension_numbers = #tpu.dot_dimension_numbers<[1], [0], [0], [1], [0, 0, 1, 1], [], []>} : vector<8x8xf32>, vector<8x8xf32>, vector<8x8xf32> -> vector<8x8xf32>
    %575 = vector.extract_strided_slice %536 {offsets = [0, 16], sizes = [8, 8], strides = [1, 1]} : vector<8x64xf32> to vector<8x8xf32>
    %576 = vector.extract_strided_slice %537 {offsets = [0, 16], sizes = [8, 8], strides = [1, 1]} : vector<8x64xf32> to vector<8x8xf32>
    %577 = tpu.transpose %576, [1, 0] : vector<8x8xf32> -> vector<8x8xf32>
    %cst_174 = arith.constant dense<0.000000e+00> : vector<8x8xf32>
    %578 = tpu.matmul %575, %577, %cst_174 {dimension_numbers = #tpu.dot_dimension_numbers<[1], [0], [0], [1], [0, 0, 1, 1], [], []>} : vector<8x8xf32>, vector<8x8xf32>, vector<8x8xf32> -> vector<8x8xf32>
    %cst_175 = arith.constant 0.353553385 : f32
    %579 = vector.broadcast %cst_175 : f32 to vector<8x8xf32>
    %580 = arith.mulf %578, %579 : vector<8x8xf32>
    %cst_176 = arith.constant dense<0xFF800000> : vector<8xf32>
    %581 = vector.multi_reduction <maximumf>, %580, %cst_176 [1] : vector<8x8xf32> to vector<8xf32>
    %582 = vector.shape_cast %581 : vector<8xf32> to vector<8x1xf32>
    %583 = vector.broadcast %582 : vector<8x1xf32> to vector<8x8xf32>
    %584 = arith.subf %580, %583 : vector<8x8xf32>
    %585 = math.exp %584 : vector<8x8xf32>
    %cst_177 = arith.constant dense<0.000000e+00> : vector<8xf32>
    %586 = vector.multi_reduction <add>, %585, %cst_177 [1] : vector<8x8xf32> to vector<8xf32>
    %587 = vector.shape_cast %586 : vector<8xf32> to vector<8x1xf32>
    %588 = tpu.reciprocal %587 {approx = true} : vector<8x1xf32> -> vector<8x1xf32>
    %589 = vector.broadcast %588 : vector<8x1xf32> to vector<8x8xf32>
    %590 = arith.mulf %585, %589 : vector<8x8xf32>
    %591 = vector.extract_strided_slice %538 {offsets = [0, 16], sizes = [8, 8], strides = [1, 1]} : vector<8x64xf32> to vector<8x8xf32>
    %cst_178 = arith.constant dense<0.000000e+00> : vector<8x8xf32>
    %592 = tpu.matmul %590, %591, %cst_178 {dimension_numbers = #tpu.dot_dimension_numbers<[1], [0], [0], [1], [0, 0, 1, 1], [], []>} : vector<8x8xf32>, vector<8x8xf32>, vector<8x8xf32> -> vector<8x8xf32>
    %593 = vector.extract_strided_slice %536 {offsets = [0, 24], sizes = [8, 8], strides = [1, 1]} : vector<8x64xf32> to vector<8x8xf32>
    %594 = vector.extract_strided_slice %537 {offsets = [0, 24], sizes = [8, 8], strides = [1, 1]} : vector<8x64xf32> to vector<8x8xf32>
    %595 = tpu.transpose %594, [1, 0] : vector<8x8xf32> -> vector<8x8xf32>
    %cst_179 = arith.constant dense<0.000000e+00> : vector<8x8xf32>
    %596 = tpu.matmul %593, %595, %cst_179 {dimension_numbers = #tpu.dot_dimension_numbers<[1], [0], [0], [1], [0, 0, 1, 1], [], []>} : vector<8x8xf32>, vector<8x8xf32>, vector<8x8xf32> -> vector<8x8xf32>
    %cst_180 = arith.constant 0.353553385 : f32
    %597 = vector.broadcast %cst_180 : f32 to vector<8x8xf32>
    %598 = arith.mulf %596, %597 : vector<8x8xf32>
    %cst_181 = arith.constant dense<0xFF800000> : vector<8xf32>
    %599 = vector.multi_reduction <maximumf>, %598, %cst_181 [1] : vector<8x8xf32> to vector<8xf32>
    %600 = vector.shape_cast %599 : vector<8xf32> to vector<8x1xf32>
    %601 = vector.broadcast %600 : vector<8x1xf32> to vector<8x8xf32>
    %602 = arith.subf %598, %601 : vector<8x8xf32>
    %603 = math.exp %602 : vector<8x8xf32>
    %cst_182 = arith.constant dense<0.000000e+00> : vector<8xf32>
    %604 = vector.multi_reduction <add>, %603, %cst_182 [1] : vector<8x8xf32> to vector<8xf32>
    %605 = vector.shape_cast %604 : vector<8xf32> to vector<8x1xf32>
    %606 = tpu.reciprocal %605 {approx = true} : vector<8x1xf32> -> vector<8x1xf32>
    %607 = vector.broadcast %606 : vector<8x1xf32> to vector<8x8xf32>
    %608 = arith.mulf %603, %607 : vector<8x8xf32>
    %609 = vector.extract_strided_slice %538 {offsets = [0, 24], sizes = [8, 8], strides = [1, 1]} : vector<8x64xf32> to vector<8x8xf32>
    %cst_183 = arith.constant dense<0.000000e+00> : vector<8x8xf32>
    %610 = tpu.matmul %608, %609, %cst_183 {dimension_numbers = #tpu.dot_dimension_numbers<[1], [0], [0], [1], [0, 0, 1, 1], [], []>} : vector<8x8xf32>, vector<8x8xf32>, vector<8x8xf32> -> vector<8x8xf32>
    %611 = vector.extract_strided_slice %536 {offsets = [0, 32], sizes = [8, 8], strides = [1, 1]} : vector<8x64xf32> to vector<8x8xf32>
    %612 = vector.extract_strided_slice %537 {offsets = [0, 32], sizes = [8, 8], strides = [1, 1]} : vector<8x64xf32> to vector<8x8xf32>
    %613 = tpu.transpose %612, [1, 0] : vector<8x8xf32> -> vector<8x8xf32>
    %cst_184 = arith.constant dense<0.000000e+00> : vector<8x8xf32>
    %614 = tpu.matmul %611, %613, %cst_184 {dimension_numbers = #tpu.dot_dimension_numbers<[1], [0], [0], [1], [0, 0, 1, 1], [], []>} : vector<8x8xf32>, vector<8x8xf32>, vector<8x8xf32> -> vector<8x8xf32>
    %cst_185 = arith.constant 0.353553385 : f32
    %615 = vector.broadcast %cst_185 : f32 to vector<8x8xf32>
    %616 = arith.mulf %614, %615 : vector<8x8xf32>
    %cst_186 = arith.constant dense<0xFF800000> : vector<8xf32>
    %617 = vector.multi_reduction <maximumf>, %616, %cst_186 [1] : vector<8x8xf32> to vector<8xf32>
    %618 = vector.shape_cast %617 : vector<8xf32> to vector<8x1xf32>
    %619 = vector.broadcast %618 : vector<8x1xf32> to vector<8x8xf32>
    %620 = arith.subf %616, %619 : vector<8x8xf32>
    %621 = math.exp %620 : vector<8x8xf32>
    %cst_187 = arith.constant dense<0.000000e+00> : vector<8xf32>
    %622 = vector.multi_reduction <add>, %621, %cst_187 [1] : vector<8x8xf32> to vector<8xf32>
    %623 = vector.shape_cast %622 : vector<8xf32> to vector<8x1xf32>
    %624 = tpu.reciprocal %623 {approx = true} : vector<8x1xf32> -> vector<8x1xf32>
    %625 = vector.broadcast %624 : vector<8x1xf32> to vector<8x8xf32>
    %626 = arith.mulf %621, %625 : vector<8x8xf32>
    %627 = vector.extract_strided_slice %538 {offsets = [0, 32], sizes = [8, 8], strides = [1, 1]} : vector<8x64xf32> to vector<8x8xf32>
    %cst_188 = arith.constant dense<0.000000e+00> : vector<8x8xf32>
    %628 = tpu.matmul %626, %627, %cst_188 {dimension_numbers = #tpu.dot_dimension_numbers<[1], [0], [0], [1], [0, 0, 1, 1], [], []>} : vector<8x8xf32>, vector<8x8xf32>, vector<8x8xf32> -> vector<8x8xf32>
    %629 = vector.extract_strided_slice %536 {offsets = [0, 40], sizes = [8, 8], strides = [1, 1]} : vector<8x64xf32> to vector<8x8xf32>
    %630 = vector.extract_strided_slice %537 {offsets = [0, 40], sizes = [8, 8], strides = [1, 1]} : vector<8x64xf32> to vector<8x8xf32>
    %631 = tpu.transpose %630, [1, 0] : vector<8x8xf32> -> vector<8x8xf32>
    %cst_189 = arith.constant dense<0.000000e+00> : vector<8x8xf32>
    %632 = tpu.matmul %629, %631, %cst_189 {dimension_numbers = #tpu.dot_dimension_numbers<[1], [0], [0], [1], [0, 0, 1, 1], [], []>} : vector<8x8xf32>, vector<8x8xf32>, vector<8x8xf32> -> vector<8x8xf32>
    %cst_190 = arith.constant 0.353553385 : f32
    %633 = vector.broadcast %cst_190 : f32 to vector<8x8xf32>
    %634 = arith.mulf %632, %633 : vector<8x8xf32>
    %cst_191 = arith.constant dense<0xFF800000> : vector<8xf32>
    %635 = vector.multi_reduction <maximumf>, %634, %cst_191 [1] : vector<8x8xf32> to vector<8xf32>
    %636 = vector.shape_cast %635 : vector<8xf32> to vector<8x1xf32>
    %637 = vector.broadcast %636 : vector<8x1xf32> to vector<8x8xf32>
    %638 = arith.subf %634, %637 : vector<8x8xf32>
    %639 = math.exp %638 : vector<8x8xf32>
    %cst_192 = arith.constant dense<0.000000e+00> : vector<8xf32>
    %640 = vector.multi_reduction <add>, %639, %cst_192 [1] : vector<8x8xf32> to vector<8xf32>
    %641 = vector.shape_cast %640 : vector<8xf32> to vector<8x1xf32>
    %642 = tpu.reciprocal %641 {approx = true} : vector<8x1xf32> -> vector<8x1xf32>
    %643 = vector.broadcast %642 : vector<8x1xf32> to vector<8x8xf32>
    %644 = arith.mulf %639, %643 : vector<8x8xf32>
    %645 = vector.extract_strided_slice %538 {offsets = [0, 40], sizes = [8, 8], strides = [1, 1]} : vector<8x64xf32> to vector<8x8xf32>
    %cst_193 = arith.constant dense<0.000000e+00> : vector<8x8xf32>
    %646 = tpu.matmul %644, %645, %cst_193 {dimension_numbers = #tpu.dot_dimension_numbers<[1], [0], [0], [1], [0, 0, 1, 1], [], []>} : vector<8x8xf32>, vector<8x8xf32>, vector<8x8xf32> -> vector<8x8xf32>
    %647 = vector.extract_strided_slice %536 {offsets = [0, 48], sizes = [8, 8], strides = [1, 1]} : vector<8x64xf32> to vector<8x8xf32>
    %648 = vector.extract_strided_slice %537 {offsets = [0, 48], sizes = [8, 8], strides = [1, 1]} : vector<8x64xf32> to vector<8x8xf32>
    %649 = tpu.transpose %648, [1, 0] : vector<8x8xf32> -> vector<8x8xf32>
    %cst_194 = arith.constant dense<0.000000e+00> : vector<8x8xf32>
    %650 = tpu.matmul %647, %649, %cst_194 {dimension_numbers = #tpu.dot_dimension_numbers<[1], [0], [0], [1], [0, 0, 1, 1], [], []>} : vector<8x8xf32>, vector<8x8xf32>, vector<8x8xf32> -> vector<8x8xf32>
    %cst_195 = arith.constant 0.353553385 : f32
    %651 = vector.broadcast %cst_195 : f32 to vector<8x8xf32>
    %652 = arith.mulf %650, %651 : vector<8x8xf32>
    %cst_196 = arith.constant dense<0xFF800000> : vector<8xf32>
    %653 = vector.multi_reduction <maximumf>, %652, %cst_196 [1] : vector<8x8xf32> to vector<8xf32>
    %654 = vector.shape_cast %653 : vector<8xf32> to vector<8x1xf32>
    %655 = vector.broadcast %654 : vector<8x1xf32> to vector<8x8xf32>
    %656 = arith.subf %652, %655 : vector<8x8xf32>
    %657 = math.exp %656 : vector<8x8xf32>
    %cst_197 = arith.constant dense<0.000000e+00> : vector<8xf32>
    %658 = vector.multi_reduction <add>, %657, %cst_197 [1] : vector<8x8xf32> to vector<8xf32>
    %659 = vector.shape_cast %658 : vector<8xf32> to vector<8x1xf32>
    %660 = tpu.reciprocal %659 {approx = true} : vector<8x1xf32> -> vector<8x1xf32>
    %661 = vector.broadcast %660 : vector<8x1xf32> to vector<8x8xf32>
    %662 = arith.mulf %657, %661 : vector<8x8xf32>
    %663 = vector.extract_strided_slice %538 {offsets = [0, 48], sizes = [8, 8], strides = [1, 1]} : vector<8x64xf32> to vector<8x8xf32>
    %cst_198 = arith.constant dense<0.000000e+00> : vector<8x8xf32>
    %664 = tpu.matmul %662, %663, %cst_198 {dimension_numbers = #tpu.dot_dimension_numbers<[1], [0], [0], [1], [0, 0, 1, 1], [], []>} : vector<8x8xf32>, vector<8x8xf32>, vector<8x8xf32> -> vector<8x8xf32>
    %665 = vector.extract_strided_slice %536 {offsets = [0, 56], sizes = [8, 8], strides = [1, 1]} : vector<8x64xf32> to vector<8x8xf32>
    %666 = vector.extract_strided_slice %537 {offsets = [0, 56], sizes = [8, 8], strides = [1, 1]} : vector<8x64xf32> to vector<8x8xf32>
    %667 = tpu.transpose %666, [1, 0] : vector<8x8xf32> -> vector<8x8xf32>
    %cst_199 = arith.constant dense<0.000000e+00> : vector<8x8xf32>
    %668 = tpu.matmul %665, %667, %cst_199 {dimension_numbers = #tpu.dot_dimension_numbers<[1], [0], [0], [1], [0, 0, 1, 1], [], []>} : vector<8x8xf32>, vector<8x8xf32>, vector<8x8xf32> -> vector<8x8xf32>
    %cst_200 = arith.constant 0.353553385 : f32
    %669 = vector.broadcast %cst_200 : f32 to vector<8x8xf32>
    %670 = arith.mulf %668, %669 : vector<8x8xf32>
    %cst_201 = arith.constant dense<0xFF800000> : vector<8xf32>
    %671 = vector.multi_reduction <maximumf>, %670, %cst_201 [1] : vector<8x8xf32> to vector<8xf32>
    %672 = vector.shape_cast %671 : vector<8xf32> to vector<8x1xf32>
    %673 = vector.broadcast %672 : vector<8x1xf32> to vector<8x8xf32>
    %674 = arith.subf %670, %673 : vector<8x8xf32>
    %675 = math.exp %674 : vector<8x8xf32>
    %cst_202 = arith.constant dense<0.000000e+00> : vector<8xf32>
    %676 = vector.multi_reduction <add>, %675, %cst_202 [1] : vector<8x8xf32> to vector<8xf32>
    %677 = vector.shape_cast %676 : vector<8xf32> to vector<8x1xf32>
    %678 = tpu.reciprocal %677 {approx = true} : vector<8x1xf32> -> vector<8x1xf32>
    %679 = vector.broadcast %678 : vector<8x1xf32> to vector<8x8xf32>
    %680 = arith.mulf %675, %679 : vector<8x8xf32>
    %681 = vector.extract_strided_slice %538 {offsets = [0, 56], sizes = [8, 8], strides = [1, 1]} : vector<8x64xf32> to vector<8x8xf32>
    %cst_203 = arith.constant dense<0.000000e+00> : vector<8x8xf32>
    %682 = tpu.matmul %680, %681, %cst_203 {dimension_numbers = #tpu.dot_dimension_numbers<[1], [0], [0], [1], [0, 0, 1, 1], [], []>} : vector<8x8xf32>, vector<8x8xf32>, vector<8x8xf32> -> vector<8x8xf32>
    %683 = tpu.concatenate %556, %574, %592, %610, %628, %646, %664, %682 in 1 : vector<8x8xf32>, vector<8x8xf32>, vector<8x8xf32>, vector<8x8xf32>, vector<8x8xf32>, vector<8x8xf32>, vector<8x8xf32>, vector<8x8xf32> -> vector<8x64xf32>
    %684 = tpu.concatenate %535, %683 in 0 : vector<8x64xf32>, vector<8x64xf32> -> vector<16x64xf32>
    %685 = arith.truncf %684 : vector<16x64xf32> to vector<16x64xbf16>
    %c0_204 = arith.constant 0 : index
    %c0_205 = arith.constant 0 : index
    %c0_206 = arith.constant 0 : index
    %686 = vector.load %arg13[%c0_204, %c0_205, %c0_206] : memref<1x64x64xbf16, #tpu.memory_space<vmem>>, vector<1x64x64xbf16>
    %687 = vector.shape_cast %686 : vector<1x64x64xbf16> to vector<64x64xbf16>
    %cst_207 = arith.constant dense<0.000000e+00> : vector<16x64xf32>
    %688 = tpu.matmul %685, %687, %cst_207 {dimension_numbers = #tpu.dot_dimension_numbers<[1], [0], [0], [1], [0, 0, 1, 1], [], []>} : vector<16x64xbf16>, vector<64x64xbf16>, vector<16x64xf32> -> vector<16x64xf32>
    %c0_208 = arith.constant 0 : index
    %c0_209 = arith.constant 0 : index
    %c0_210 = arith.constant 0 : index
    %689 = vector.load %arg14[%c0_208, %c0_209, %c0_210] : memref<1x1x64xf32, #tpu.memory_space<vmem>>, vector<1x1x64xf32>
    %690 = vector.shape_cast %689 : vector<1x1x64xf32> to vector<1x64xf32>
    %691 = vector.broadcast %690 : vector<1x64xf32> to vector<16x64xf32>
    %692 = arith.addf %688, %691 : vector<16x64xf32>
    %693 = arith.addf %369, %692 : vector<16x64xf32>
    %cst_211 = arith.constant dense<0.000000e+00> : vector<16xf32>
    %694 = vector.multi_reduction <add>, %693, %cst_211 [1] : vector<16x64xf32> to vector<16xf32>
    %695 = vector.shape_cast %694 : vector<16xf32> to vector<16x1xf32>
    %cst_212 = arith.constant 6.400000e+01 : f32
    %696 = vector.broadcast %cst_212 : f32 to vector<16x1xf32>
    %697 = arith.divf %695, %696 : vector<16x1xf32>
    %698 = vector.broadcast %697 : vector<16x1xf32> to vector<16x64xf32>
    %699 = arith.subf %693, %698 : vector<16x64xf32>
    %700 = arith.mulf %699, %699 : vector<16x64xf32>
    %cst_213 = arith.constant dense<0.000000e+00> : vector<16xf32>
    %701 = vector.multi_reduction <add>, %700, %cst_213 [1] : vector<16x64xf32> to vector<16xf32>
    %702 = vector.shape_cast %701 : vector<16xf32> to vector<16x1xf32>
    %cst_214 = arith.constant 6.400000e+01 : f32
    %703 = vector.broadcast %cst_214 : f32 to vector<16x1xf32>
    %704 = arith.divf %702, %703 : vector<16x1xf32>
    %705 = vector.broadcast %697 : vector<16x1xf32> to vector<16x64xf32>
    %706 = arith.subf %693, %705 : vector<16x64xf32>
    %cst_215 = arith.constant 9.99999974E-6 : f32
    %707 = vector.broadcast %cst_215 : f32 to vector<16x1xf32>
    %708 = arith.addf %704, %707 : vector<16x1xf32>
    %709 = math.rsqrt %708 : vector<16x1xf32>
    %710 = vector.broadcast %709 : vector<16x1xf32> to vector<16x64xf32>
    %711 = arith.mulf %706, %710 : vector<16x64xf32>
    %c0_216 = arith.constant 0 : index
    %c0_217 = arith.constant 0 : index
    %c0_218 = arith.constant 0 : index
    %712 = vector.load %arg15[%c0_216, %c0_217, %c0_218] : memref<1x1x64xf32, #tpu.memory_space<vmem>>, vector<1x1x64xf32>
    %713 = vector.shape_cast %712 : vector<1x1x64xf32> to vector<1x64xf32>
    %714 = vector.broadcast %713 : vector<1x64xf32> to vector<16x64xf32>
    %715 = arith.mulf %711, %714 : vector<16x64xf32>
    %c0_219 = arith.constant 0 : index
    %c0_220 = arith.constant 0 : index
    %c0_221 = arith.constant 0 : index
    %716 = vector.load %arg16[%c0_219, %c0_220, %c0_221] : memref<1x1x64xf32, #tpu.memory_space<vmem>>, vector<1x1x64xf32>
    %717 = vector.shape_cast %716 : vector<1x1x64xf32> to vector<1x64xf32>
    %718 = vector.broadcast %717 : vector<1x64xf32> to vector<16x64xf32>
    %719 = arith.addf %715, %718 : vector<16x64xf32>
    %720 = arith.truncf %719 : vector<16x64xf32> to vector<16x64xbf16>
    %c0_222 = arith.constant 0 : index
    %c0_223 = arith.constant 0 : index
    %c0_224 = arith.constant 0 : index
    %721 = vector.load %arg17[%c0_222, %c0_223, %c0_224] : memref<1x64x2048xbf16, #tpu.memory_space<vmem>>, vector<1x64x2048xbf16>
    %722 = vector.shape_cast %721 : vector<1x64x2048xbf16> to vector<64x2048xbf16>
    %cst_225 = arith.constant dense<0.000000e+00> : vector<16x2048xf32>
    %723 = tpu.matmul %720, %722, %cst_225 {dimension_numbers = #tpu.dot_dimension_numbers<[1], [0], [0], [1], [0, 0, 1, 1], [], []>} : vector<16x64xbf16>, vector<64x2048xbf16>, vector<16x2048xf32> -> vector<16x2048xf32>
    %c0_226 = arith.constant 0 : index
    %c0_227 = arith.constant 0 : index
    %c0_228 = arith.constant 0 : index
    %724 = vector.load %arg18[%c0_226, %c0_227, %c0_228] : memref<1x1x2048xf32, #tpu.memory_space<vmem>>, vector<1x1x2048xf32>
    %725 = vector.shape_cast %724 : vector<1x1x2048xf32> to vector<1x2048xf32>
    %726 = vector.broadcast %725 : vector<1x2048xf32> to vector<16x2048xf32>
    %727 = arith.addf %723, %726 : vector<16x2048xf32>
    %cst_229 = arith.constant 0.000000e+00 : f32
    %728 = vector.broadcast %cst_229 : f32 to vector<16x2048xf32>
    %729 = arith.maximumf %727, %728 : vector<16x2048xf32>
    %730 = arith.truncf %729 : vector<16x2048xf32> to vector<16x2048xbf16>
    %c0_230 = arith.constant 0 : index
    %c0_231 = arith.constant 0 : index
    %c0_232 = arith.constant 0 : index
    %731 = vector.load %arg19[%c0_230, %c0_231, %c0_232] : memref<1x2048x64xbf16, #tpu.memory_space<vmem>>, vector<1x2048x64xbf16>
    %732 = vector.shape_cast %731 : vector<1x2048x64xbf16> to vector<2048x64xbf16>
    %cst_233 = arith.constant dense<0.000000e+00> : vector<16x64xf32>
    %733 = tpu.matmul %730, %732, %cst_233 {dimension_numbers = #tpu.dot_dimension_numbers<[1], [0], [0], [1], [0, 0, 1, 1], [], []>} : vector<16x2048xbf16>, vector<2048x64xbf16>, vector<16x64xf32> -> vector<16x64xf32>
    %c0_234 = arith.constant 0 : index
    %c0_235 = arith.constant 0 : index
    %c0_236 = arith.constant 0 : index
    %734 = vector.load %arg20[%c0_234, %c0_235, %c0_236] : memref<1x1x64xf32, #tpu.memory_space<vmem>>, vector<1x1x64xf32>
    %735 = vector.shape_cast %734 : vector<1x1x64xf32> to vector<1x64xf32>
    %736 = vector.broadcast %735 : vector<1x64xf32> to vector<16x64xf32>
    %737 = arith.addf %733, %736 : vector<16x64xf32>
    %738 = arith.addf %719, %737 : vector<16x64xf32>
    %cst_237 = arith.constant dense<0.000000e+00> : vector<16xf32>
    %739 = vector.multi_reduction <add>, %738, %cst_237 [1] : vector<16x64xf32> to vector<16xf32>
    %740 = vector.shape_cast %739 : vector<16xf32> to vector<16x1xf32>
    %cst_238 = arith.constant 6.400000e+01 : f32
    %741 = vector.broadcast %cst_238 : f32 to vector<16x1xf32>
    %742 = arith.divf %740, %741 : vector<16x1xf32>
    %743 = vector.broadcast %742 : vector<16x1xf32> to vector<16x64xf32>
    %744 = arith.subf %738, %743 : vector<16x64xf32>
    %745 = arith.mulf %744, %744 : vector<16x64xf32>
    %cst_239 = arith.constant dense<0.000000e+00> : vector<16xf32>
    %746 = vector.multi_reduction <add>, %745, %cst_239 [1] : vector<16x64xf32> to vector<16xf32>
    %747 = vector.shape_cast %746 : vector<16xf32> to vector<16x1xf32>
    %cst_240 = arith.constant 6.400000e+01 : f32
    %748 = vector.broadcast %cst_240 : f32 to vector<16x1xf32>
    %749 = arith.divf %747, %748 : vector<16x1xf32>
    %750 = vector.broadcast %742 : vector<16x1xf32> to vector<16x64xf32>
    %751 = arith.subf %738, %750 : vector<16x64xf32>
    %cst_241 = arith.constant 9.99999974E-6 : f32
    %752 = vector.broadcast %cst_241 : f32 to vector<16x1xf32>
    %753 = arith.addf %749, %752 : vector<16x1xf32>
    %754 = math.rsqrt %753 : vector<16x1xf32>
    %755 = vector.broadcast %754 : vector<16x1xf32> to vector<16x64xf32>
    %756 = arith.mulf %751, %755 : vector<16x64xf32>
    %c0_242 = arith.constant 0 : index
    %c0_243 = arith.constant 0 : index
    %c0_244 = arith.constant 0 : index
    %757 = vector.load %arg21[%c0_242, %c0_243, %c0_244] : memref<1x1x64xf32, #tpu.memory_space<vmem>>, vector<1x1x64xf32>
    %758 = vector.shape_cast %757 : vector<1x1x64xf32> to vector<1x64xf32>
    %759 = vector.broadcast %758 : vector<1x64xf32> to vector<16x64xf32>
    %760 = arith.mulf %756, %759 : vector<16x64xf32>
    %c0_245 = arith.constant 0 : index
    %c0_246 = arith.constant 0 : index
    %c0_247 = arith.constant 0 : index
    %761 = vector.load %arg22[%c0_245, %c0_246, %c0_247] : memref<1x1x64xf32, #tpu.memory_space<vmem>>, vector<1x1x64xf32>
    %762 = vector.shape_cast %761 : vector<1x1x64xf32> to vector<1x64xf32>
    %763 = vector.broadcast %762 : vector<1x64xf32> to vector<16x64xf32>
    %764 = arith.addf %760, %763 : vector<16x64xf32>
    %c0_248 = arith.constant 0 : index
    %c0_249 = arith.constant 0 : index
    %765 = vector.load %arg24[%c0_248, %c0_249] : memref<16x64xf32, #tpu.memory_space<vmem>>, vector<16x64xf32>
    tpu.vector_store %arg24[%c0_248, %c0_249], %764 {strides = array<i32>} : memref<16x64xf32, #tpu.memory_space<vmem>>, vector<16x64xf32>,
    %c1_i32 = arith.constant 1 : i32
    %766 = arith.cmpi eq, %arg0, %c1_i32 : i32
    %767 = arith.extui %766 : i1 to i32
    %c0_i32_250 = arith.constant 0 : i32
    %768 = arith.cmpi ne, %767, %c0_i32_250 : i32
    scf.if %768 {
      %c0_251 = arith.constant 0 : index
      %c0_252 = arith.constant 0 : index
      %769 = vector.load %arg23[%c0_251, %c0_252] : memref<16x64xf32, #tpu.memory_space<vmem>>, vector<16x64xf32>
      tpu.vector_store %arg23[%c0_251, %c0_252], %764 {strides = array<i32>} : memref<16x64xf32, #tpu.memory_space<vmem>>, vector<16x64xf32>,
    } else {
    }
    return
  }
  func.func @transform_0(%arg0: i32) -> (i32, i32) {
    %c0_i32 = arith.constant 0 : i32
    %c0_i32_0 = arith.constant 0 : i32
    %c0_i32_1 = arith.constant 0 : i32
    return %c0_i32, %c0_i32_0 : i32, i32
  }
  func.func @transform_1(%arg0: i32) -> (i32, i32) {
    %c0_i32 = arith.constant 0 : i32
    %c0_i32_0 = arith.constant 0 : i32
    %c0_i32_1 = arith.constant 0 : i32
    return %c0_i32, %c0_i32_0 : i32, i32
  }
  func.func @transform_2(%arg0: i32) -> (i32, i32, i32) {
    %c0_i32 = arith.constant 0 : i32
    %c0_i32_0 = arith.constant 0 : i32
    %c0_i32_1 = arith.constant 0 : i32
    return %arg0, %c0_i32, %c0_i32_0 : i32, i32, i32
  }
  func.func @transform_3(%arg0: i32) -> (i32, i32, i32) {
    %c0_i32 = arith.constant 0 : i32
    %c0_i32_0 = arith.constant 0 : i32
    %c0_i32_1 = arith.constant 0 : i32
    return %arg0, %c0_i32, %c0_i32_0 : i32, i32, i32
  }
  func.func @transform_4(%arg0: i32) -> (i32, i32, i32) {
    %c0_i32 = arith.constant 0 : i32
    %c0_i32_0 = arith.constant 0 : i32
    %c0_i32_1 = arith.constant 0 : i32
    return %arg0, %c0_i32, %c0_i32_0 : i32, i32, i32
  }
  func.func @transform_5(%arg0: i32) -> (i32, i32, i32) {
    %c0_i32 = arith.constant 0 : i32
    %c0_i32_0 = arith.constant 0 : i32
    %c0_i32_1 = arith.constant 0 : i32
    return %arg0, %c0_i32, %c0_i32_0 : i32, i32, i32
  }
  func.func @transform_6(%arg0: i32) -> (i32, i32, i32) {
    %c0_i32 = arith.constant 0 : i32
    %c0_i32_0 = arith.constant 0 : i32
    %c0_i32_1 = arith.constant 0 : i32
    return %arg0, %c0_i32, %c0_i32_0 : i32, i32, i32
  }
  func.func @transform_7(%arg0: i32) -> (i32, i32, i32) {
    %c0_i32 = arith.constant 0 : i32
    %c0_i32_0 = arith.constant 0 : i32
    %c0_i32_1 = arith.constant 0 : i32
    return %arg0, %c0_i32, %c0_i32_0 : i32, i32, i32
  }
  func.func @transform_8(%arg0: i32) -> (i32, i32, i32) {
    %c0_i32 = arith.constant 0 : i32
    %c0_i32_0 = arith.constant 0 : i32
    %c0_i32_1 = arith.constant 0 : i32
    return %arg0, %c0_i32, %c0_i32_0 : i32, i32, i32
  }
  func.func @transform_9(%arg0: i32) -> (i32, i32, i32) {
    %c0_i32 = arith.constant 0 : i32
    %c0_i32_0 = arith.constant 0 : i32
    %c0_i32_1 = arith.constant 0 : i32
    return %arg0, %c0_i32, %c0_i32_0 : i32, i32, i32
  }
  func.func @transform_10(%arg0: i32) -> (i32, i32, i32) {
    %c0_i32 = arith.constant 0 : i32
    %c0_i32_0 = arith.constant 0 : i32
    %c0_i32_1 = arith.constant 0 : i32
    return %arg0, %c0_i32, %c0_i32_0 : i32, i32, i32
  }
  func.func @transform_11(%arg0: i32) -> (i32, i32, i32) {
    %c0_i32 = arith.constant 0 : i32
    %c0_i32_0 = arith.constant 0 : i32
    %c0_i32_1 = arith.constant 0 : i32
    return %arg0, %c0_i32, %c0_i32_0 : i32, i32, i32
  }
  func.func @transform_12(%arg0: i32) -> (i32, i32, i32) {
    %c0_i32 = arith.constant 0 : i32
    %c0_i32_0 = arith.constant 0 : i32
    %c0_i32_1 = arith.constant 0 : i32
    return %arg0, %c0_i32, %c0_i32_0 : i32, i32, i32
  }
  func.func @transform_13(%arg0: i32) -> (i32, i32, i32) {
    %c0_i32 = arith.constant 0 : i32
    %c0_i32_0 = arith.constant 0 : i32
    %c0_i32_1 = arith.constant 0 : i32
    return %arg0, %c0_i32, %c0_i32_0 : i32, i32, i32
  }
  func.func @transform_14(%arg0: i32) -> (i32, i32, i32) {
    %c0_i32 = arith.constant 0 : i32
    %c0_i32_0 = arith.constant 0 : i32
    %c0_i32_1 = arith.constant 0 : i32
    return %arg0, %c0_i32, %c0_i32_0 : i32, i32, i32
  }
  func.func @transform_15(%arg0: i32) -> (i32, i32, i32) {
    %c0_i32 = arith.constant 0 : i32
    %c0_i32_0 = arith.constant 0 : i32
    %c0_i32_1 = arith.constant 0 : i32
    return %arg0, %c0_i32, %c0_i32_0 : i32, i32, i32
  }
  func.func @transform_16(%arg0: i32) -> (i32, i32, i32) {
    %c0_i32 = arith.constant 0 : i32
    %c0_i32_0 = arith.constant 0 : i32
    %c0_i32_1 = arith.constant 0 : i32
    return %arg0, %c0_i32, %c0_i32_0 : i32, i32, i32
  }
  func.func @transform_17(%arg0: i32) -> (i32, i32, i32) {
    %c0_i32 = arith.constant 0 : i32
    %c0_i32_0 = arith.constant 0 : i32
    %c0_i32_1 = arith.constant 0 : i32
    return %arg0, %c0_i32, %c0_i32_0 : i32, i32, i32
  }
  func.func @transform_18(%arg0: i32) -> (i32, i32, i32) {
    %c0_i32 = arith.constant 0 : i32
    %c0_i32_0 = arith.constant 0 : i32
    %c0_i32_1 = arith.constant 0 : i32
    return %arg0, %c0_i32, %c0_i32_0 : i32, i32, i32
  }
  func.func @transform_19(%arg0: i32) -> (i32, i32, i32) {
    %c0_i32 = arith.constant 0 : i32
    %c0_i32_0 = arith.constant 0 : i32
    %c0_i32_1 = arith.constant 0 : i32
    return %arg0, %c0_i32, %c0_i32_0 : i32, i32, i32
  }
  func.func @transform_20(%arg0: i32) -> (i32, i32, i32) {
    %c0_i32 = arith.constant 0 : i32
    %c0_i32_0 = arith.constant 0 : i32
    %c0_i32_1 = arith.constant 0 : i32
    return %arg0, %c0_i32, %c0_i32_0 : i32, i32, i32
  }
  func.func @transform_21(%arg0: i32) -> (i32, i32, i32) {
    %c0_i32 = arith.constant 0 : i32
    %c0_i32_0 = arith.constant 0 : i32
    %c0_i32_1 = arith.constant 0 : i32
    return %arg0, %c0_i32, %c0_i32_0 : i32, i32, i32
  }
  func.func @transform_22(%arg0: i32) -> (i32, i32) {
    %c0_i32 = arith.constant 0 : i32
    %c0_i32_0 = arith.constant 0 : i32
    %c0_i32_1 = arith.constant 0 : i32
    return %c0_i32, %c0_i32_0 : i32, i32
  }
}

</mosaic_0001>

<bundles_post_ra>
// kernel: decoder_forward.1
= control target key start
LH: loop header
LB: loop body
LE: loop exit
PB: predicated region body
PF: predicated region fallthrough
CT: control target
= control target key end

     0   :  { %s12620_s0 = inlined_call_operand.vmem [shape: f32[16,64], index: 0, kind: input, shape index: {}]   ;;  %s12621_s1 = inlined_call_operand.vmem [shape: f32[16,64], index: 1, kind: input, shape index: {}]   ;;  %s12622_s2 = inlined_call_operand.vmem [shape: bf16[2,64,192], index: 2, kind: input, shape index: {}]   ;;  %s12623_s3 = inlined_call_operand.vmem [shape: f32[2,1,192], index: 3, kind: input, shape index: {}]   ;;  %s12624_s4 = inlined_call_operand.vmem [shape: bf16[2,64,64], index: 4, kind: input, shape index: {}]   ;;  %s12625_s5 = inlined_call_operand.vmem [shape: f32[2,1,64], index: 5, kind: input, shape index: {}]   ;;  %s12626_s6 = inlined_call_operand.vmem [shape: f32[2,1,64], index: 6, kind: input, shape index: {}]   ;;  %s12627_s7 = inlined_call_operand.vmem [shape: f32[2,1,64], index: 7, kind: input, shape index: {}]   ;;  %s12628_s8 = inlined_call_operand.vmem [shape: bf16[2,64,64], index: 8, kind: input, shape index: {}]   ;;  %s12629_s9 = inlined_call_operand.vmem [shape: f32[2,1,64], index: 9, kind: input, shape index: {}]   ;;  %s12630_s10 = inlined_call_operand.vmem [shape: bf16[2,64,128], index: 10, kind: input, shape index: {}]   ;;  %s12631_s11 = inlined_call_operand.vmem [shape: f32[2,1,128], index: 11, kind: input, shape index: {}]   ;;  %s12632_s12 = inlined_call_operand.vmem [shape: bf16[2,64,64], index: 12, kind: input, shape index: {}]   ;;  %s12633_s13 = inlined_call_operand.vmem [shape: f32[2,1,64], index: 13, kind: input, shape index: {}]   ;;  %s12634_s14 = inlined_call_operand.vmem [shape: f32[2,1,64], index: 14, kind: input, shape index: {}]   ;;  %s12635_s15 = inlined_call_operand.vmem [shape: f32[2,1,64], index: 15, kind: input, shape index: {}]   ;;  %s12636_s16 = inlined_call_operand.vmem [shape: bf16[2,64,2048], index: 16, kind: input, shape index: {}]   ;;  %s12637_s17 = inlined_call_operand.vmem [shape: f32[2,1,2048], index: 17, kind: input, shape index: {}]   ;;  %s12638_s18 = inlined_call_operand.vmem [shape: bf16[2,2048,64], index: 18, kind: input, shape index: {}]   ;;  %s12639_s19 = inlined_call_operand.vmem [shape: f32[2,1,64], index: 19, kind: input, shape index: {}]   ;;  %s12640_s20 = inlined_call_operand.vmem [shape: f32[2,1,64], index: 20, kind: input, shape index: {}]   ;;  %s12641_s21 = inlined_call_operand.vmem [shape: f32[2,1,64], index: 21, kind: input, shape index: {}]   ;;  %s12642_s22 = inlined_call_operand.hbm [shape: f32[16,64], index: 22, kind: output, shape index: {}]  }
   0x1   :  { %12653 = sst [smem:[#allocation10_spill]] %s12620_s0 }
   0x2   :  { %12654 = sst [smem:[#allocation11_spill]] %s12621_s1 }
   0x3   :  { %12655 = sst [smem:[#allocation12_spill]] %s12622_s2 }
   0x4   :  { %12656 = sst [smem:[#allocation13_spill]] %s12623_s3 }
   0x5   :  { %12657 = sst [smem:[#allocation14_spill]] %s12624_s4 }
   0x6   :  { %12658 = sst [smem:[#allocation15_spill]] %s12625_s5 }
   0x7   :  { %12659 = sst [smem:[#allocation16_spill]] %s12626_s6 }
   0x8   :  { %12660 = sst [smem:[#allocation17_spill]] %s12628_s8 }
   0x9   :  { %12661 = sst [smem:[#allocation18_spill]] %s12630_s10 }
   0xa   :  { %12662 = sst [smem:[#allocation19_spill]] %s12632_s12 }
   0xb   :  { %12663 = sst [smem:[#allocation20_spill]] %s12634_s14 }
   0xc   :  { %12664 = sst [smem:[#allocation21_spill]] %s12635_s15 }
   0xd   :  { %12665 = sst [smem:[#allocation22_spill]] %s12636_s16 }
   0xe   :  { %12666 = sst [smem:[#allocation23_spill]] %s12637_s17 }
   0xf   :  { %12667 = sst [smem:[#allocation24_spill]] %s12638_s18 }
  0x10   :  { %12668 = sst [smem:[#allocation25_spill]] %s12639_s19 }
  0x11   :  { %12669 = sst [smem:[#allocation26_spill]] %s12640_s20 }
  0x12   :  { %12670 = sst [smem:[#allocation27_spill]] %s12641_s21 }
  0x13   :  { %12671 = sst [smem:[#allocation28_spill]] %s12642_s22 }
  0x14   :  { %27 = vsyncpa [#allocation4], 0  ;;  %s11156_s3 = smov 0  }
  0x15 LB: > { %12672 = sst [smem:[#allocation6_spill]] %s11019_s3  ;;  %s11162_s28 = sadd.s32 4294967295, %s11019_s3   ;;  %s11019_s3 = sphi %s11156_s3, %s33_s3  }
  0x16   : > { %12673 = sst [smem:[#allocation7_spill]] %s11162_s28  ;;  %p9523_p0 = scmp.ge.s32.totalorder %s11019_s3, 1 }
  0x17   : > { %p774_p1 = scmp.lt.s32.totalorder %s11019_s3, 3 }
  0x19   : > { %p775_p2 = pnand %p9523_p0, %p774_p1 }
  0x1b   : > { %778 = sbr.rel (%p775_p2) target bundleno = 6313 (0x18a9), region = 108 }
  0x22   : > { %p902_p3 = scmp.lt.s32.totalorder %s11162_s28, 1  ;;  %s12674_s1 = sld [smem:[#allocation12_spill]] }
  0x23   : > { %s12676_s25 = sld [smem:[#allocation13_spill]]  ;;  %s12678_s19 = sld [smem:[#allocation14_spill]] }
  0x24   : > { %s11168_s29 = scalar_select %p902_p3, %s11162_s28, 1 }
  0x25   : > { %s12680_s8 = sld [smem:[#allocation17_spill]]  ;;  %s12681_s10 = sld [smem:[#allocation18_spill]] }
  0x26   : > { %s9882_s30 = sshll.u32 %s11168_s29, 6  ;;  %s9526_s4 = sshll.u32 %s11168_s29, 1 }
  0x27   : > { %s9883_s2 = sshll.u32 %s11168_s29, 5  ;;  %s12682_s12 = sld [smem:[#allocation19_spill]] }
  0x28   : > { %s11175_s5 = scalar_lea.vmem %s12674_s1, %s9882_s30  ;;  %s12685_s16 = sld [smem:[#allocation22_spill]] }
  0x29   : > { %12675 = sst [smem:[#allocation8_spill]] %s11175_s5  ;;  %s11180_s26 = scalar_lea.vmem %s12676_s25, %s9526_s4 }
  0x2a   : > { %s11190_s18 = scalar_lea.vmem %s12678_s19, %s9883_s2  ;;  %s12687_s17 = sld [smem:[#allocation23_spill]] }
  0x2b   : > { %s11203_s22 = scalar_lea.vmem %s12680_s8, %s9883_s2  ;;  %s11212_s0 = scalar_lea.vmem %s12681_s10, %s9883_s2 }
  0x2c   : > { %s9887_s10 = sshll.u32 %s11168_s29, 9  ;;  %s9888_s25 = sshll.u32 %s11168_s29, 10 }
  0x2d   : > { %s11221_s6 = scalar_lea.vmem %s12682_s12, %s9883_s2  ;;  %s9537_s2 = sshll.u32 %s11168_s29, 4 }
  0x2e   : > { %s11239_s23 = scalar_lea.vmem %s12685_s16, %s9887_s10  ;;  %s12688_s20 = sld [smem:[#allocation24_spill]] }
  0x2f   : > { %12686 = sst [smem:[#allocation9_spill]] %s11239_s23 }
  0x30   : > { %s11245_s1 = scalar_lea.vmem %s12687_s17, %s9537_s2  ;;  %s12692_s2 = sld [smem:[#allocation7_spill]] }
  0x34   : > { %s11251_s28 = scalar_lea.vmem %s12688_s20, %s9888_s25 }
  0x36   : > { %p9540_p4 = scmp.ne.s32.totalorder %s12692_s2, 0 }
  0x37   : > { %s12693_s3 = sld [smem:[#allocation10_spill]] (!%p9540_p4)  ;;  %vm985_vm0 = vcmask (!%p9540_p4), 523264  }
  0x38   : > { %982 = sbr.rel (%p9540_p4) target bundleno = 64 (0x40), region = 112 }
  0x3d   : > { %s12694_s19 = smov (!%p9540_p4), %s12693_s3  ;;  %v983_v0 = vld [vmem:[%s12693_s3] sm:$0xff] (!%p9540_p4) }
  0x3e   : > { %v984_v1 = vld [vmem:[%s12694_s19 + $0x8] sm:$0xff] (!%p9540_p4)  ;;  %986 = vst.msk [vmem:[#allocation2] sm:$0xff] (!%p9540_p4), %vm985_vm0, %v983_v0 }
  0x3f   : > { %987 = vst.msk [vmem:[#allocation2 + $0x8] sm:$0xff] %vm985_vm0, %v984_v1 }
  0x40 PF: > { %s12695_s8 = sld [smem:[#allocation8_spill]]  ;;  %v11021_v4 = vmov 0   ;;  %v11022_v6 = vmov 0.0   ;;  %vm1059_vm1 = vcmask 523264   ;;  %v992_v15 = vlaneseq  ;;  %v1007_v18 = vld [vmem:[%s11180_s26] sm:$0x3] }
  0x41   : > { %1095 = vmatprep.mubr.bf16.mxu0 %v11021_v4  ;;  %10218 = vmatprep.subr.mxu1 %v11022_v6  ;;  %vm11023_vm2 = vmmov 0   ;;  %s11024_s14 = smov 56   ;;  %s11025_s15 = smov 64   ;;  %vm1109_vm3 = vcmask 64512   ;;  %vm2469_vm5 = vcmask 130048   ;;  %vm2471_vm6 = vcmask 195584  }
  0x42   : > { %v11284_v16 = vshrl.u32 %v992_v15, 7  ;;  %10220 = vmatprep.mubr.msk.f32.mxu1 %vm11023_vm2, %v11022_v6  ;;  %v995_v31 = vand.u32 127, %v992_v15  ;;  %s11026_s16 = smov 120   ;;  %s11027_s17 = smov 48   ;;  %vm2473_vm7 = vcmask 261120   ;;  %vm2475_vm8 = vcmask 326656  }
  0x43   : > { %s11028_s26 = smov 40   ;;  %s11029_s23 = smov 112   ;;  %vm2477_vm9 = vcmask 392192   ;;  %vm2479_vm10 = vcmask 457728  }
  0x44   : > { %v11291_v17 = vsub.s32 0, %v11284_v16  ;;  %v11295_v19 = vsub.s32 1, %v11284_v16  ;;  %vm996_vm4 = vcmp.gt.s32.totalorder %v995_v31, %v11284_v16  ;;  %s11030_s21 = smov 24   ;;  %s12651_s27 = smov 16  }
  0x45   : > { %v11321_v32 = vsel %vm996_vm4, -1e+30, %v11022_v6  ;;  %s11032_s30 = smov 8   ;;  %s11033_s10 = smov 104  }
  0x46   : > { %v10685_v2 = vld [vmem:[%s12695_s8 + $0x4] ss:$8 sps:$4 sm:$0xff]   ;;  %v10687_v3 = vld [vmem:[%s12695_s8] ss:$8 sps:$4 sm:$0xff]   ;;  %v10688_v5 = vld [vmem:[%s12695_s8 + $0x14] ss:$8 sps:$4 sm:$0xff]   ;;  %v1012_v20 = vrot.slane %v1007_v18, %v11291_v17  ;;  %v1016_v21 = vrot.slane %v1007_v18, %v11295_v19 }
  0x47   : > { %1063 = vmatprep.subr.bf16.mxu0 %v10685_v2  ;;  %v10690_v7 = vld [vmem:[%s12695_s8 + $0x10] ss:$8 sps:$4 sm:$0xff]   ;;  %v10691_v8 = vld [vmem:[%s12695_s8 + $0x24] ss:$8 sps:$4 sm:$0xff]   ;;  %v10693_v9 = vld [vmem:[%s12695_s8 + $0x20] ss:$8 sps:$4 sm:$0xff]  }
  0x48   : > { %1064 = vmatpush1.bf16.msra.mxu0 %v10687_v3  ;;  %v10694_v10 = vld [vmem:[%s12695_s8 + $0x34] ss:$8 sps:$4 sm:$0xff]   ;;  %v10696_v11 = vld [vmem:[%s12695_s8 + $0x30] ss:$8 sps:$4 sm:$0xff]   ;;  %v988_v12 = vld [vmem:[#allocation2] sm:$0xff]  ;;  %s11034_s2 = smov 96  }
  0x49   : > { %1065 = vmatprep.subr.bf16.mxu0 %v10688_v5  ;;  %v989_v13 = vld [vmem:[#allocation2 + $0x8] sm:$0xff]  ;;  %s11035_s24 = smov 88   ;;  %s11036_s3 = smov 80  }
  0x4a   : > { %v998_v14 = vpack.c.bf16 %v989_v13, %v988_v12  ;;  %s11037_s25 = smov 72   ;;  %s11038_s20 = smov 32  }
  0x4b   : > { %s12696_s4 = sld [smem:[#allocation15_spill]]  ;;  %s12711_s8 = sld [smem:[#allocation25_spill]] }
  0x4c   : > { %1066 = vmatpush1.bf16.msra.mxu0 %v10690_v7 }
  0x4d   : > { %1067 = vmatprep.subr.bf16.mxu0 %v10691_v8 }
  0x50   : > { %1068 = vmatpush1.bf16.msra.mxu0 %v10693_v9 }
  0x51   : > { %1069 = vmatprep.subr.bf16.mxu0 %v10694_v10  ;;  %s12697_s5 = scalar_lea.vmem %s12696_s4, %s11168_s29  ;;  %s12703_s4 = scalar_lea.vmem %s12629_s9, %s11168_s29 }
  0x52   : > { %s12712_s12 = scalar_lea.vmem %s12711_s8, %s11168_s29 }
  0x54   : > { %1070 = vmatpush1.bf16.msra.mxu0 %v10696_v11 }
  0x55   : > { %10213 = vmatprep.subr.mxu0 %v11022_v6 }
  0x57   : > { %9549 = vmatmul.mubr.msk.bf16.vlgmr.msra.gmra.mrb[0].mxu0 %vm1059_vm1, %v998_v14 }
  0x58   : > { %10215 = vmatprep.mubr.msk.f32.mxu0 %vm11023_vm2, %v11022_v6 }
 0x12a   : > { %v1097_v22 = vpop.f32.mrb[0].mxu0 }
 0x12b   : > { %v11299_v23 = vadd.f32 %v1097_v22, %v1012_v20  ;;  %v1099_v24 = vpop.f32.mrb[1].mxu0 }
 0x12c   : > { %v11301_v25 = vadd.f32 %v1099_v24, %v1016_v21  ;;  %v1101_v26 = vpop.f32.mrb[2].mxu0 }
 0x12d   : > { %v11303_v27 = vadd.f32 %v1101_v26, %v1012_v20  ;;  %v1103_v28 = vpop.f32.mrb[3].mxu0  ;;  %1272 = vrot.lane.b32.xlu1 %v11299_v23, %s11024_s14  ;;  %1107 = vrot.lane.b32.xlu0 %v11299_v23, %s11025_s15 }
 0x12e   : > { %v11309_v29 = vadd.f32 %v1103_v28, %v1016_v21  ;;  %10219 = vmatpush3.msra.mxu1 %v11301_v25 }
 0x12f   : > { %10223 = vmatprep.subr.mxu1 %v11022_v6 }
 0x19f   : > { %v1108_v30 = vpop.permute.xlu0 %1107  ;;  %v1273_v43 = vpop.permute.xlu1 %1272 }
 0x1a0   : > { %10214 = vmatpush3.xpose.msk.msra.mxu0 %vm1109_vm3, %v1108_v30 }
 0x1a1   : > { %10238 = vmatprep.subr.mxu0 %v11022_v6 }
 0x1a3   : > { %10216 = vmatmul.mubr.msk.f32.vlgmr.msra.gmra.mrb[4].mxu0 %vm1109_vm3, %v11299_v23 }
 0x1a4   : > { %10240 = vmatprep.mubr.msk.f32.mxu0 %vm11023_vm2, %v11022_v6 }
 0x276   : > { %v1180_v33 = vpop.f32.mrb[4].mxu0 }
 0x277   : > { %v1184_v34 = vmul.f32 0.35355338, %v1180_v33  ;;  %v10217_v35 = vpop.f32.mrb[5].mxu0 }
 0x279   : > { %v1185_v36 = vadd.f32 %v1184_v34, %v11321_v32 }
 0x27b   : > { %v1186_v37 = vsel %vm1109_vm3, %v1185_v36, -inf }
 0x27c   : > { %1187 = vmax.xlane.f32.xlu0 %v1186_v37 }
 0x292   : > { %1362 = vrot.lane.b32.xlu0 %v11301_v25, %s11026_s16 }
 0x296   : > { %1440 = vrot.lane.b32.xlu0 %v11299_v23, %s11027_s17 }
 0x29a   : > { %1607 = vrot.lane.b32.xlu0 %v11299_v23, %s11028_s26 }
 0x309   : > { %v1188_v38 = vpop.xlane.xlu0 %1187 }
 0x30a   : > { %v1189_v39 = vsub.f32 %v1185_v36, %v1188_v38 }
 0x30c   : > { %v1190_v40 = vmul.f32 1.442695, %v1189_v39 }
 0x30d   : > { %v1363_v48 = vpop.permute.xlu0 %1362 }
 0x30e   : > { %10841 = vpow2.f32 %v1190_v40 }
 0x311   : > { %v1441_v61 = vpop.permute.xlu0 %1440 }
 0x315   : > { %v1608_v62 = vpop.permute.xlu0 %1607 }
 0x318   : > { %v10842_v41 = vpop.eup %10841 }
 0x319   : > { %v1192_v42 = vsel %vm1109_vm3, %v10842_v41, 0.0 }
 0x31a   : > { %1193 = vadd.xlane.f32.xlu1 %v1192_v42 }
 0x32b   : > { %1270 = vrot.lane.b32.xlu1 %v11299_v23, %s11026_s16 }
 0x3a7   : > { %v1194_v44 = vpop.xlane.xlu1 %1193 }
 0x3a8   : > { %10843 = vrcp.f32 %v1194_v44 }
 0x3ab   : > { %v1271_v47 = vpop.permute.xlu1 %1270 }
 0x3b2   : > { %v10844_v45 = vpop.eup %10843 }
 0x3b3   : > { %v1196_v46 = vmul.f32 %v10844_v45, %v10842_v41 }
 0x3b5   : > { %10221 = vmatmul.mubr.msk.f32.vlgmr.msra.gmra.mrb[0].mxu1 %vm1109_vm3, %v1196_v46 }
 0x3b6   : > { %10224 = vmatpush3.xpose.msk.msra.mxu1 %vm1109_vm3, %v1273_v43  ;;  %10225 = vmatprep.mubr.msk.f32.mxu1 %vm11023_vm2, %v11022_v6 }
 0x3b7   : > { %10228 = vmatprep.subr.mxu1 %v11022_v6 }
 0x3b9   : > { %10226 = vmatmul.mubr.msk.f32.vlgmr.msra.gmra.mrb[2].mxu1 %vm1109_vm3, %v1271_v47 }
 0x3ba   : > { %10229 = vmatpush3.msra.mxu1 %v1363_v48  ;;  %10230 = vmatprep.mubr.msk.f32.mxu1 %vm11023_vm2, %v11022_v6 }
 0x3bb   : > { %10233 = vmatprep.subr.mxu1 %v11022_v6 }
 0x488   : > { %v11343_v49 = vpop.f32.mrb[0].mxu1 }
 0x489   : > { %v10222_v50 = vpop.f32.mrb[1].mxu1 }
 0x48c   : > { %v1344_v51 = vpop.f32.mrb[2].mxu1 }
 0x48d   : > { %v1348_v52 = vmul.f32 0.35355338, %v1344_v51  ;;  %v10227_v53 = vpop.f32.mrb[3].mxu1 }
 0x48f   : > { %v1349_v54 = vadd.f32 %v1348_v52, %v11321_v32 }
 0x491   : > { %v1350_v55 = vsel %vm1109_vm3, %v1349_v54, -inf }
 0x492   : > { %1351 = vmax.xlane.f32.xlu1 %v1350_v55 }
 0x4a3   : > { %1438 = vrot.lane.b32.xlu1 %v11299_v23, %s11029_s23 }
 0x4a7   : > { %1941 = vrot.lane.b32.xlu1 %v11299_v23, %s11030_s21 }
 0x4ab   : > { %2108 = vrot.lane.b32.xlu1 %v11299_v23, %s12651_s27 }
 0x4af   : > { %2275 = vrot.lane.b32.xlu1 %v11299_v23, %s11032_s30 }
 0x4b3   : > { %2482 = vrot.lane.b32.xlu1 %v11303_v27, %s11025_s15 }
 0x4b7   : > { %2644 = vrot.lane.b32.xlu1 %v11303_v27, %s11026_s16 }
 0x4bb   : > { %2812 = vrot.lane.b32.xlu1 %v11303_v27, %s11029_s23 }
 0x4bf   : > { %2979 = vrot.lane.b32.xlu1 %v11303_v27, %s11033_s10 }
 0x4c3   : > { %3146 = vrot.lane.b32.xlu1 %v11303_v27, %s11034_s2 }
 0x4c7   : > { %3313 = vrot.lane.b32.xlu1 %v11303_v27, %s11035_s24 }
 0x4cb   : > { %3480 = vrot.lane.b32.xlu1 %v11303_v27, %s11036_s3 }
 0x4cf   : > { %3647 = vrot.lane.b32.xlu1 %v11303_v27, %s11037_s25 }
 0x4d3   : > { %1696 = vrot.lane.b32.xlu1 %v11301_v25, %s11033_s10 }
 0x4d7   : > { %1863 = vrot.lane.b32.xlu1 %v11301_v25, %s11034_s2 }
 0x4db   : > { %2197 = vrot.lane.b32.xlu1 %v11301_v25, %s11036_s3 }
 0x51f   : > { %v1352_v56 = vpop.xlane.xlu1 %1351 }
 0x520   : > { %v1353_v57 = vsub.f32 %v1349_v54, %v1352_v56 }
 0x522   : > { %v1354_v58 = vmul.f32 1.442695, %v1353_v57 }
 0x523   : > { %v1439_v0 = vpop.permute.xlu1 %1438 }
 0x524   : > { %10845 = vpow2.f32 %v1354_v58 }
 0x527   : > { %v1942_v3 = vpop.permute.xlu1 %1941 }
 0x52b   : > { %v2109_v9 = vpop.permute.xlu1 %2108 }
 0x52e   : > { %v10846_v59 = vpop.eup %10845 }
 0x52f   : > { %v1356_v60 = vsel %vm1109_vm3, %v10846_v59, 0.0  ;;  %v2276_v12 = vpop.permute.xlu1 %2275 }
 0x530   : > { %1357 = vadd.xlane.f32.xlu0 %v1356_v60 }
 0x533   : > { %v2483_v14 = vpop.permute.xlu1 %2482 }
 0x537   : > { %v2645_v20 = vpop.permute.xlu1 %2644 }
 0x53b   : > { %v2813_v22 = vpop.permute.xlu1 %2812 }
 0x53f   : > { %v2980_v26 = vpop.permute.xlu1 %2979 }
 0x546   : > { %1605 = vrot.lane.b32.xlu0 %v11299_v23, %s11033_s10 }
 0x54a   : > { %1774 = vrot.lane.b32.xlu0 %v11299_v23, %s11038_s20 }
 0x54e   : > { %1772 = vrot.lane.b32.xlu0 %v11299_v23, %s11034_s2 }
 0x552   : > { %1939 = vrot.lane.b32.xlu0 %v11299_v23, %s11035_s24 }
 0x556   : > { %2106 = vrot.lane.b32.xlu0 %v11299_v23, %s11036_s3 }
 0x55a   : > { %2273 = vrot.lane.b32.xlu0 %v11299_v23, %s11037_s25 }
 0x55e   : > { %2646 = vrot.lane.b32.xlu0 %v11303_v27, %s11024_s14 }
 0x562   : > { %2814 = vrot.lane.b32.xlu0 %v11303_v27, %s11027_s17 }
 0x566   : > { %2981 = vrot.lane.b32.xlu0 %v11303_v27, %s11028_s26 }
 0x56a   : > { %3148 = vrot.lane.b32.xlu0 %v11303_v27, %s11038_s20 }
 0x56e   : > { %3315 = vrot.lane.b32.xlu0 %v11303_v27, %s11030_s21 }
 0x572   : > { %3482 = vrot.lane.b32.xlu0 %v11303_v27, %s12651_s27 }
 0x576   : > { %3649 = vrot.lane.b32.xlu0 %v11303_v27, %s11032_s30 }
 0x57a   : > { %1529 = vrot.lane.b32.xlu0 %v11301_v25, %s11029_s23 }
 0x57e   : > { %2030 = vrot.lane.b32.xlu0 %v11301_v25, %s11035_s24 }
 0x5bd   : > { %v1358_v63 = vpop.xlane.xlu0 %1357 }
 0x5be   : > { %10847 = vrcp.f32 %v1358_v63 }
 0x5c1   : > { %v1606_v1 = vpop.permute.xlu0 %1605 }
 0x5c5   : > { %v1775_v2 = vpop.permute.xlu0 %1774 }
 0x5c8   : > { %v10848_v5 = vpop.eup %10847 }
 0x5c9   : > { %v1773_v7 = vpop.permute.xlu0 %1772  ;;  %v1360_v8 = vmul.f32 %v10848_v5, %v10846_v59 }
 0x5cb   : > { %10231 = vmatmul.mubr.msk.f32.vlgmr.msra.gmra.mrb[4].mxu1 %vm1109_vm3, %v1360_v8 }
 0x5cc   : > { %10234 = vmatpush3.xpose.msk.msra.mxu1 %vm1109_vm3, %v1441_v61  ;;  %10235 = vmatprep.mubr.msk.f32.mxu1 %vm11023_vm2, %v11022_v6 }
 0x5cd   : > { %v1940_v10 = vpop.permute.xlu0 %1939  ;;  %10243 = vmatprep.subr.mxu1 %v11022_v6 }
 0x5cf   : > { %10236 = vmatmul.mubr.msk.f32.vlgmr.msra.gmra.mrb[6].mxu1 %vm1109_vm3, %v1439_v0 }
 0x5d0   : > { %10244 = vmatpush3.xpose.msk.msra.mxu1 %vm1109_vm3, %v1608_v62  ;;  %10245 = vmatprep.mubr.msk.f32.mxu1 %vm11023_vm2, %v11022_v6 }
 0x5d1   : > { %v2107_v11 = vpop.permute.xlu0 %2106  ;;  %10253 = vmatprep.subr.mxu1 %v11022_v6 }
 0x5d3   : > { %10246 = vmatmul.mubr.msk.f32.vlgmr.msra.gmra.mrb[8].mxu1 %vm1109_vm3, %v1606_v1 }
 0x5d4   : > { %10254 = vmatpush3.xpose.msk.msra.mxu1 %vm1109_vm3, %v1775_v2  ;;  %10255 = vmatprep.mubr.msk.f32.mxu1 %vm11023_vm2, %v11022_v6 }
 0x5d5   : > { %v2274_v13 = vpop.permute.xlu0 %2273  ;;  %10263 = vmatprep.subr.mxu1 %v11022_v6 }
 0x5d7   : > { %10256 = vmatmul.mubr.msk.f32.vlgmr.msra.gmra.mrb[10].mxu1 %vm1109_vm3, %v1773_v7 }
 0x5d8   : > { %10264 = vmatpush3.xpose.msk.msra.mxu1 %vm1109_vm3, %v1942_v3  ;;  %10265 = vmatprep.mubr.msk.f32.mxu1 %vm11023_vm2, %v11022_v6 }
 0x5d9   : > { %v2647_v15 = vpop.permute.xlu0 %2646  ;;  %10273 = vmatprep.subr.mxu1 %v11022_v6 }
 0x5db   : > { %10266 = vmatmul.mubr.msk.f32.vlgmr.msra.gmra.mrb[12].mxu1 %vm1109_vm3, %v1940_v10 }
 0x5dc   : > { %10274 = vmatpush3.xpose.msk.msra.mxu1 %vm1109_vm3, %v2109_v9  ;;  %10275 = vmatprep.mubr.msk.f32.mxu1 %vm11023_vm2, %v11022_v6 }
 0x5dd   : > { %v2815_v18 = vpop.permute.xlu0 %2814  ;;  %10283 = vmatprep.subr.mxu1 %v11022_v6 }
 0x5df   : > { %10276 = vmatmul.mubr.msk.f32.vlgmr.msra.gmra.mrb[14].mxu1 %vm1109_vm3, %v2107_v11 }
 0x5e0   : > { %10284 = vmatpush3.xpose.msk.msra.mxu1 %vm1109_vm3, %v2276_v12  ;;  %10285 = vmatprep.mubr.msk.f32.mxu1 %vm11023_vm2, %v11022_v6 }
 0x5e1   : > { %v2982_v21 = vpop.permute.xlu0 %2981  ;;  %10293 = vmatprep.subr.mxu1 %v11022_v6 }
 0x5e3   : > { %10286 = vmatmul.mubr.msk.f32.vlgmr.msra.gmra.mrb[16].mxu1 %vm1109_vm3, %v2274_v13 }
 0x5e4   : > { %10294 = vmatpush3.xpose.msk.msra.mxu1 %vm1109_vm3, %v2483_v14  ;;  %10295 = vmatprep.mubr.msk.f32.mxu1 %vm11023_vm2, %v11022_v6 }
 0x5e5   : > { %v3149_v23 = vpop.permute.xlu0 %3148  ;;  %10303 = vmatprep.subr.mxu1 %v11022_v6 }
 0x5e7   : > { %10296 = vmatmul.mubr.msk.f32.vlgmr.msra.gmra.mrb[18].mxu1 %vm1109_vm3, %v11303_v27  ;;  %v3147_v27 = vpop.permute.xlu1 %3146 }
 0x5e8   : > { %10304 = vmatpush3.xpose.msk.msra.mxu1 %vm1109_vm3, %v2647_v15  ;;  %10305 = vmatprep.mubr.msk.f32.mxu1 %vm11023_vm2, %v11022_v6 }
 0x5e9   : > { %v3316_v24 = vpop.permute.xlu0 %3315  ;;  %10313 = vmatprep.subr.mxu1 %v11022_v6 }
 0x5eb   : > { %10306 = vmatmul.mubr.msk.f32.vlgmr.msra.gmra.mrb[20].mxu1 %vm1109_vm3, %v2645_v20  ;;  %v3314_v33 = vpop.permute.xlu1 %3313 }
 0x5ec   : > { %10314 = vmatpush3.xpose.msk.msra.mxu1 %vm1109_vm3, %v2815_v18  ;;  %10315 = vmatprep.mubr.msk.f32.mxu1 %vm11023_vm2, %v11022_v6 }
 0x5ed   : > { %v3483_v28 = vpop.permute.xlu0 %3482  ;;  %10323 = vmatprep.subr.mxu1 %v11022_v6 }
 0x5ef   : > { %10316 = vmatmul.mubr.msk.f32.vlgmr.msra.gmra.mrb[22].mxu1 %vm1109_vm3, %v2813_v22  ;;  %v3481_v34 = vpop.permute.xlu1 %3480 }
 0x5f0   : > { %10324 = vmatpush3.xpose.msk.msra.mxu1 %vm1109_vm3, %v2982_v21  ;;  %10325 = vmatprep.mubr.msk.f32.mxu1 %vm11023_vm2, %v11022_v6 }
 0x5f1   : > { %v3650_v30 = vpop.permute.xlu0 %3649  ;;  %10333 = vmatprep.subr.mxu1 %v11022_v6 }
 0x5f3   : > { %10326 = vmatmul.mubr.msk.f32.vlgmr.msra.gmra.mrb[24].mxu1 %vm1109_vm3, %v2980_v26  ;;  %v3648_v35 = vpop.permute.xlu1 %3647 }
 0x5f4   : > { %10334 = vmatpush3.xpose.msk.msra.mxu1 %vm1109_vm3, %v3149_v23  ;;  %10335 = vmatprep.mubr.msk.f32.mxu1 %vm11023_vm2, %v11022_v6 }
 0x5f5   : > { %v1530_v31 = vpop.permute.xlu0 %1529  ;;  %10343 = vmatprep.subr.mxu1 %v11022_v6 }
 0x5f6   : > { %10239 = vmatpush3.msra.mxu0 %v1530_v31 }
 0x5f7   : > { %10336 = vmatmul.mubr.msk.f32.vlgmr.msra.gmra.mrb[26].mxu1 %vm1109_vm3, %v3147_v27  ;;  %10248 = vmatprep.subr.mxu0 %v11022_v6 }
 0x5f8   : > { %10344 = vmatpush3.xpose.msk.msra.mxu1 %vm1109_vm3, %v3316_v24  ;;  %10345 = vmatprep.mubr.msk.f32.mxu1 %vm11023_vm2, %v11022_v6 }
 0x5f9   : > { %10353 = vmatprep.subr.mxu1 %v11022_v6 }
 0x5fb   : > { %10346 = vmatmul.mubr.msk.f32.vlgmr.msra.gmra.mrb[28].mxu1 %vm1109_vm3, %v3314_v33 }
 0x5fc   : > { %10354 = vmatpush3.xpose.msk.msra.mxu1 %vm1109_vm3, %v3483_v28  ;;  %10355 = vmatprep.mubr.msk.f32.mxu1 %vm11023_vm2, %v11022_v6 }
 0x5fd   : > { %10363 = vmatprep.subr.mxu1 %v11022_v6 }
 0x5ff   : > { %10356 = vmatmul.mubr.msk.f32.vlgmr.msra.gmra.mrb[30].mxu1 %vm1109_vm3, %v3481_v34 }
 0x600   : > { %10364 = vmatpush3.xpose.msk.msra.mxu1 %vm1109_vm3, %v3650_v30  ;;  %10365 = vmatprep.mubr.msk.f32.mxu1 %vm11023_vm2, %v11022_v6 }
 0x601   : > { %10373 = vmatprep.subr.bf16.mxu1 %v11022_v6 }
 0x603   : > { %10366 = vmatmul.mubr.msk.f32.vlgmr.msra.gmra.mrb[32].mxu1 %vm1109_vm3, %v3648_v35 }
 0x604   : > { %10381 = vmatprep.mubr.msk.bf16.mxu1 %vm11023_vm2, %v11022_v6 }
 0x69e   : > { %v11483_v36 = vpop.f32.mrb[4].mxu1 }
 0x69f   : > { %v10232_v37 = vpop.f32.mrb[5].mxu1 }
 0x6a2   : > { %v1512_v38 = vpop.f32.mrb[6].mxu1 }
 0x6a3   : > { %v1516_v39 = vmul.f32 0.35355338, %v1512_v38  ;;  %v10237_v40 = vpop.f32.mrb[7].mxu1 }
 0x6a5   : > { %v11486_v41 = vadd.f32 %v1516_v39, %v11321_v32 }
 0x6a6   : > { %v1679_v42 = vpop.f32.mrb[8].mxu1 }
 0x6a7   : > { %v1683_v43 = vmul.f32 0.35355338, %v1679_v42  ;;  %v10247_v44 = vpop.f32.mrb[9].mxu1  ;;  %v1518_v45 = vsel %vm1109_vm3, %v11486_v41, -inf }
 0x6a8   : > { %1519 = vmax.xlane.f32.xlu0 %v1518_v45 }
 0x6a9   : > { %v11491_v46 = vadd.f32 %v1683_v43, %v11321_v32 }
 0x6aa   : > { %v1846_v47 = vpop.f32.mrb[10].mxu1 }
 0x6ab   : > { %v1850_v48 = vmul.f32 0.35355338, %v1846_v47  ;;  %v10257_v50 = vpop.f32.mrb[11].mxu1  ;;  %v1685_v51 = vsel %vm1109_vm3, %v11491_v46, -inf }
 0x6ac   : > { %1686 = vmax.xlane.f32.xlu1 %v1685_v51 }
 0x6ad   : > { %v11496_v52 = vadd.f32 %v1850_v48, %v11321_v32 }
 0x6ae   : > { %v2013_v53 = vpop.f32.mrb[12].mxu1 }
 0x6af   : > { %v2017_v54 = vmul.f32 0.35355338, %v2013_v53  ;;  %v10267_v55 = vpop.f32.mrb[13].mxu1  ;;  %v1852_v56 = vsel %vm1109_vm3, %v11496_v52, -inf }
 0x6b0   : > { %1853 = vmax.xlane.f32.xlu0 %v1852_v56 }
 0x6b1   : > { %v11501_v57 = vadd.f32 %v2017_v54, %v11321_v32 }
 0x6b2   : > { %v2180_v58 = vpop.f32.mrb[14].mxu1 }
 0x6b3   : > { %v2184_v59 = vmul.f32 0.35355338, %v2180_v58  ;;  %v10277_v60 = vpop.f32.mrb[15].mxu1  ;;  %v2019_v61 = vsel %vm1109_vm3, %v11501_v57, -inf  ;;  %v11559_v58 = vpop.permute.xlu1 %1696 }
 0x6b4   : > { %2020 = vmax.xlane.f32.xlu0 %v2019_v61  ;;  %v11563_v60 = vpop.permute.xlu0 %2030 }
 0x6b5   : > { %v11506_v62 = vadd.f32 %v2184_v59, %v11321_v32 }
 0x6b6   : > { %v2347_v63 = vpop.f32.mrb[16].mxu1 }
 0x6b7   : > { %v2351_v0 = vmul.f32 0.35355338, %v2347_v63  ;;  %v10287_v1 = vpop.f32.mrb[17].mxu1  ;;  %v2186_v2 = vsel %vm1109_vm3, %v11506_v62, -inf  ;;  %v11561_v59 = vpop.permute.xlu1 %1863 }
 0x6b8   : > { %2187 = vmax.xlane.f32.xlu1 %v2186_v2 }
 0x6b9   : > { %v11511_v3 = vadd.f32 %v2351_v0, %v11321_v32 }
 0x6ba   : > { %v2554_v5 = vpop.f32.mrb[18].mxu1 }
 0x6bb   : > { %v2558_v7 = vmul.f32 0.35355338, %v2554_v5  ;;  %v10297_v8 = vpop.f32.mrb[19].mxu1  ;;  %v2353_v9 = vsel %vm1109_vm3, %v11511_v3, -inf  ;;  %v11565_v61 = vpop.permute.xlu1 %2197 }
 0x6bc   : > { %2354 = vmax.xlane.f32.xlu0 %v2353_v9 }
 0x6bd   : > { %v11516_v10 = vadd.f32 %v2558_v7, %v11321_v32 }
 0x6be   : > { %v2718_v11 = vpop.f32.mrb[20].mxu1 }
 0x6bf   : > { %v2722_v12 = vmul.f32 0.35355338, %v2718_v11  ;;  %v10307_v13 = vpop.f32.mrb[21].mxu1  ;;  %v2560_v14 = vsel %vm1109_vm3, %v11516_v10, -inf }
 0x6c0   : > { %2561 = vmax.xlane.f32.xlu1 %v2560_v14 }
 0x6c1   : > { %v11521_v15 = vadd.f32 %v2722_v12, %v11321_v32 }
 0x6c2   : > { %v2886_v18 = vpop.f32.mrb[22].mxu1 }
 0x6c3   : > { %v2890_v20 = vmul.f32 0.35355338, %v2886_v18  ;;  %v10317_v21 = vpop.f32.mrb[23].mxu1  ;;  %v2724_v22 = vsel %vm1109_vm3, %v11521_v15, -inf }
 0x6c4   : > { %2725 = vmax.xlane.f32.xlu0 %v2724_v22 }
 0x6c5   : > { %v11526_v23 = vadd.f32 %v2890_v20, %v11321_v32 }
 0x6c6   : > { %v3053_v24 = vpop.f32.mrb[24].mxu1 }
 0x6c7   : > { %v3057_v26 = vmul.f32 0.35355338, %v3053_v24  ;;  %v10327_v28 = vpop.f32.mrb[25].mxu1  ;;  %v2892_v27 = vsel %vm1109_vm3, %v11526_v23, -inf }
 0x6c8   : > { %2893 = vmax.xlane.f32.xlu1 %v2892_v27 }
 0x6c9   : > { %v11531_v30 = vadd.f32 %v3057_v26, %v11321_v32 }
 0x6ca   : > { %v3220_v31 = vpop.f32.mrb[26].mxu1 }
 0x6cb   : > { %v3224_v33 = vmul.f32 0.35355338, %v3220_v31  ;;  %v10337_v34 = vpop.f32.mrb[27].mxu1  ;;  %v3059_v35 = vsel %vm1109_vm3, %v11531_v30, -inf }
 0x6cc   : > { %3060 = vmax.xlane.f32.xlu0 %v3059_v35 }
 0x6cd   : > { %v11536_v37 = vadd.f32 %v3224_v33, %v11321_v32 }
 0x6ce   : > { %v3387_v38 = vpop.f32.mrb[28].mxu1 }
 0x6cf   : > { %v10347_v39 = vpop.f32.mrb[29].mxu1  ;;  %v3226_v40 = vsel %vm1109_vm3, %v11536_v37, -inf  ;;  %v3391_v47 = vmul.f32 0.35355338, %v3387_v38 }
 0x6d0   : > { %3227 = vmax.xlane.f32.xlu1 %v3226_v40 }
 0x6d1   : > { %v11545_v51 = vadd.f32 %v3391_v47, %v11321_v32 }
 0x6d2   : > { %v3554_v42 = vpop.f32.mrb[30].mxu1 }
 0x6d3   : > { %v10357_v43 = vpop.f32.mrb[31].mxu1  ;;  %v3558_v48 = vmul.f32 0.35355338, %v3554_v42  ;;  %v3393_v53 = vsel %vm1109_vm3, %v11545_v51, -inf }
 0x6d5   : > { %v11550_v54 = vadd.f32 %v3558_v48, %v11321_v32 }
 0x6d6   : > { %v3721_v44 = vpop.f32.mrb[32].mxu1 }
 0x6d7   : > { %v10367_v45 = vpop.f32.mrb[33].mxu1  ;;  %v3725_v50 = vmul.f32 0.35355338, %v3721_v44 }
 0x6d9   : > { %v11553_v55 = vadd.f32 %v3725_v50, %v11321_v32 }
 0x6db   : > { %v3727_v56 = vsel %vm1109_vm3, %v11553_v55, -inf }
 0x6e1   : > { %2364 = vrot.lane.b32.xlu1 %v11301_v25, %s11037_s25  ;;  %v3560_v25 = vsel %vm1109_vm3, %v11550_v54, -inf }
 0x6e2   : > { %2736 = vrot.lane.b32.xlu0 %v11309_v29, %s11026_s16 }
 0x701   : > { %3394 = vmax.xlane.f32.xlu0 %v3393_v53 }
 0x705   : > { %3561 = vmax.xlane.f32.xlu1 %v3560_v25  ;;  %3728 = vmax.xlane.f32.xlu0 %v3727_v56 }
 0x735   : > { %v1520_v63 = vpop.xlane.xlu0 %1519 }
 0x736   : > { %v1521_v32 = vsub.f32 %v11486_v41, %v1520_v63 }
 0x738   : > { %v1522_v0 = vmul.f32 1.442695, %v1521_v32 }
 0x739   : > { %v1687_v1 = vpop.xlane.xlu1 %1686 }
 0x73a   : > { %10849 = vpow2.f32 %v1522_v0  ;;  %v1688_v2 = vsub.f32 %v11491_v46, %v1687_v1 }
 0x73c   : > { %v1689_v5 = vmul.f32 1.442695, %v1688_v2 }
 0x73d   : > { %v1854_v7 = vpop.xlane.xlu0 %1853 }
 0x73e   : > { %10851 = vpow2.f32 %v1689_v5  ;;  %v1855_v8 = vsub.f32 %v11496_v52, %v1854_v7 }
 0x740   : > { %v1856_v9 = vmul.f32 1.442695, %v1855_v8 }
 0x741   : > { %v2021_v11 = vpop.xlane.xlu0 %2020 }
 0x742   : > { %10853 = vpow2.f32 %v1856_v9  ;;  %v2022_v12 = vsub.f32 %v11501_v57, %v2021_v11 }
 0x744   : > { %v11571_v13 = vpop.eup %10849  ;;  %v2023_v14 = vmul.f32 1.442695, %v2022_v12 }
 0x745   : > { %v2188_v18 = vpop.xlane.xlu1 %2187  ;;  %v1524_v41 = vsel %vm1109_vm3, %v11571_v13, 0.0 }
 0x746   : > { %10855 = vpow2.f32 %v2023_v14  ;;  %v2189_v46 = vsub.f32 %v11506_v62, %v2188_v18  ;;  %1525 = vadd.xlane.f32.xlu1 %v1524_v41 }
 0x748   : > { %v11576_v20 = vpop.eup %10851  ;;  %v2190_v21 = vmul.f32 1.442695, %v2189_v46 }
 0x749   : > { %v1691_v52 = vsel %vm1109_vm3, %v11576_v20, 0.0  ;;  %v2355_v27 = vpop.xlane.xlu0 %2354 }
 0x74a   : > { %10857 = vpow2.f32 %v2190_v21  ;;  %1692 = vadd.xlane.f32.xlu0 %v1691_v52  ;;  %v2356_v33 = vsub.f32 %v11511_v3, %v2355_v27 }
 0x74c   : > { %v11580_v57 = vpop.eup %10853  ;;  %v2357_v39 = vmul.f32 1.442695, %v2356_v33 }
 0x74d   : > { %v1858_v22 = vsel %vm1109_vm3, %v11580_v57, 0.0  ;;  %v2562_v31 = vpop.xlane.xlu1 %2561 }
 0x74e   : > { %1859 = vadd.xlane.f32.xlu1 %v1858_v22  ;;  %v2563_v34 = vsub.f32 %v11516_v10, %v2562_v31  ;;  %10859 = vpow2.f32 %v2357_v39 }
 0x750   : > { %v11584_v24 = vpop.eup %10855  ;;  %v2564_v42 = vmul.f32 1.442695, %v2563_v34 }
 0x751   : > { %v2025_v62 = vsel %vm1109_vm3, %v11584_v24, 0.0  ;;  %v2726_v35 = vpop.xlane.xlu0 %2725 }
 0x752   : > { %2026 = vadd.xlane.f32.xlu0 %v2025_v62  ;;  %v2727_v40 = vsub.f32 %v11521_v15, %v2726_v35  ;;  %10861 = vpow2.f32 %v2564_v42 }
 0x754   : > { %v11588_v26 = vpop.eup %10857  ;;  %v2728_v45 = vmul.f32 1.442695, %v2727_v40 }
 0x755   : > { %v2192_v28 = vsel %vm1109_vm3, %v11588_v26, 0.0  ;;  %v2894_v38 = vpop.xlane.xlu1 %2893 }
 0x756   : > { %2193 = vadd.xlane.f32.xlu1 %v2192_v28  ;;  %v2895_v43 = vsub.f32 %v11526_v23, %v2894_v38  ;;  %10863 = vpow2.f32 %v2728_v45 }
 0x758   : > { %v2896_v47 = vmul.f32 1.442695, %v2895_v43  ;;  %v11604_v25 = vpop.eup %10859 }
 0x759   : > { %v3061_v44 = vpop.xlane.xlu0 %3060 }
 0x75a   : > { %v3062_v48 = vsub.f32 %v11531_v30, %v3061_v44  ;;  %10865 = vpow2.f32 %v2896_v47  ;;  %v2359_v30 = vsel %vm1109_vm3, %v11604_v25, 0.0 }
 0x75c   : > { %v3063_v3 = vmul.f32 1.442695, %v3062_v48  ;;  %v11606_v15 = vpop.eup %10861 }
 0x75d   : > { %v3228_v50 = vpop.xlane.xlu1 %3227  ;;  %v2566_v56 = vsel %vm1109_vm3, %v11606_v15, 0.0  ;;  %v11635_v18 = vpop.permute.xlu0 %2736 }
 0x75e   : > { %v3229_v10 = vsub.f32 %v11536_v37, %v3228_v50  ;;  %10867 = vpow2.f32 %v3063_v3 }
 0x760   : > { %v3230_v53 = vmul.f32 1.442695, %v3229_v10  ;;  %v11608_v23 = vpop.eup %10863 }
 0x761   : > { %v11616_v37 = vpop.permute.xlu1 %2364  ;;  %v2730_v0 = vsel %vm1109_vm3, %v11608_v23, 0.0 }
 0x762   : > { %10869 = vpow2.f32 %v3230_v53 }
 0x764   : > { %v11614_v63 = vpop.eup %10865 }
 0x765   : > { %v2898_v32 = vsel %vm1109_vm3, %v11614_v63, 0.0 }
 0x767   : > { %2903 = vrot.lane.b32.xlu1 %v11309_v29, %s11029_s23 }
 0x768   : > { %3070 = vrot.lane.b32.xlu0 %v11309_v29, %s11033_s10  ;;  %v11622_v1 = vpop.eup %10867 }
 0x769   : > { %v3065_v5 = vsel %vm1109_vm3, %v11622_v1, 0.0 }
 0x76c   : > { %3237 = vrot.lane.b32.xlu0 %v11309_v29, %s11034_s2  ;;  %v11626_v7 = vpop.eup %10869 }
 0x76d   : > { %v3232_v11 = vsel %vm1109_vm3, %v11626_v7, 0.0 }
 0x78b   : > { %2567 = vadd.xlane.f32.xlu1 %v2566_v56  ;;  %2360 = vadd.xlane.f32.xlu0 %v2359_v30 }
 0x78e   : > { %v3395_v41 = vpop.xlane.xlu0 %3394 }
 0x78f   : > { %2899 = vadd.xlane.f32.xlu0 %v2898_v32  ;;  %2731 = vadd.xlane.f32.xlu1 %v2730_v0 }
 0x792   : > { %v3562_v2 = vpop.xlane.xlu1 %3561  ;;  %v3729_v46 = vpop.xlane.xlu0 %3728 }
 0x793   : > { %v3563_v8 = vsub.f32 %v11550_v54, %v3562_v2  ;;  %3066 = vadd.xlane.f32.xlu1 %v3065_v5  ;;  %v3396_v54 = vsub.f32 %v11545_v51, %v3395_v41  ;;  %v3730_v52 = vsub.f32 %v11553_v55, %v3729_v46 }
 0x795   : > { %v3564_v9 = vmul.f32 1.442695, %v3563_v8  ;;  %v3397_v21 = vmul.f32 1.442695, %v3396_v54  ;;  %v3731_v22 = vmul.f32 1.442695, %v3730_v52 }
 0x797   : > { %10871 = vpow2.f32 %v3564_v9  ;;  %3233 = vadd.xlane.f32.xlu1 %v3232_v11 }
 0x798   : > { %10873 = vpow2.f32 %v3397_v21 }
 0x799   : > { %10875 = vpow2.f32 %v3731_v22 }
 0x7a1   : > { %v11631_v12 = vpop.eup %10871 }
 0x7a2   : > { %v3566_v14 = vsel %vm1109_vm3, %v11631_v12, 0.0  ;;  %v11643_v62 = vpop.eup %10873 }
 0x7a3   : > { %3567 = vadd.xlane.f32.xlu1 %v3566_v14  ;;  %v3399_v28 = vsel %vm1109_vm3, %v11643_v62, 0.0  ;;  %v11647_v27 = vpop.eup %10875 }
 0x7a4   : > { %v3733_v51 = vsel %vm1109_vm3, %v11647_v27, 0.0 }
 0x7a5   : > { %3404 = vrot.lane.b32.xlu0 %v11309_v29, %s11035_s24 }
 0x7b4   : > { %3571 = vrot.lane.b32.xlu1 %v11309_v29, %s11036_s3 }
 0x7c4   : > { %3400 = vadd.xlane.f32.xlu0 %v3399_v28 }
 0x7c8   : > { %3734 = vadd.xlane.f32.xlu0 %v3733_v51 }
 0x7d3   : > { %v1526_v31 = vpop.xlane.xlu1 %1525 }
 0x7d4   : > { %10877 = vrcp.f32 %v1526_v31 }
 0x7d7   : > { %v1693_v55 = vpop.xlane.xlu0 %1692 }
 0x7d8   : > { %10879 = vrcp.f32 %v1693_v55 }
 0x7db   : > { %v1860_v33 = vpop.xlane.xlu1 %1859 }
 0x7dc   : > { %10881 = vrcp.f32 %v1860_v33 }
 0x7de   : > { %v10878_v34 = vpop.eup %10877  ;;  %3738 = vrot.lane.b32.xlu0 %v11309_v29, %s11037_s25 }
 0x7df   : > { %v2027_v35 = vpop.xlane.xlu0 %2026  ;;  %v1528_v38 = vmul.f32 %v10878_v34, %v11571_v13 }
 0x7e0   : > { %10883 = vrcp.f32 %v2027_v35 }
 0x7e1   : > { %10241 = vmatmul.mubr.msk.f32.vlgmr.msra.gmra.mrb[6].mxu0 %vm1109_vm3, %v1528_v38 }
 0x7e2   : > { %v10880_v39 = vpop.eup %10879  ;;  %10249 = vmatpush3.msra.mxu0 %v11559_v58  ;;  %10250 = vmatprep.mubr.msk.f32.mxu0 %vm11023_vm2, %v11022_v6 }
 0x7e3   : > { %v2194_v40 = vpop.xlane.xlu1 %2193  ;;  %10258 = vmatprep.subr.mxu0 %v11022_v6  ;;  %v1695_v42 = vmul.f32 %v10880_v39, %v11576_v20 }
 0x7e4   : > { %10885 = vrcp.f32 %v2194_v40 }
 0x7e5   : > { %10251 = vmatmul.mubr.msk.f32.vlgmr.msra.gmra.mrb[8].mxu0 %vm1109_vm3, %v1695_v42 }
 0x7e6   : > { %v10882_v43 = vpop.eup %10881  ;;  %10259 = vmatpush3.msra.mxu0 %v11561_v59  ;;  %10260 = vmatprep.mubr.msk.f32.mxu0 %vm11023_vm2, %v11022_v6 }
 0x7e7   : > { %10268 = vmatprep.subr.mxu0 %v11022_v6  ;;  %v1862_v58 = vmul.f32 %v10882_v43, %v11580_v57  ;;  %v10697_v43 = vld [vmem:[%s11190_s18] sm:$0xff]  }
 0x7e8   : > { %10374 = vmatpush3.bf16.msra.mxu1 %v10697_v43 }
 0x7e9   : > { %10261 = vmatmul.mubr.msk.f32.vlgmr.msra.gmra.mrb[10].mxu0 %vm1109_vm3, %v1862_v58  ;;  %10375 = vmatprep.subr.bf16.mxu1 %v11022_v6 }
 0x7ea   : > { %v10884_v13 = vpop.eup %10883  ;;  %10269 = vmatpush3.msra.mxu0 %v11563_v60  ;;  %10270 = vmatprep.mubr.msk.f32.mxu0 %vm11023_vm2, %v11022_v6  ;;  %v3071_v60 = vpop.permute.xlu0 %3070 }
 0x7eb   : > { %10278 = vmatprep.subr.mxu0 %v11022_v6  ;;  %v2029_v20 = vmul.f32 %v10884_v13, %v11584_v24  ;;  %v2904_v24 = vpop.permute.xlu1 %2903 }
 0x7ed   : > { %10271 = vmatmul.mubr.msk.f32.vlgmr.msra.gmra.mrb[12].mxu0 %vm1109_vm3, %v2029_v20 }
 0x7ee   : > { %v10886_v59 = vpop.eup %10885  ;;  %10279 = vmatpush3.msra.mxu0 %v11565_v61  ;;  %10280 = vmatprep.mubr.msk.f32.mxu0 %vm11023_vm2, %v11022_v6  ;;  %v3238_v44 = vpop.permute.xlu0 %3237 }
 0x7ef   : > { %10288 = vmatprep.subr.mxu0 %v11022_v6  ;;  %v2196_v57 = vmul.f32 %v10886_v59, %v11588_v26 }
 0x7f1   : > { %10281 = vmatmul.mubr.msk.f32.vlgmr.msra.gmra.mrb[14].mxu0 %vm1109_vm3, %v2196_v57 }
 0x7f2   : > { %10289 = vmatpush3.msra.mxu0 %v11616_v37  ;;  %10290 = vmatprep.mubr.msk.f32.mxu0 %vm11023_vm2, %v11022_v6 }
 0x7f3   : > { %10298 = vmatprep.subr.mxu0 %v11022_v6 }
 0x818   : > { %v2568_v61 = vpop.xlane.xlu1 %2567  ;;  %v2361_v45 = vpop.xlane.xlu0 %2360 }
 0x819   : > { %10887 = vrcp.f32 %v2361_v45 }
 0x81a   : > { %10889 = vrcp.f32 %v2568_v61  ;;  %v10699_v61 = vld [vmem:[%s11190_s18 + $0x10] sm:$0xff]  }
 0x81c   : > { %v2732_v47 = vpop.xlane.xlu1 %2731  ;;  %v2900_v48 = vpop.xlane.xlu0 %2899 }
 0x81d   : > { %10891 = vrcp.f32 %v2732_v47  ;;  %v10700_v47 = vld [vmem:[%s11190_s18 + $0x18] sm:$0xff]  }
 0x81e   : > { %10893 = vrcp.f32 %v2900_v48 }
 0x820   : > { %v3067_v26 = vpop.xlane.xlu1 %3066  ;;  %v3405_v0 = vpop.permute.xlu0 %3404 }
 0x821   : > { %10895 = vrcp.f32 %v3067_v26 }
 0x823   : > { %v10888_v50 = vpop.eup %10887 }
 0x824   : > { %v2363_v3 = vmul.f32 %v10888_v50, %v11604_v25  ;;  %v10890_v10 = vpop.eup %10889  ;;  %v3234_v53 = vpop.xlane.xlu1 %3233 }
 0x825   : > { %v2570_v56 = vmul.f32 %v10890_v10, %v11606_v15  ;;  %10897 = vrcp.f32 %v3234_v53 }
 0x826   : > { %10291 = vmatmul.mubr.msk.f32.vlgmr.msra.gmra.mrb[16].mxu0 %vm1109_vm3, %v2363_v3 }
 0x827   : > { %10299 = vmatpush3.msra.mxu0 %v11309_v29  ;;  %10300 = vmatprep.mubr.msk.f32.mxu0 %vm11023_vm2, %v11022_v6  ;;  %v10892_v30 = vpop.eup %10891 }
 0x828   : > { %10308 = vmatprep.subr.mxu0 %v11022_v6  ;;  %v2734_v29 = vmul.f32 %v10892_v30, %v11608_v23  ;;  %v10894_v25 = vpop.eup %10893 }
 0x829   : > { %v2902_v15 = vmul.f32 %v10894_v25, %v11614_v63 }
 0x82a   : > { %10301 = vmatmul.mubr.msk.f32.vlgmr.msra.gmra.mrb[18].mxu0 %vm1109_vm3, %v2570_v56 }
 0x82b   : > { %10309 = vmatpush3.msra.mxu0 %v11635_v18  ;;  %10310 = vmatprep.mubr.msk.f32.mxu0 %vm11023_vm2, %v11022_v6  ;;  %v10896_v37 = vpop.eup %10895 }
 0x82c   : > { %10318 = vmatprep.subr.mxu0 %v11022_v6  ;;  %v3069_v23 = vmul.f32 %v10896_v37, %v11622_v1 }
 0x82e   : > { %10311 = vmatmul.mubr.msk.f32.vlgmr.msra.gmra.mrb[20].mxu0 %vm1109_vm3, %v2734_v29 }
 0x82f   : > { %10319 = vmatpush3.msra.mxu0 %v2904_v24  ;;  %10320 = vmatprep.mubr.msk.f32.mxu0 %vm11023_vm2, %v11022_v6  ;;  %v10898_v32 = vpop.eup %10897 }
 0x830   : > { %10328 = vmatprep.subr.mxu0 %v11022_v6  ;;  %v3236_v63 = vmul.f32 %v10898_v32, %v11626_v7  ;;  %v3568_v1 = vpop.xlane.xlu1 %3567 }
 0x832   : > { %10321 = vmatmul.mubr.msk.f32.vlgmr.msra.gmra.mrb[22].mxu0 %vm1109_vm3, %v2902_v15 }
 0x833   : > { %10329 = vmatpush3.msra.mxu0 %v3071_v60  ;;  %10330 = vmatprep.mubr.msk.f32.mxu0 %vm11023_vm2, %v11022_v6 }
 0x834   : > { %10338 = vmatprep.subr.mxu0 %v11022_v6  ;;  %v3572_v7 = vpop.permute.xlu1 %3571 }
 0x836   : > { %10331 = vmatmul.mubr.msk.f32.vlgmr.msra.gmra.mrb[24].mxu0 %vm1109_vm3, %v3069_v23 }
 0x837   : > { %10339 = vmatpush3.msra.mxu0 %v3238_v44  ;;  %10340 = vmatprep.mubr.msk.f32.mxu0 %vm11023_vm2, %v11022_v6  ;;  %v10698_v44 = vld [vmem:[%s11190_s18 + $0x8] sm:$0xff]   ;;  %s12698_s18 = sld [smem:[#allocation11_spill]] }
 0x838   : > { %10348 = vmatprep.subr.mxu0 %v11022_v6  ;;  %10376 = vmatpush3.bf16.msra.mxu1 %v10698_v44 }
 0x839   : > { %10377 = vmatprep.subr.bf16.mxu1 %v11022_v6 }
 0x83a   : > { %10341 = vmatmul.mubr.msk.f32.vlgmr.msra.gmra.mrb[26].mxu0 %vm1109_vm3, %v3236_v63 }
 0x83b   : > { %10349 = vmatpush3.msra.mxu0 %v3405_v0  ;;  %10350 = vmatprep.mubr.msk.f32.mxu0 %vm11023_vm2, %v11022_v6 }
 0x83c   : > { %10358 = vmatprep.subr.mxu0 %v11022_v6  ;;  %10378 = vmatpush3.bf16.msra.mxu1 %v10699_v61 }
 0x83d   : > { %10379 = vmatprep.subr.bf16.mxu1 %v11022_v6 }
 0x840   : > { %10380 = vmatpush3.bf16.msra.mxu1 %v10700_v47 }
 0x841   : > { %10397 = vmatprep.subr.bf16.mxu1 %v11022_v6 }
 0x851   : > { %v3401_v2 = vpop.xlane.xlu0 %3400 }
 0x852   : > { %10899 = vrcp.f32 %v3401_v2 }
 0x853   : > { %10901 = vrcp.f32 %v3568_v1 }
 0x855   : > { %v3735_v5 = vpop.xlane.xlu0 %3734 }
 0x856   : > { %10903 = vrcp.f32 %v3735_v5 }
 0x859   : > { %v3739_v41 = vpop.permute.xlu0 %3738 }
 0x85c   : > { %v10900_v8 = vpop.eup %10899 }
 0x85d   : > { %v3403_v9 = vmul.f32 %v10900_v8, %v11643_v62  ;;  %v10902_v11 = vpop.eup %10901 }
 0x85e   : > { %v3570_v14 = vmul.f32 %v10902_v11, %v11631_v12 }
 0x85f   : > { %10351 = vmatmul.mubr.msk.f32.vlgmr.msra.gmra.mrb[28].mxu0 %vm1109_vm3, %v3403_v9 }
 0x860   : > { %10359 = vmatpush3.msra.mxu0 %v3572_v7  ;;  %10360 = vmatprep.mubr.msk.f32.mxu0 %vm11023_vm2, %v11022_v6  ;;  %v10904_v18 = vpop.eup %10903 }
 0x861   : > { %10368 = vmatprep.subr.mxu0 %v11022_v6  ;;  %v3737_v54 = vmul.f32 %v10904_v18, %v11647_v27 }
 0x863   : > { %10361 = vmatmul.mubr.msk.f32.vlgmr.msra.gmra.mrb[30].mxu0 %vm1109_vm3, %v3570_v14 }
 0x864   : > { %10369 = vmatpush3.msra.mxu0 %v3739_v41  ;;  %10370 = vmatprep.mubr.msk.f32.mxu0 %vm11023_vm2, %v11022_v6 }
 0x865   : > { %10385 = vmatprep.subr.bf16.mxu0 %v11022_v6 }
 0x867   : > { %10371 = vmatmul.mubr.msk.f32.vlgmr.msra.gmra.mrb[32].mxu0 %vm1109_vm3, %v3737_v54 }
 0x868   : > { %10393 = vmatprep.mubr.msk.bf16.mxu0 %vm11023_vm2, %v11022_v6 }
 0x8b4   : > { %v1601_v46 = vpop.f32.mrb[6].mxu0 }
 0x8b5   : > { %v10242_v21 = vpop.f32.mrb[7].mxu0 }
 0x8b8   : > { %v1768_v12 = vpop.f32.mrb[8].mxu0 }
 0x8b9   : > { %v10252_v52 = vpop.f32.mrb[9].mxu0 }
 0x8bc   : > { %v1935_v22 = vpop.f32.mrb[10].mxu0 }
 0x8bd   : > { %v10262_v62 = vpop.f32.mrb[11].mxu0 }
 0x8c0   : > { %v2102_v28 = vpop.f32.mrb[12].mxu0 }
 0x8c1   : > { %v10272_v51 = vpop.f32.mrb[13].mxu0 }
 0x8c4   : > { %v2269_v31 = vpop.f32.mrb[14].mxu0 }
 0x8c5   : > { %v10282_v55 = vpop.f32.mrb[15].mxu0 }
 0x8f9   : > { %v2436_v33 = vpop.f32.mrb[16].mxu0 }
 0x8fa   : > { %v10292_v27 = vpop.f32.mrb[17].mxu0 }
 0x8fd   : > { %v2640_v34 = vpop.f32.mrb[18].mxu0 }
 0x8fe   : > { %v10302_v35 = vpop.f32.mrb[19].mxu0 }
 0x901   : > { %v2808_v38 = vpop.f32.mrb[20].mxu0 }
 0x902   : > { %v10615_v39 = vpack.i.bf16 %v2808_v38, %v11483_v36  ;;  %v10312_v40 = vpop.f32.mrb[21].mxu0 }
 0x903   : > { %v9598_v40 = vld [vmem:[%s12697_s5] ss:$0 sm:$0xff] }
 0x904   : > { %10616 = vrot.lane.b32.xlu1 %v10615_v39, %s11032_s30 }
 0x905   : > { %v2975_v42 = vpop.f32.mrb[22].mxu0 }
 0x906   : > { %v10620_v58 = vpack.i.bf16 %v2975_v42, %v1601_v46  ;;  %v10322_v13 = vpop.f32.mrb[23].mxu0 }
 0x908   : > { %10621 = vrot.lane.b32.xlu0 %v10620_v58, %s12651_s27  ;;  %s12701_s27 = scalar_lea.vmem %s12627_s7, %s11168_s29 }
 0x909   : > { %v3142_v20 = vpop.f32.mrb[24].mxu0 }
 0x90a   : > { %v10625_v59 = vpack.i.bf16 %v3142_v20, %v1768_v12  ;;  %v10332_v57 = vpop.f32.mrb[25].mxu0 }
 0x90b   : > { %v10981_v57 = vld [vmem:[#allocation2] sm:$0xff] }
 0x90c   : > { %10626 = vrot.lane.b32.xlu1 %v10625_v59, %s11030_s21 }
 0x90d   : > { %v3309_v36 = vpop.f32.mrb[26].mxu0 }
 0x90e   : > { %v10630_v60 = vpack.i.bf16 %v3309_v36, %v1935_v22  ;;  %v10342_v24 = vpop.f32.mrb[27].mxu0 }
 0x90f   : > { %v10982_v24 = vld [vmem:[#allocation2 + $0x8] sm:$0xff] }
 0x910   : > { %10631 = vrot.lane.b32.xlu0 %v10630_v60, %s11038_s20 }
 0x932   : > { %v3476_v45 = vpop.f32.mrb[28].mxu0 }
 0x933   : > { %v10635_v48 = vpack.i.bf16 %v3476_v45, %v2102_v28  ;;  %v10352_v26 = vpop.f32.mrb[29].mxu0 }
 0x935   : > { %10636 = vrot.lane.b32.xlu1 %v10635_v48, %s11028_s26 }
 0x936   : > { %v3643_v50 = vpop.f32.mrb[30].mxu0 }
 0x937   : > { %v10640_v3 = vpack.i.bf16 %v3643_v50, %v2269_v31  ;;  %v10362_v10 = vpop.f32.mrb[31].mxu0 }
 0x939   : > { %10641 = vrot.lane.b32.xlu0 %v10640_v3, %s11027_s17 }
 0x93a   : > { %v3810_v53 = vpop.f32.mrb[32].mxu0 }
 0x93b   : > { %v10645_v56 = vpack.i.bf16 %v3810_v53, %v2436_v33  ;;  %v10372_v30 = vpop.f32.mrb[33].mxu0 }
 0x93d   : > { %10646 = vrot.lane.b32.xlu1 %v10645_v56, %s11024_s14 }
 0x976   : > { %v10617_v29 = vpop.permute.xlu1 %10616 }
 0x977   : > { %v10619_v23 = vunpack.i.h.bf16 %v10617_v29  ;;  %v10618_v32 = vunpack.i.l.bf16 %v10617_v29  ;;  %v10701_v29 = vld [vmem:[%s11212_s0] sm:$0xff]  }
 0x979   : > { %v3842_v7 = vsel %vm1109_vm3, %v2640_v34, %v10619_v23  ;;  %v2468_v14 = vsel %vm1109_vm3, %v11343_v49, %v10618_v32  ;;  %v10705_v23 = vld [vmem:[%s11203_s22 + $0x8] sm:$0xff]   ;;  %v10706_v32 = vld [vmem:[%s11212_s0 + $0x18] sm:$0xff]  }
 0x97a   : > { %v10622_v25 = vpop.permute.xlu0 %10621 }
 0x97b   : > { %v10624_v63 = vunpack.i.h.bf16 %v10622_v25  ;;  %v10623_v0 = vunpack.i.l.bf16 %v10622_v25  ;;  %v10702_v25 = vld [vmem:[%s11212_s0 + $0x8] sm:$0xff]  }
 0x97d   : > { %v3843_v54 = vsel %vm2469_vm5, %v3842_v7, %v10624_v63  ;;  %v2470_v46 = vsel %vm2469_vm5, %v2468_v14, %v10623_v0  ;;  %v10707_v63 = vld [vmem:[%s11203_s22 + $0x10] sm:$0xff]   ;;  %v990_v0 = vld [vmem:[%s12698_s18] sm:$0xff] }
 0x97e   : > { %v10627_v15 = vpop.permute.xlu1 %10626 }
 0x97f   : > { %v10629_v2 = vunpack.i.h.bf16 %v10627_v15  ;;  %v10628_v5 = vunpack.i.l.bf16 %v10627_v15  ;;  %v10703_v15 = vld [vmem:[%s11203_s22] sm:$0xff]  }
 0x980   : > { %10386 = vmatpush3.bf16.msra.mxu0 %v10703_v15 }
 0x981   : > { %v3844_v52 = vsel %vm2471_vm6, %v3843_v54, %v10629_v2  ;;  %v2472_v22 = vsel %vm2471_vm6, %v2470_v46, %v10628_v5  ;;  %10387 = vmatprep.subr.bf16.mxu0 %v11022_v6  ;;  %v10708_v5 = vld [vmem:[%s11203_s22 + $0x18] sm:$0xff]  }
 0x982   : > { %v10632_v37 = vpop.permute.xlu0 %10631 }
 0x983   : > { %v10634_v8 = vunpack.i.h.bf16 %v10632_v37  ;;  %v10633_v9 = vunpack.i.l.bf16 %v10632_v37  ;;  %v10704_v37 = vld [vmem:[%s11212_s0 + $0x10] sm:$0xff]   ;;  %s12699_s0 = sld [smem:[#allocation16_spill]] }
 0x984   : > { %10388 = vmatpush3.bf16.msra.mxu0 %v10705_v23 }
 0x985   : > { %v3845_v62 = vsel %vm2473_vm7, %v3844_v52, %v10634_v8  ;;  %v2474_v28 = vsel %vm2473_vm7, %v2472_v22, %v10633_v9  ;;  %10389 = vmatprep.subr.bf16.mxu0 %v11022_v6  ;;  %v9605_v22 = vld [vmem:[%s12701_s27] ss:$0 sm:$0xff] }
 0x988   : > { %10390 = vmatpush3.bf16.msra.mxu0 %v10707_v63 }
 0x989   : > { %10391 = vmatprep.subr.bf16.mxu0 %v11022_v6  ;;  %s12700_s5 = scalar_lea.vmem %s12699_s0, %s11168_s29  ;;  %s12702_s0 = scalar_lea.vmem %s12631_s11, %s11168_s29 }
 0x98a   : > { %v9604_v46 = vld [vmem:[%s12700_s5] ss:$0 sm:$0xff] }
 0x98c   : > { %10392 = vmatpush3.bf16.msra.mxu0 %v10708_v5 }
 0x98d   : > { %10409 = vmatprep.subr.mxu0 %v11022_v6 }
 0x9a7   : > { %v10637_v1 = vpop.permute.xlu1 %10636 }
 0x9a8   : > { %v10639_v18 = vunpack.i.h.bf16 %v10637_v1  ;;  %v10638_v41 = vunpack.i.l.bf16 %v10637_v1  ;;  %v991_v1 = vld [vmem:[%s12698_s18 + $0x8] sm:$0xff] }
 0x9a9   : > { %v4064_v2 = vpack.c.bf16 %v991_v1, %v990_v0 }
 0x9aa   : > { %v3846_v51 = vsel %vm2475_vm8, %v3845_v62, %v10639_v18  ;;  %v2476_v31 = vsel %vm2475_vm8, %v2474_v28, %v10638_v41 }
 0x9ab   : > { %v10642_v11 = vpop.permute.xlu0 %10641 }
 0x9ac   : > { %v10644_v21 = vunpack.i.h.bf16 %v10642_v11  ;;  %v10643_v12 = vunpack.i.l.bf16 %v10642_v11 }
 0x9ae   : > { %v3847_v27 = vsel %vm2477_vm9, %v3846_v51, %v10644_v21  ;;  %v2478_v34 = vsel %vm2477_vm9, %v2476_v31, %v10643_v12  ;;  %v9612_v31 = vld [vmem:[%s12702_s0] ss:$0 sm:$0xff]  ;;  %s12713_s0 = sld [smem:[#allocation26_spill]] }
 0x9af   : > { %v10647_v49 = vpop.permute.xlu1 %10646 }
 0x9b0   : > { %v10649_v55 = vunpack.i.h.bf16 %v10647_v49  ;;  %v10648_v33 = vunpack.i.l.bf16 %v10647_v49 }
 0x9b2   : > { %v3848_v35 = vsel %vm2479_vm10, %v3847_v27, %v10649_v55  ;;  %v2480_v38 = vsel %vm2479_vm10, %v2478_v34, %v10648_v33 }
 0x9b3   : > { %v3849_v39 = vpack.c.bf16 %v3848_v35, %v2480_v38 }
 0x9b4   : > { %s12714_s27 = scalar_lea.vmem %s12713_s0, %s11168_s29 }
 0x9b5   : > { %10382 = vmatmul.mubr.msk.bf16.vlgmr.msra.gmra.mrb[36].mxu1 %vm1059_vm1, %v3849_v39  ;;  %v9606_v39 = vld [vmem:[%s12703_s4] ss:$0 sm:$0xff] }
 0x9b6   : > { %10405 = vmatprep.mubr.msk.bf16.mxu1 %vm11023_vm2, %v11022_v6  ;;  %10398 = vmatpush3.bf16.msra.mxu1 %v10701_v29 }
 0x9b7   : > { %10399 = vmatprep.subr.bf16.mxu1 %v11022_v6 }
 0x9ba   : > { %10400 = vmatpush3.bf16.msra.mxu1 %v10702_v25 }
 0x9bb   : > { %10401 = vmatprep.subr.bf16.mxu1 %v11022_v6 }
 0x9be   : > { %10402 = vmatpush3.bf16.msra.mxu1 %v10704_v37 }
 0x9bf   : > { %10403 = vmatprep.subr.bf16.mxu1 %v11022_v6 }
 0x9c2   : > { %10404 = vmatpush3.bf16.msra.mxu1 %v10706_v32 }
 0x9c3   : > { %10429 = vmatprep.subr.mxu1 %v11022_v6 }
 0x9c5   : > { %10406 = vmatmul.mubr.msk.bf16.vlgmr.msra.gmra.mrb[40].mxu1 %vm1059_vm1, %v4064_v2 }
 0x9c6   : > { %10431 = vmatprep.mubr.msk.f32.mxu1 %vm11023_vm2, %v11022_v6 }
 0xa88   : > { %v3926_v42 = vpop.f32.mrb[36].mxu1 }
 0xa89   : > { %v3927_v43 = vadd.f32 %v9598_v40, %v3926_v42  ;;  %v10383_v58 = vpop.f32.mrb[37].mxu1 }
 0xa8a   : > { %v3929_v13 = vpop.f32.mrb[38].mxu1 }
 0xa8b   : > { %v3930_v20 = vadd.f32 %v9598_v40, %v3929_v13  ;;  %v10384_v59 = vpop.f32.mrb[39].mxu1  ;;  %v3933_v36 = vadd.f32 %v10981_v57, %v3927_v43 }
 0xa8d   : > { %v3935_v60 = vsel %vm1059_vm1, %v3933_v36, 0.0  ;;  %v3934_v44 = vadd.f32 %v10982_v24, %v3930_v20 }
 0xa8e   : > { %3936 = vadd.xlane.f32.xlu0 %v3935_v60 }
 0xa8f   : > { %v3938_v61 = vsel %vm1059_vm1, %v3934_v44, 0.0 }
 0xa90   : > { %3939 = vadd.xlane.f32.xlu1 %v3938_v61 }
 0xa98   : > { %v4141_v55 = vpop.f32.mrb[40].mxu1 }
 0xa99   : > { %v11821_v33 = vadd.f32 %v9612_v31, %v4141_v55  ;;  %v10407_v27 = vpop.f32.mrb[41].mxu1 }
 0xa9a   : > { %v4144_v34 = vpop.f32.mrb[42].mxu1 }
 0xa9b   : > { %v11823_v35 = vadd.f32 %v9612_v31, %v4144_v34  ;;  %v10408_v38 = vpop.f32.mrb[43].mxu1 }
 0xb1b   : > { %v3937_v45 = vpop.xlane.xlu0 %3936 }
 0xb1c   : > { %v3942_v47 = vmul.f32 0.015625, %v3937_v45 }
 0xb1d   : > { %v3940_v48 = vpop.xlane.xlu1 %3939 }
 0xb1e   : > { %v3944_v26 = vsub.f32 %v3933_v36, %v3942_v47  ;;  %v3943_v50 = vmul.f32 0.015625, %v3940_v48 }
 0xb20   : > { %v3945_v3 = vsub.f32 %v3934_v44, %v3943_v50  ;;  %v3946_v10 = vmul.f32 %v3944_v26, %v3944_v26 }
 0xb22   : > { %v3948_v53 = vsel %vm1059_vm1, %v3946_v10, 0.0  ;;  %v3947_v56 = vmul.f32 %v3945_v3, %v3945_v3 }
 0xb23   : > { %3949 = vadd.xlane.f32.xlu0 %v3948_v53 }
 0xb24   : > { %v3951_v30 = vsel %vm1059_vm1, %v3947_v56, 0.0 }
 0xb27   : > { %3952 = vadd.xlane.f32.xlu0 %v3951_v30 }
 0xbb0   : > { %v3950_v8 = vpop.xlane.xlu0 %3949 }
 0xbb1   : > { %v3954_v9 = vmul.f32 0.015625, %v3950_v8 }
 0xbb3   : > { %v3956_v11 = vadd.f32 1e-05, %v3954_v9 }
 0xbb4   : > { %v3953_v7 = vpop.xlane.xlu0 %3952 }
 0xbb5   : > { %10905 = vrsqrt.f32 %v3956_v11  ;;  %v3955_v14 = vmul.f32 0.015625, %v3953_v7 }
 0xbb7   : > { %v3957_v18 = vadd.f32 1e-05, %v3955_v14 }
 0xbb9   : > { %10907 = vrsqrt.f32 %v3957_v18 }
 0xbbf   : > { %v10906_v41 = vpop.eup %10905 }
 0xbc0   : > { %v3960_v54 = vmul.f32 %v10906_v41, %v3944_v26 }
 0xbc2   : > { %v3969_v12 = vmul.f32 %v9604_v46, %v3960_v54 }
 0xbc3   : > { %v10908_v21 = vpop.eup %10907 }
 0xbc4   : > { %v3961_v52 = vmul.f32 %v10908_v21, %v3945_v3  ;;  %v11807_v28 = vadd.f32 %v9605_v22, %v3969_v12 }
 0xbc6   : > { %v3970_v62 = vmul.f32 %v9604_v46, %v3961_v52 }
 0xbc8   : > { %v11809_v49 = vadd.f32 %v9605_v22, %v3970_v62 }
 0xbca   : > { %v3980_v51 = vpack.c.bf16 %v11809_v49, %v11807_v28 }
 0xbcc   : > { %10394 = vmatmul.mubr.msk.bf16.vlgmr.msra.gmra.mrb[36].mxu0 %vm1059_vm1, %v3980_v51 }
 0xbcd   : > { %10411 = vmatprep.mubr.msk.f32.mxu0 %vm11023_vm2, %v11022_v6  ;;  %10410 = vmatpush3.xpose.msk.msra.mxu0 %vm1109_vm3, %v11821_v33 }
 0xbce   : > { %10414 = vmatprep.subr.mxu0 %v11022_v6 }
 0xc9f   : > { %v4057_v40 = vpop.f32.mrb[36].mxu0 }
 0xca0   : > { %v4058_v42 = vadd.f32 %v9606_v39, %v4057_v40  ;;  %v10395_v43 = vpop.f32.mrb[37].mxu0 }
 0xca1   : > { %v4060_v58 = vpop.f32.mrb[38].mxu0 }
 0xca2   : > { %v11833_v13 = vadd.f32 %v9606_v39, %v4060_v58  ;;  %v10396_v20 = vpop.f32.mrb[39].mxu0  ;;  %10412 = vmatmul.mubr.msk.f32.vlgmr.msra.gmra.mrb[34].mxu0 %vm1109_vm3, %v4058_v42 }
 0xca3   : > { %10416 = vmatprep.mubr.msk.f32.mxu0 %vm11023_vm2, %v11022_v6 }
 0xd75   : > { %v4220_v59 = vpop.f32.mrb[34].mxu0 }
 0xd76   : > { %v4224_v57 = vmul.f32 0.35355338, %v4220_v59  ;;  %v10413_v36 = vpop.f32.mrb[35].mxu0 }
 0xd78   : > { %v4225_v60 = vsel %vm1109_vm3, %v4224_v57, -inf }
 0xd79   : > { %4226 = vmax.xlane.f32.xlu1 %v4225_v60 }
 0xd8a   : > { %4236 = vrot.lane.b32.xlu1 %v11821_v33, %s11025_s15 }
 0xd8e   : > { %4312 = vrot.lane.b32.xlu1 %v4058_v42, %s11026_s16 }
 0xd92   : > { %4480 = vrot.lane.b32.xlu1 %v11821_v33, %s11029_s23 }
 0xd96   : > { %4646 = vrot.lane.b32.xlu1 %v11821_v33, %s11033_s10 }
 0xd9a   : > { %4812 = vrot.lane.b32.xlu1 %v11821_v33, %s11034_s2 }
 0xd9e   : > { %4978 = vrot.lane.b32.xlu1 %v11821_v33, %s11035_s24 }
 0xda2   : > { %5144 = vrot.lane.b32.xlu1 %v11821_v33, %s11036_s3 }
 0xda6   : > { %5310 = vrot.lane.b32.xlu1 %v11821_v33, %s11037_s25 }
 0xdaa   : > { %5675 = vrot.lane.b32.xlu1 %v11823_v35, %s11026_s16 }
 0xdae   : > { %5841 = vrot.lane.b32.xlu1 %v11823_v35, %s11029_s23 }
 0xdb2   : > { %6007 = vrot.lane.b32.xlu1 %v11823_v35, %s11033_s10 }
 0xdb6   : > { %6173 = vrot.lane.b32.xlu1 %v11823_v35, %s11034_s2 }
 0xdba   : > { %6339 = vrot.lane.b32.xlu1 %v11823_v35, %s11035_s24 }
 0xdbe   : > { %6505 = vrot.lane.b32.xlu1 %v11823_v35, %s11036_s3 }
 0xdc2   : > { %6671 = vrot.lane.b32.xlu1 %v11823_v35, %s11037_s25 }
 0xe06   : > { %v4227_v24 = vpop.xlane.xlu1 %4226 }
 0xe07   : > { %v4228_v44 = vsub.f32 %v4224_v57, %v4227_v24 }
 0xe09   : > { %v4229_v61 = vmul.f32 1.442695, %v4228_v44 }
 0xe0a   : > { %v4237_v45 = vpop.permute.xlu1 %4236 }
 0xe0b   : > { %10909 = vpow2.f32 %v4229_v61  ;;  %10415 = vmatpush3.msra.mxu0 %v4237_v45 }
 0xe0c   : > { %10419 = vmatprep.subr.mxu0 %v11022_v6 }
 0xe0e   : > { %v4313_v47 = vpop.permute.xlu1 %4312 }
 0xe12   : > { %v4481_v48 = vpop.permute.xlu1 %4480 }
 0xe13   : > { %10430 = vmatpush3.xpose.msk.msra.mxu1 %vm1109_vm3, %v4481_v48 }
 0xe14   : > { %10439 = vmatprep.subr.mxu1 %v11022_v6 }
 0xe15   : > { %v10910_v26 = vpop.eup %10909 }
 0xe16   : > { %v4231_v50 = vsel %vm1109_vm3, %v10910_v26, 0.0  ;;  %v4647_v3 = vpop.permute.xlu1 %4646 }
 0xe17   : > { %4232 = vadd.xlane.f32.xlu0 %v4231_v50 }
 0xe1a   : > { %v4813_v10 = vpop.permute.xlu1 %4812 }
 0xe1e   : > { %v4979_v56 = vpop.permute.xlu1 %4978 }
 0xe22   : > { %v5145_v25 = vpop.permute.xlu1 %5144 }
 0xe26   : > { %v5311_v32 = vpop.permute.xlu1 %5310 }
 0xe2a   : > { %v5676_v1 = vpop.permute.xlu1 %5675 }
 0xe2d   : > { %4314 = vrot.lane.b32.xlu0 %v11821_v33, %s11026_s16 }
 0xe2e   : > { %v5842_v5 = vpop.permute.xlu1 %5841 }
 0xe31   : > { %4478 = vrot.lane.b32.xlu0 %v4058_v42, %s11029_s23 }
 0xe32   : > { %v6008_v11 = vpop.permute.xlu1 %6007 }
 0xe35   : > { %4644 = vrot.lane.b32.xlu0 %v4058_v42, %s11033_s10 }
 0xe36   : > { %v6174_v14 = vpop.permute.xlu1 %6173 }
 0xe39   : > { %4810 = vrot.lane.b32.xlu0 %v4058_v42, %s11034_s2 }
 0xe3a   : > { %v6340_v54 = vpop.permute.xlu1 %6339 }
 0xe3d   : > { %4976 = vrot.lane.b32.xlu0 %v4058_v42, %s11035_s24 }
 0xe3e   : > { %v6506_v21 = vpop.permute.xlu1 %6505 }
 0xe41   : > { %5142 = vrot.lane.b32.xlu0 %v4058_v42, %s11036_s3 }
 0xe42   : > { %v6672_v52 = vpop.permute.xlu1 %6671 }
 0xe45   : > { %5308 = vrot.lane.b32.xlu0 %v4058_v42, %s11037_s25 }
 0xe49   : > { %5673 = vrot.lane.b32.xlu0 %v11833_v13, %s11026_s16  ;;  %s12704_s16 = smov 16  }
 0xe4d   : > { %5839 = vrot.lane.b32.xlu0 %v11833_v13, %s11029_s23 }
 0xe51   : > { %6005 = vrot.lane.b32.xlu0 %v11833_v13, %s11033_s10 }
 0xe55   : > { %6171 = vrot.lane.b32.xlu0 %v11833_v13, %s11034_s2 }
 0xe59   : > { %6337 = vrot.lane.b32.xlu0 %v11833_v13, %s11035_s24 }
 0xe5d   : > { %6503 = vrot.lane.b32.xlu0 %v11833_v13, %s11036_s3  ;;  %s12709_s3 = sld [smem:[#allocation21_spill]] }
 0xe61   : > { %6669 = vrot.lane.b32.xlu0 %v11833_v13, %s11037_s25 }
 0xe63   : > { %s12710_s25 = scalar_lea.vmem %s12709_s3, %s11168_s29 }
 0xea4   : > { %v4233_v53 = vpop.xlane.xlu0 %4232 }
 0xea5   : > { %10911 = vrcp.f32 %v4233_v53 }
 0xea8   : > { %v4315_v30 = vpop.permute.xlu0 %4314 }
 0xeac   : > { %v4479_v29 = vpop.permute.xlu0 %4478 }
 0xead   : > { %10432 = vmatmul.mubr.msk.f32.vlgmr.msra.gmra.mrb[34].mxu1 %vm1109_vm3, %v4479_v29 }
 0xeae   : > { %10440 = vmatpush3.xpose.msk.msra.mxu1 %vm1109_vm3, %v4647_v3  ;;  %10441 = vmatprep.mubr.msk.f32.mxu1 %vm11023_vm2, %v11022_v6 }
 0xeaf   : > { %v10912_v15 = vpop.eup %10911  ;;  %10449 = vmatprep.subr.mxu1 %v11022_v6 }
 0xeb0   : > { %v4235_v37 = vmul.f32 %v10912_v15, %v10910_v26  ;;  %v4645_v23 = vpop.permute.xlu0 %4644 }
 0xeb1   : > { %10442 = vmatmul.mubr.msk.f32.vlgmr.msra.gmra.mrb[44].mxu1 %vm1109_vm3, %v4645_v23 }
 0xeb2   : > { %10450 = vmatpush3.xpose.msk.msra.mxu1 %vm1109_vm3, %v4813_v10  ;;  %10417 = vmatmul.mubr.msk.f32.vlgmr.msra.gmra.mrb[40].mxu0 %vm1109_vm3, %v4235_v37 }
 0xeb3   : > { %10420 = vmatpush3.xpose.msk.msra.mxu0 %vm1109_vm3, %v4315_v30  ;;  %10451 = vmatprep.mubr.msk.f32.mxu1 %vm11023_vm2, %v11022_v6 }
 0xeb4   : > { %v4811_v63 = vpop.permute.xlu0 %4810  ;;  %10459 = vmatprep.subr.mxu1 %v11022_v6  ;;  %10421 = vmatprep.mubr.msk.f32.mxu0 %vm11023_vm2, %v11022_v6 }
 0xeb5   : > { %10452 = vmatmul.mubr.msk.f32.vlgmr.msra.gmra.mrb[46].mxu1 %vm1109_vm3, %v4811_v63  ;;  %10424 = vmatprep.subr.mxu0 %v11022_v6 }
 0xeb6   : > { %10460 = vmatpush3.xpose.msk.msra.mxu1 %vm1109_vm3, %v4979_v56  ;;  %10422 = vmatmul.mubr.msk.f32.vlgmr.msra.gmra.mrb[42].mxu0 %vm1109_vm3, %v4313_v47 }
 0xeb7   : > { %10461 = vmatprep.mubr.msk.f32.mxu1 %vm11023_vm2, %v11022_v6  ;;  %10469 = vmatprep.subr.mxu1 %v11022_v6 }
 0xeb8   : > { %v4977_v0 = vpop.permute.xlu0 %4976  ;;  %10426 = vmatprep.mubr.msk.f32.mxu0 %vm11023_vm2, %v11022_v6 }
 0xeb9   : > { %10462 = vmatmul.mubr.msk.f32.vlgmr.msra.gmra.mrb[48].mxu1 %vm1109_vm3, %v4977_v0 }
 0xeba   : > { %10470 = vmatpush3.xpose.msk.msra.mxu1 %vm1109_vm3, %v5145_v25  ;;  %10471 = vmatprep.mubr.msk.f32.mxu1 %vm11023_vm2, %v11022_v6 }
 0xebb   : > { %10479 = vmatprep.subr.mxu1 %v11022_v6 }
 0xebc   : > { %v5143_v2 = vpop.permute.xlu0 %5142 }
 0xebd   : > { %10472 = vmatmul.mubr.msk.f32.vlgmr.msra.gmra.mrb[50].mxu1 %vm1109_vm3, %v5143_v2 }
 0xebe   : > { %10480 = vmatpush3.xpose.msk.msra.mxu1 %vm1109_vm3, %v5311_v32  ;;  %10481 = vmatprep.mubr.msk.f32.mxu1 %vm11023_vm2, %v11022_v6 }
 0xebf   : > { %10489 = vmatprep.subr.mxu1 %v11022_v6 }
 0xec0   : > { %v5309_v8 = vpop.permute.xlu0 %5308 }
 0xec1   : > { %10482 = vmatmul.mubr.msk.f32.vlgmr.msra.gmra.mrb[52].mxu1 %vm1109_vm3, %v5309_v8 }
 0xec2   : > { %10490 = vmatpush3.xpose.msk.msra.mxu1 %vm1109_vm3, %v11823_v35  ;;  %10491 = vmatprep.mubr.msk.f32.mxu1 %vm11023_vm2, %v11022_v6 }
 0xec3   : > { %10499 = vmatprep.subr.mxu1 %v11022_v6 }
 0xec4   : > { %v5674_v9 = vpop.permute.xlu0 %5673 }
 0xec5   : > { %10492 = vmatmul.mubr.msk.f32.vlgmr.msra.gmra.mrb[54].mxu1 %vm1109_vm3, %v11833_v13 }
 0xec6   : > { %10500 = vmatpush3.xpose.msk.msra.mxu1 %vm1109_vm3, %v5676_v1  ;;  %10501 = vmatprep.mubr.msk.f32.mxu1 %vm11023_vm2, %v11022_v6 }
 0xec7   : > { %10509 = vmatprep.subr.mxu1 %v11022_v6 }
 0xec8   : > { %v5840_v7 = vpop.permute.xlu0 %5839 }
 0xec9   : > { %10502 = vmatmul.mubr.msk.f32.vlgmr.msra.gmra.mrb[56].mxu1 %vm1109_vm3, %v5674_v9 }
 0xeca   : > { %10510 = vmatpush3.xpose.msk.msra.mxu1 %vm1109_vm3, %v5842_v5  ;;  %10511 = vmatprep.mubr.msk.f32.mxu1 %vm11023_vm2, %v11022_v6 }
 0xecb   : > { %10519 = vmatprep.subr.mxu1 %v11022_v6 }
 0xecc   : > { %v6006_v18 = vpop.permute.xlu0 %6005 }
 0xecd   : > { %10512 = vmatmul.mubr.msk.f32.vlgmr.msra.gmra.mrb[58].mxu1 %vm1109_vm3, %v5840_v7 }
 0xece   : > { %10520 = vmatpush3.xpose.msk.msra.mxu1 %vm1109_vm3, %v6008_v11  ;;  %10521 = vmatprep.mubr.msk.f32.mxu1 %vm11023_vm2, %v11022_v6 }
 0xecf   : > { %10529 = vmatprep.subr.mxu1 %v11022_v6 }
 0xed0   : > { %v6172_v41 = vpop.permute.xlu0 %6171 }
 0xed1   : > { %10522 = vmatmul.mubr.msk.f32.vlgmr.msra.gmra.mrb[60].mxu1 %vm1109_vm3, %v6006_v18 }
 0xed2   : > { %10530 = vmatpush3.xpose.msk.msra.mxu1 %vm1109_vm3, %v6174_v14  ;;  %10531 = vmatprep.mubr.msk.f32.mxu1 %vm11023_vm2, %v11022_v6 }
 0xed3   : > { %10539 = vmatprep.subr.mxu1 %v11022_v6 }
 0xed4   : > { %v6338_v46 = vpop.permute.xlu0 %6337 }
 0xed5   : > { %10532 = vmatmul.mubr.msk.f32.vlgmr.msra.gmra.mrb[62].mxu1 %vm1109_vm3, %v6172_v41 }
 0xed6   : > { %10540 = vmatpush3.xpose.msk.msra.mxu1 %vm1109_vm3, %v6340_v54  ;;  %10541 = vmatprep.mubr.msk.f32.mxu1 %vm11023_vm2, %v11022_v6 }
 0xed7   : > { %10549 = vmatprep.subr.mxu1 %v11022_v6 }
 0xed8   : > { %v6504_v12 = vpop.permute.xlu0 %6503 }
 0xed9   : > { %10542 = vmatmul.mubr.msk.f32.vlgmr.msra.gmra.mrb[64].mxu1 %vm1109_vm3, %v6338_v46 }
 0xeda   : > { %10550 = vmatpush3.xpose.msk.msra.mxu1 %vm1109_vm3, %v6506_v21  ;;  %10551 = vmatprep.mubr.msk.f32.mxu1 %vm11023_vm2, %v11022_v6 }
 0xedb   : > { %10559 = vmatprep.subr.mxu1 %v11022_v6 }
 0xedc   : > { %v6670_v22 = vpop.permute.xlu0 %6669 }
 0xedd   : > { %10552 = vmatmul.mubr.msk.f32.vlgmr.msra.gmra.mrb[66].mxu1 %vm1109_vm3, %v6504_v12 }
 0xede   : > { %10560 = vmatpush3.xpose.msk.msra.mxu1 %vm1109_vm3, %v6672_v52  ;;  %10561 = vmatprep.mubr.msk.f32.mxu1 %vm11023_vm2, %v11022_v6 }
 0xedf   : > { %10569 = vmatprep.subr.bf16.mxu1 %v11022_v6 }
 0xee1   : > { %10562 = vmatmul.mubr.msk.f32.vlgmr.msra.gmra.mrb[68].mxu1 %vm1109_vm3, %v6670_v22 }
 0xee2   : > { %10577 = vmatprep.mubr.msk.bf16.mxu1 %vm11023_vm2, %v11022_v6 }
 0xf80   : > { %v4552_v62 = vpop.f32.mrb[34].mxu1 }
 0xf81   : > { %v11972_v51 = vmul.f32 0.35355338, %v4552_v62  ;;  %v10433_v31 = vpop.f32.mrb[35].mxu1 }
 0xf83   : > { %v4557_v55 = vsel %vm1109_vm3, %v11972_v51, -inf }
 0xf84   : > { %4558 = vmax.xlane.f32.xlu0 %v4557_v55  ;;  %v4718_v27 = vpop.f32.mrb[44].mxu1 }
 0xf85   : > { %v11976_v34 = vmul.f32 0.35355338, %v4718_v27  ;;  %v11978_v38 = vpop.f32.mrb[40].mxu0  ;;  %v10443_v39 = vpop.f32.mrb[45].mxu1 }
 0xf86   : > { %v10418_v40 = vpop.f32.mrb[41].mxu0 }
 0xf87   : > { %v4723_v42 = vsel %vm1109_vm3, %v11976_v34, -inf }
 0xf88   : > { %4724 = vmax.xlane.f32.xlu0 %v4723_v42  ;;  %v4884_v43 = vpop.f32.mrb[46].mxu1 }
 0xf89   : > { %v11982_v58 = vmul.f32 0.35355338, %v4884_v43  ;;  %v11984_v13 = vpop.f32.mrb[42].mxu0  ;;  %v10453_v20 = vpop.f32.mrb[47].mxu1 }
 0xf8a   : > { %v10423_v59 = vpop.f32.mrb[43].mxu0 }
 0xf8b   : > { %v4889_v57 = vsel %vm1109_vm3, %v11982_v58, -inf }
 0xf8c   : > { %4890 = vmax.xlane.f32.xlu1 %v4889_v57  ;;  %v5050_v36 = vpop.f32.mrb[48].mxu1 }
 0xf8d   : > { %v11988_v60 = vmul.f32 0.35355338, %v5050_v36  ;;  %v10463_v24 = vpop.f32.mrb[49].mxu1 }
 0xf8f   : > { %v5055_v44 = vsel %vm1109_vm3, %v11988_v60, -inf }
 0xf90   : > { %5056 = vmax.xlane.f32.xlu0 %v5055_v44  ;;  %v5216_v61 = vpop.f32.mrb[50].mxu1 }
 0xf91   : > { %v11992_v45 = vmul.f32 0.35355338, %v5216_v61  ;;  %v10473_v47 = vpop.f32.mrb[51].mxu1 }
 0xf93   : > { %v5221_v48 = vsel %vm1109_vm3, %v11992_v45, -inf }
 0xf94   : > { %5222 = vmax.xlane.f32.xlu1 %v5221_v48  ;;  %v5382_v26 = vpop.f32.mrb[52].mxu1 }
 0xf95   : > { %v11996_v50 = vmul.f32 0.35355338, %v5382_v26  ;;  %v10483_v3 = vpop.f32.mrb[53].mxu1 }
 0xf97   : > { %v5387_v10 = vsel %vm1109_vm3, %v11996_v50, -inf }
 0xf98   : > { %5388 = vmax.xlane.f32.xlu0 %v5387_v10  ;;  %v5581_v53 = vpop.f32.mrb[54].mxu1 }
 0xf99   : > { %v12000_v56 = vmul.f32 0.35355338, %v5581_v53  ;;  %v10493_v30 = vpop.f32.mrb[55].mxu1 }
 0xf9b   : > { %v5586_v29 = vsel %vm1109_vm3, %v12000_v56, -inf }
 0xf9c   : > { %5587 = vmax.xlane.f32.xlu1 %v5586_v29  ;;  %v5747_v25 = vpop.f32.mrb[56].mxu1 }
 0xf9d   : > { %v12004_v15 = vmul.f32 0.35355338, %v5747_v25  ;;  %v10503_v37 = vpop.f32.mrb[57].mxu1 }
 0xf9f   : > { %v5752_v23 = vsel %vm1109_vm3, %v12004_v15, -inf }
 0xfa0   : > { %5753 = vmax.xlane.f32.xlu0 %v5752_v23  ;;  %v5913_v32 = vpop.f32.mrb[58].mxu1 }
 0xfa1   : > { %v12008_v63 = vmul.f32 0.35355338, %v5913_v32  ;;  %v10513_v0 = vpop.f32.mrb[59].mxu1 }
 0xfa3   : > { %v5918_v1 = vsel %vm1109_vm3, %v12008_v63, -inf }
 0xfa4   : > { %5919 = vmax.xlane.f32.xlu1 %v5918_v1  ;;  %v6079_v2 = vpop.f32.mrb[60].mxu1 }
 0xfa5   : > { %v12012_v5 = vmul.f32 0.35355338, %v6079_v2  ;;  %v10523_v8 = vpop.f32.mrb[61].mxu1 }
 0xfa7   : > { %v6084_v9 = vsel %vm1109_vm3, %v12012_v5, -inf }
 0xfa8   : > { %6085 = vmax.xlane.f32.xlu0 %v6084_v9  ;;  %v6245_v11 = vpop.f32.mrb[62].mxu1 }
 0xfa9   : > { %v12016_v7 = vmul.f32 0.35355338, %v6245_v11  ;;  %v10533_v14 = vpop.f32.mrb[63].mxu1 }
 0xfab   : > { %v6250_v18 = vsel %vm1109_vm3, %v12016_v7, -inf }
 0xfac   : > { %6251 = vmax.xlane.f32.xlu1 %v6250_v18  ;;  %v6411_v41 = vpop.f32.mrb[64].mxu1 }
 0xfad   : > { %v10543_v54 = vpop.f32.mrb[65].mxu1  ;;  %v12026_v22 = vmul.f32 0.35355338, %v6411_v41 }
 0xfaf   : > { %v6416_v31 = vsel %vm1109_vm3, %v12026_v22, -inf }
 0xfb0   : > { %v6577_v46 = vpop.f32.mrb[66].mxu1 }
 0xfb1   : > { %v10553_v21 = vpop.f32.mrb[67].mxu1  ;;  %v12032_v55 = vmul.f32 0.35355338, %v6577_v46 }
 0xfb3   : > { %v6582_v39 = vsel %vm1109_vm3, %v12032_v55, -inf }
 0xfb4   : > { %v6743_v12 = vpop.f32.mrb[68].mxu1 }
 0xfb5   : > { %v10563_v52 = vpop.f32.mrb[69].mxu1  ;;  %v12028_v62 = vmul.f32 0.35355338, %v6743_v12 }
 0xfb7   : > { %v6748_v27 = vsel %vm1109_vm3, %v12028_v62, -inf }
 0xfbd   : > { %4568 = vrot.lane.b32.xlu1 %v11821_v33, %s11027_s17 }
 0xfbe   : > { %4402 = vrot.lane.b32.xlu0 %v11821_v33, %s11024_s14 }
 0xfc1   : > { %4734 = vrot.lane.b32.xlu1 %v11821_v33, %s11028_s26 }
 0xfdd   : > { %6417 = vmax.xlane.f32.xlu0 %v6416_v31 }
 0xfe1   : > { %6749 = vmax.xlane.f32.xlu0 %v6748_v27 }
 0xfe5   : > { %6583 = vmax.xlane.f32.xlu1 %v6582_v39 }
 0xff7   : > { %4900 = vrot.lane.b32.xlu0 %v11821_v33, %s11038_s20 }
0x1011   : > { %v4559_v40 = vpop.xlane.xlu0 %4558 }
0x1012   : > { %v4560_v42 = vsub.f32 %v11972_v51, %v4559_v40 }
0x1014   : > { %v4561_v43 = vmul.f32 1.442695, %v4560_v42 }
0x1015   : > { %v4725_v20 = vpop.xlane.xlu0 %4724 }
0x1016   : > { %10913 = vpow2.f32 %v4561_v43  ;;  %v4726_v59 = vsub.f32 %v11976_v34, %v4725_v20 }
0x1018   : > { %v4727_v57 = vmul.f32 1.442695, %v4726_v59 }
0x1019   : > { %v4891_v36 = vpop.xlane.xlu1 %4890 }
0x101a   : > { %10915 = vpow2.f32 %v4727_v57  ;;  %v4892_v24 = vsub.f32 %v11982_v58, %v4891_v36 }
0x101c   : > { %v4893_v44 = vmul.f32 1.442695, %v4892_v24 }
0x101d   : > { %v5057_v61 = vpop.xlane.xlu0 %5056 }
0x101e   : > { %10917 = vpow2.f32 %v4893_v44  ;;  %v5058_v47 = vsub.f32 %v11988_v60, %v5057_v61 }
0x1020   : > { %v12044_v48 = vpop.eup %10913  ;;  %v5059_v26 = vmul.f32 1.442695, %v5058_v47 }
0x1021   : > { %v5223_v3 = vpop.xlane.xlu1 %5222  ;;  %v4563_v51 = vsel %vm1109_vm3, %v12044_v48, 0.0 }
0x1022   : > { %10919 = vpow2.f32 %v5059_v26  ;;  %v5224_v34 = vsub.f32 %v11992_v45, %v5223_v3  ;;  %4564 = vadd.xlane.f32.xlu0 %v4563_v51 }
0x1024   : > { %v12049_v10 = vpop.eup %10915  ;;  %v5225_v53 = vmul.f32 1.442695, %v5224_v34 }
0x1025   : > { %v5389_v58 = vpop.xlane.xlu0 %5388  ;;  %v4729_v30 = vsel %vm1109_vm3, %v12049_v10, 0.0 }
0x1026   : > { %10921 = vpow2.f32 %v5225_v53  ;;  %v5390_v60 = vsub.f32 %v11996_v50, %v5389_v58  ;;  %4730 = vadd.xlane.f32.xlu1 %v4729_v30 }
0x1028   : > { %v12054_v29 = vpop.eup %10917  ;;  %v5391_v25 = vmul.f32 1.442695, %v5390_v60 }
0x1029   : > { %v5588_v37 = vpop.xlane.xlu1 %5587  ;;  %v4895_v23 = vsel %vm1109_vm3, %v12054_v29, 0.0 }
0x102a   : > { %10923 = vpow2.f32 %v5391_v25  ;;  %v5589_v45 = vsub.f32 %v12000_v56, %v5588_v37  ;;  %4896 = vadd.xlane.f32.xlu0 %v4895_v23 }
0x102c   : > { %v12059_v32 = vpop.eup %10919  ;;  %v5590_v0 = vmul.f32 1.442695, %v5589_v45 }
0x102d   : > { %v5754_v1 = vpop.xlane.xlu0 %5753  ;;  %v5061_v2 = vsel %vm1109_vm3, %v12059_v32, 0.0 }
0x102e   : > { %10925 = vpow2.f32 %v5590_v0  ;;  %v5755_v50 = vsub.f32 %v12004_v15, %v5754_v1  ;;  %5062 = vadd.xlane.f32.xlu1 %v5061_v2 }
0x1030   : > { %v12064_v8 = vpop.eup %10921  ;;  %v5756_v9 = vmul.f32 1.442695, %v5755_v50 }
0x1031   : > { %v5920_v11 = vpop.xlane.xlu1 %5919  ;;  %v5227_v14 = vsel %vm1109_vm3, %v12064_v8, 0.0 }
0x1032   : > { %10927 = vpow2.f32 %v5756_v9  ;;  %v5921_v56 = vsub.f32 %v12008_v63, %v5920_v11  ;;  %5228 = vadd.xlane.f32.xlu0 %v5227_v14 }
0x1034   : > { %v12069_v18 = vpop.eup %10923  ;;  %v5922_v41 = vmul.f32 1.442695, %v5921_v56 }
0x1035   : > { %v6086_v54 = vpop.xlane.xlu0 %6085  ;;  %v5393_v46 = vsel %vm1109_vm3, %v12069_v18, 0.0 }
0x1036   : > { %10929 = vpow2.f32 %v5922_v41  ;;  %v6087_v15 = vsub.f32 %v12012_v5, %v6086_v54  ;;  %5394 = vadd.xlane.f32.xlu1 %v5393_v46 }
0x1038   : > { %v12074_v21 = vpop.eup %10925  ;;  %v6088_v12 = vmul.f32 1.442695, %v6087_v15 }
0x1039   : > { %v4403_v52 = vpop.permute.xlu0 %4402  ;;  %v6252_v31 = vpop.xlane.xlu1 %6251  ;;  %v5592_v63 = vsel %vm1109_vm3, %v12074_v21, 0.0 }
0x103a   : > { %10931 = vpow2.f32 %v6088_v12  ;;  %v6253_v27 = vsub.f32 %v12016_v7, %v6252_v31  ;;  %10425 = vmatpush3.msra.mxu0 %v4403_v52  ;;  %5593 = vadd.xlane.f32.xlu1 %v5592_v63  ;;  %v4390_v7 = vmul.f32 0.35355338, %v11984_v13 }
0x103b   : > { %10434 = vmatprep.subr.mxu0 %v11022_v6 }
0x103c   : > { %v12080_v39 = vpop.eup %10927  ;;  %v6254_v40 = vmul.f32 1.442695, %v6253_v27  ;;  %v4391_v24 = vsel %vm1109_vm3, %v4390_v7, -inf }
0x103d   : > { %v5758_v5 = vsel %vm1109_vm3, %v12080_v39, 0.0  ;;  %v4569_v13 = vpop.permute.xlu1 %4568 }
0x103e   : > { %10933 = vpow2.f32 %v6254_v40  ;;  %5759 = vadd.xlane.f32.xlu0 %v5758_v5 }
0x1040   : > { %v12084_v42 = vpop.eup %10929 }
0x1041   : > { %v5924_v43 = vsel %vm1109_vm3, %v12084_v42, 0.0  ;;  %v4735_v44 = vpop.permute.xlu1 %4734 }
0x1042   : > { %5925 = vadd.xlane.f32.xlu1 %v5924_v43 }
0x1044   : > { %v12088_v20 = vpop.eup %10931 }
0x1045   : > { %v6090_v59 = vsel %vm1109_vm3, %v12088_v20, 0.0 }
0x1046   : > { %6091 = vadd.xlane.f32.xlu1 %v6090_v59 }
0x1048   : > { %v12093_v57 = vpop.eup %10933 }
0x1049   : > { %v6256_v36 = vsel %vm1109_vm3, %v12093_v57, 0.0 }
0x104a   : > { %6257 = vadd.xlane.f32.xlu0 %v6256_v36  ;;  %4392 = vmax.xlane.f32.xlu1 %v4391_v24 }
0x105b   : > { %5066 = vrot.lane.b32.xlu1 %v11821_v33, %s11030_s21 }
0x1060   : > { %5398 = vrot.lane.b32.xlu0 %v11821_v33, %s11032_s30 }
0x1064   : > { %5597 = vrot.lane.b32.xlu0 %v11823_v35, %s11025_s15  ;;  %s12705_s15 = scalar_lea.vmem %s12633_s13, %s11168_s29 }
0x1068   : > { %5763 = vrot.lane.b32.xlu0 %v11823_v35, %s11024_s14 }
0x106a   : > { %v6418_v23 = vpop.xlane.xlu0 %6417 }
0x106b   : > { %v6419_v45 = vsub.f32 %v12026_v22, %v6418_v23 }
0x106c   : > { %6095 = vrot.lane.b32.xlu0 %v11823_v35, %s11028_s26 }
0x106d   : > { %v6420_v0 = vmul.f32 1.442695, %v6419_v45 }
0x106e   : > { %v6750_v2 = vpop.xlane.xlu0 %6749 }
0x106f   : > { %v6751_v50 = vsub.f32 %v12028_v62, %v6750_v2 }
0x1070   : > { %6261 = vrot.lane.b32.xlu0 %v11823_v35, %s11038_s20 }
0x1071   : > { %v6752_v11 = vmul.f32 1.442695, %v6751_v50 }
0x1072   : > { %v6584_v61 = vpop.xlane.xlu1 %6583  ;;  %v4901_v41 = vpop.permute.xlu0 %4900 }
0x1073   : > { %v6585_v1 = vsub.f32 %v12032_v55, %v6584_v61 }
0x1074   : > { %6427 = vrot.lane.b32.xlu0 %v11823_v35, %s11030_s21 }
0x1075   : > { %v6586_v9 = vmul.f32 1.442695, %v6585_v1 }
0x1078   : > { %6593 = vrot.lane.b32.xlu0 %v11823_v35, %s12704_s16 }
0x10af   : > { %v4565_v46 = vpop.xlane.xlu0 %4564 }
0x10b3   : > { %v4731_v47 = vpop.xlane.xlu1 %4730 }
0x10b7   : > { %v4897_v12 = vpop.xlane.xlu0 %4896 }
0x10bb   : > { %v5063_v26 = vpop.xlane.xlu1 %5062 }
0x10bf   : > { %v5229_v27 = vpop.xlane.xlu0 %5228 }
0x10c3   : > { %v12114_v3 = vpop.xlane.xlu1 %5394 }
0x10c7   : > { %v12116_v51 = vpop.xlane.xlu1 %5593 }
0x10cb   : > { %v5760_v43 = vpop.xlane.xlu0 %5759 }
0x10cf   : > { %v12118_v34 = vpop.xlane.xlu1 %5925 }
0x10d3   : > { %v12120_v53 = vpop.xlane.xlu1 %6091 }
0x10d7   : > { %v4393_v58 = vpop.xlane.xlu1 %4392  ;;  %v6258_v59 = vpop.xlane.xlu0 %6257 }
0x10d8   : > { %v4394_v30 = vsub.f32 %v4390_v7, %v4393_v58 }
0x10da   : > { %v4395_v60 = vmul.f32 1.442695, %v4394_v30 }
0x10db   : > { %v5067_v54 = vpop.permute.xlu1 %5066 }
0x10dc   : > { %10935 = vpow2.f32 %v4395_v60 }
0x10dd   : > { %10937 = vpow2.f32 %v6420_v0 }
0x10de   : > { %10939 = vpow2.f32 %v6586_v9 }
0x10df   : > { %10941 = vpow2.f32 %v6752_v11 }
0x10e6   : > { %v10936_v25 = vpop.eup %10935 }
0x10e7   : > { %v4397_v37 = vsel %vm1109_vm3, %v10936_v25, 0.0  ;;  %v12128_v14 = vpop.eup %10937 }
0x10e8   : > { %4398 = vadd.xlane.f32.xlu1 %v4397_v37  ;;  %v6422_v56 = vsel %vm1109_vm3, %v12128_v14, 0.0 }
0x10f9   : > { %5232 = vrot.lane.b32.xlu1 %v11821_v33, %s12704_s16  ;;  %v12132_v33 = vpop.eup %10939 }
0x10fa   : > { %v6588_v22 = vsel %vm1109_vm3, %v12132_v33, 0.0  ;;  %v12136_v55 = vpop.eup %10941 }
0x10fb   : > { %v6754_v62 = vsel %vm1109_vm3, %v12136_v55, 0.0 }
0x111d   : > { %6423 = vadd.xlane.f32.xlu1 %v6422_v56 }
0x1121   : > { %6589 = vadd.xlane.f32.xlu1 %v6588_v22 }
0x1125   : > { %6755 = vadd.xlane.f32.xlu1 %v6754_v62 }
0x1136   : > { %5929 = vrot.lane.b32.xlu1 %v11823_v35, %s11027_s17 }
0x113a   : > { %6759 = vrot.lane.b32.xlu1 %v11823_v35, %s11032_s30 }
0x1175   : > { %v4399_v15 = vpop.xlane.xlu1 %4398 }
0x1176   : > { %10943 = vrcp.f32 %v4399_v15 }
0x1177   : > { %10945 = vrcp.f32 %v4565_v46 }
0x1178   : > { %10947 = vrcp.f32 %v4731_v47 }
0x1179   : > { %10949 = vrcp.f32 %v4897_v12 }
0x117a   : > { %10951 = vrcp.f32 %v5063_v26 }
0x117b   : > { %10953 = vrcp.f32 %v5229_v27 }
0x117c   : > { %10955 = vrcp.f32 %v12114_v3 }
0x117d   : > { %10957 = vrcp.f32 %v12116_v51 }
0x117e   : > { %10959 = vrcp.f32 %v5760_v43 }
0x117f   : > { %10961 = vrcp.f32 %v12118_v34 }
0x1180   : > { %v10944_v52 = vpop.eup %10943  ;;  %10963 = vrcp.f32 %v12120_v53 }
0x1181   : > { %v4401_v31 = vmul.f32 %v10944_v52, %v10936_v25  ;;  %v10946_v63 = vpop.eup %10945  ;;  %10965 = vrcp.f32 %v6258_v59  ;;  %v10709_v59 = vld [vmem:[%s11221_s6] sm:$0xff]  }
0x1182   : > { %v4567_v35 = vmul.f32 %v10946_v63, %v12044_v48  ;;  %v10948_v40 = vpop.eup %10947  ;;  %10570 = vmatpush3.bf16.msra.mxu1 %v10709_v59 }
0x1183   : > { %10427 = vmatmul.mubr.msk.f32.vlgmr.msra.gmra.mrb[44].mxu0 %vm1109_vm3, %v4401_v31  ;;  %v4733_v5 = vmul.f32 %v10948_v40, %v12049_v10  ;;  %v10950_v7 = vpop.eup %10949  ;;  %10571 = vmatprep.subr.bf16.mxu1 %v11022_v6 }
0x1184   : > { %10435 = vmatpush3.msra.mxu0 %v4569_v13  ;;  %10436 = vmatprep.mubr.msk.f32.mxu0 %vm11023_vm2, %v11022_v6  ;;  %v4899_v48 = vmul.f32 %v10950_v7, %v12054_v29  ;;  %v10952_v36 = vpop.eup %10951  ;;  %v5399_v13 = vpop.permute.xlu0 %5398 }
0x1185   : > { %10444 = vmatprep.subr.mxu0 %v11022_v6  ;;  %v5065_v10 = vmul.f32 %v10952_v36, %v12059_v32  ;;  %v10954_v24 = vpop.eup %10953 }
0x1186   : > { %v5231_v29 = vmul.f32 %v10954_v24, %v12064_v8  ;;  %v10956_v61 = vpop.eup %10955 }
0x1187   : > { %10437 = vmatmul.mubr.msk.f32.vlgmr.msra.gmra.mrb[46].mxu0 %vm1109_vm3, %v4567_v35  ;;  %v5397_v32 = vmul.f32 %v10956_v61, %v12069_v18  ;;  %v10958_v26 = vpop.eup %10957 }
0x1188   : > { %10445 = vmatpush3.msra.mxu0 %v4735_v44  ;;  %10446 = vmatprep.mubr.msk.f32.mxu0 %vm11023_vm2, %v11022_v6  ;;  %v5233_v44 = vpop.permute.xlu1 %5232  ;;  %v5598_v47 = vpop.permute.xlu0 %5597  ;;  %v5596_v8 = vmul.f32 %v10958_v26, %v12074_v21 }
0x1189   : > { %10454 = vmatprep.subr.mxu0 %v11022_v6  ;;  %v10960_v3 = vpop.eup %10959 }
0x118a   : > { %v5762_v18 = vmul.f32 %v10960_v3, %v12080_v39  ;;  %v10962_v25 = vpop.eup %10961  ;;  %v10712_v3 = vld [vmem:[%s11221_s6 + $0x18] sm:$0xff]  }
0x118b   : > { %10447 = vmatmul.mubr.msk.f32.vlgmr.msra.gmra.mrb[48].mxu0 %vm1109_vm3, %v4733_v5  ;;  %v5928_v39 = vmul.f32 %v10962_v25, %v12084_v42  ;;  %v10964_v23 = vpop.eup %10963 }
0x118c   : > { %10455 = vmatpush3.msra.mxu0 %v4901_v41  ;;  %10456 = vmatprep.mubr.msk.f32.mxu0 %vm11023_vm2, %v11022_v6  ;;  %v5764_v51 = vpop.permute.xlu0 %5763  ;;  %v6094_v34 = vmul.f32 %v10964_v23, %v12088_v20  ;;  %v10966_v53 = vpop.eup %10965 }
0x118d   : > { %10464 = vmatprep.subr.mxu0 %v11022_v6  ;;  %v6260_v42 = vmul.f32 %v10966_v53, %v12093_v57 }
0x118f   : > { %10457 = vmatmul.mubr.msk.f32.vlgmr.msra.gmra.mrb[50].mxu0 %vm1109_vm3, %v4899_v48 }
0x1190   : > { %10465 = vmatpush3.msra.mxu0 %v5067_v54  ;;  %10466 = vmatprep.mubr.msk.f32.mxu0 %vm11023_vm2, %v11022_v6  ;;  %v6096_v30 = vpop.permute.xlu0 %6095 }
0x1191   : > { %10474 = vmatprep.subr.mxu0 %v11022_v6 }
0x1193   : > { %10467 = vmatmul.mubr.msk.f32.vlgmr.msra.gmra.mrb[52].mxu0 %vm1109_vm3, %v5065_v10 }
0x1194   : > { %10475 = vmatpush3.msra.mxu0 %v5233_v44  ;;  %10476 = vmatprep.mubr.msk.f32.mxu0 %vm11023_vm2, %v11022_v6  ;;  %v6262_v45 = vpop.permute.xlu0 %6261 }
0x1195   : > { %10484 = vmatprep.subr.mxu0 %v11022_v6 }
0x1197   : > { %10477 = vmatmul.mubr.msk.f32.vlgmr.msra.gmra.mrb[54].mxu0 %vm1109_vm3, %v5231_v29 }
0x1198   : > { %10485 = vmatpush3.msra.mxu0 %v5399_v13  ;;  %10486 = vmatprep.mubr.msk.f32.mxu0 %vm11023_vm2, %v11022_v6  ;;  %v6428_v0 = vpop.permute.xlu0 %6427  ;;  %v10710_v13 = vld [vmem:[%s11221_s6 + $0x8] sm:$0xff]  }
0x1199   : > { %10494 = vmatprep.subr.mxu0 %v11022_v6  ;;  %10572 = vmatpush3.bf16.msra.mxu1 %v10710_v13 }
0x119a   : > { %10573 = vmatprep.subr.bf16.mxu1 %v11022_v6 }
0x119b   : > { %10487 = vmatmul.mubr.msk.f32.vlgmr.msra.gmra.mrb[56].mxu0 %vm1109_vm3, %v5397_v32  ;;  %v10711_v32 = vld [vmem:[%s11221_s6 + $0x10] sm:$0xff]  }
0x119c   : > { %10495 = vmatpush3.msra.mxu0 %v5598_v47  ;;  %10496 = vmatprep.mubr.msk.f32.mxu0 %vm11023_vm2, %v11022_v6  ;;  %v6594_v50 = vpop.permute.xlu0 %6593 }
0x119d   : > { %10504 = vmatprep.subr.mxu0 %v11022_v6  ;;  %10574 = vmatpush3.bf16.msra.mxu1 %v10711_v32 }
0x119e   : > { %10575 = vmatprep.subr.bf16.mxu1 %v11022_v6 }
0x119f   : > { %10497 = vmatmul.mubr.msk.f32.vlgmr.msra.gmra.mrb[58].mxu0 %vm1109_vm3, %v5596_v8 }
0x11a0   : > { %10505 = vmatpush3.msra.mxu0 %v5764_v51  ;;  %10506 = vmatprep.mubr.msk.f32.mxu0 %vm11023_vm2, %v11022_v6 }
0x11a1   : > { %10514 = vmatprep.subr.mxu0 %v11022_v6  ;;  %10576 = vmatpush3.bf16.msra.mxu1 %v10712_v3 }
0x11a3   : > { %10507 = vmatmul.mubr.msk.f32.vlgmr.msra.gmra.mrb[60].mxu0 %vm1109_vm3, %v5762_v18 }
0x11a4   : > { %10516 = vmatprep.mubr.msk.f32.mxu0 %vm11023_vm2, %v11022_v6 }
0x11aa   : > { %v6424_v21 = vpop.xlane.xlu1 %6423 }
0x11ab   : > { %10967 = vrcp.f32 %v6424_v21 }
0x11ae   : > { %v6590_v58 = vpop.xlane.xlu1 %6589 }
0x11af   : > { %10969 = vrcp.f32 %v6590_v58 }
0x11b2   : > { %v6756_v60 = vpop.xlane.xlu1 %6755 }
0x11b3   : > { %10971 = vrcp.f32 %v6756_v60 }
0x11b5   : > { %v10968_v1 = vpop.eup %10967 }
0x11b6   : > { %v5930_v37 = vpop.permute.xlu1 %5929  ;;  %v6426_v20 = vmul.f32 %v10968_v1, %v12128_v14 }
0x11b7   : > { %10515 = vmatpush3.msra.mxu0 %v5930_v37 }
0x11b8   : > { %10517 = vmatmul.mubr.msk.f32.vlgmr.msra.gmra.mrb[62].mxu0 %vm1109_vm3, %v5928_v39  ;;  %10524 = vmatprep.subr.mxu0 %v11022_v6 }
0x11b9   : > { %10525 = vmatpush3.msra.mxu0 %v6096_v30  ;;  %10526 = vmatprep.mubr.msk.f32.mxu0 %vm11023_vm2, %v11022_v6  ;;  %v10970_v2 = vpop.eup %10969 }
0x11ba   : > { %10534 = vmatprep.subr.mxu0 %v11022_v6  ;;  %v6592_v57 = vmul.f32 %v10970_v2, %v12132_v33  ;;  %v6760_v11 = vpop.permute.xlu1 %6759 }
0x11bc   : > { %10527 = vmatmul.mubr.msk.f32.vlgmr.msra.gmra.mrb[64].mxu0 %vm1109_vm3, %v6094_v34 }
0x11bd   : > { %10535 = vmatpush3.msra.mxu0 %v6262_v45  ;;  %10536 = vmatprep.mubr.msk.f32.mxu0 %vm11023_vm2, %v11022_v6  ;;  %v10972_v9 = vpop.eup %10971 }
0x11be   : > { %10544 = vmatprep.subr.mxu0 %v11022_v6  ;;  %v6758_v14 = vmul.f32 %v10972_v9, %v12136_v55 }
0x11c0   : > { %10537 = vmatmul.mubr.msk.f32.vlgmr.msra.gmra.mrb[66].mxu0 %vm1109_vm3, %v6260_v42 }
0x11c1   : > { %10545 = vmatpush3.msra.mxu0 %v6428_v0  ;;  %10546 = vmatprep.mubr.msk.f32.mxu0 %vm11023_vm2, %v11022_v6 }
0x11c2   : > { %10554 = vmatprep.subr.mxu0 %v11022_v6 }
0x11c4   : > { %10547 = vmatmul.mubr.msk.f32.vlgmr.msra.gmra.mrb[68].mxu0 %vm1109_vm3, %v6426_v20 }
0x11c5   : > { %10555 = vmatpush3.msra.mxu0 %v6594_v50  ;;  %10556 = vmatprep.mubr.msk.f32.mxu0 %vm11023_vm2, %v11022_v6 }
0x11c6   : > { %10564 = vmatprep.subr.mxu0 %v11022_v6 }
0x11c8   : > { %10557 = vmatmul.mubr.msk.f32.vlgmr.msra.gmra.mrb[70].mxu0 %vm1109_vm3, %v6592_v57 }
0x11c9   : > { %10565 = vmatpush3.msra.mxu0 %v6760_v11  ;;  %10566 = vmatprep.mubr.msk.f32.mxu0 %vm11023_vm2, %v11022_v6 }
0x11cc   : > { %10567 = vmatmul.mubr.msk.f32.vlgmr.msra.gmra.mrb[72].mxu0 %vm1109_vm3, %v6758_v14 }
0x11cd   : > { %7504 = vmatprep.mubr.bf16.mxu0 %v11021_v4 }
0x1256   : > { %v4474_v56 = vpop.f32.mrb[44].mxu0 }
0x1257   : > { %v10428_v22 = vpop.f32.mrb[45].mxu0 }
0x125a   : > { %v4640_v62 = vpop.f32.mrb[46].mxu0 }
0x125b   : > { %v10438_v33 = vpop.f32.mrb[47].mxu0 }
0x125e   : > { %v4806_v41 = vpop.f32.mrb[48].mxu0 }
0x125f   : > { %v10448_v54 = vpop.f32.mrb[49].mxu0 }
0x1262   : > { %v4972_v46 = vpop.f32.mrb[50].mxu0 }
0x1263   : > { %v10458_v15 = vpop.f32.mrb[51].mxu0 }
0x1266   : > { %v5138_v12 = vpop.f32.mrb[52].mxu0 }
0x1267   : > { %v10468_v52 = vpop.f32.mrb[53].mxu0 }
0x126a   : > { %v5304_v31 = vpop.f32.mrb[54].mxu0 }
0x126b   : > { %v10478_v63 = vpop.f32.mrb[55].mxu0 }
0x126e   : > { %v5470_v35 = vpop.f32.mrb[56].mxu0 }
0x126f   : > { %v10488_v55 = vpop.f32.mrb[57].mxu0 }
0x1272   : > { %v5669_v27 = vpop.f32.mrb[58].mxu0 }
0x1273   : > { %v10498_v40 = vpop.f32.mrb[59].mxu0 }
0x1276   : > { %v5835_v5 = vpop.f32.mrb[60].mxu0 }
0x1277   : > { %v10650_v43 = vpack.i.bf16 %v5835_v5, %v4474_v56  ;;  %v10508_v7 = vpop.f32.mrb[61].mxu0 }
0x1279   : > { %10651 = vrot.lane.b32.xlu0 %v10650_v43, %s11032_s30 }
0x128b   : > { %v6001_v48 = vpop.f32.mrb[62].mxu0 }
0x128c   : > { %v10655_v36 = vpack.i.bf16 %v6001_v48, %v4640_v62  ;;  %v10518_v10 = vpop.f32.mrb[63].mxu0  ;;  %v9666_v48 = vld [vmem:[%s12705_s15] ss:$0 sm:$0xff] }
0x128e   : > { %10656 = vrot.lane.b32.xlu1 %v10655_v36, %s12704_s16  ;;  %s12715_s16 = sld [smem:[#allocation27_spill]] }
0x128f   : > { %v6167_v24 = vpop.f32.mrb[64].mxu0 }
0x1290   : > { %v10660_v44 = vpack.i.bf16 %v6167_v24, %v4806_v41  ;;  %v10528_v29 = vpop.f32.mrb[65].mxu0 }
0x1292   : > { %10661 = vrot.lane.b32.xlu0 %v10660_v44, %s11030_s21  ;;  %s12707_s21 = sld [smem:[#allocation20_spill]] }
0x1293   : > { %v6333_v61 = vpop.f32.mrb[66].mxu0 }
0x1294   : > { %v10665_v47 = vpack.i.bf16 %v6333_v61, %v4972_v46  ;;  %v10538_v26 = vpop.f32.mrb[67].mxu0  ;;  %s12716_s6 = scalar_lea.vmem %s12715_s16, %s11168_s29 }
0x1296   : > { %10666 = vrot.lane.b32.xlu1 %v10665_v47, %s11038_s20 }
0x1297   : > { %v6499_v8 = vpop.f32.mrb[68].mxu0 }
0x1298   : > { %v10670_v51 = vpack.i.bf16 %v6499_v8, %v5138_v12  ;;  %v10548_v18 = vpop.f32.mrb[69].mxu0  ;;  %s12708_s10 = scalar_lea.vmem %s12707_s21, %s11168_s29 }
0x129a   : > { %10671 = vrot.lane.b32.xlu0 %v10670_v51, %s11028_s26 }
0x129b   : > { %v6665_v21 = vpop.f32.mrb[70].mxu0 }
0x129c   : > { %v10675_v58 = vpack.i.bf16 %v6665_v21, %v5304_v31  ;;  %v10558_v30 = vpop.f32.mrb[71].mxu0 }
0x129e   : > { %10676 = vrot.lane.b32.xlu1 %v10675_v58, %s11027_s17  ;;  %s12706_s17 = sld [smem:[#allocation9_spill]] }
0x129f   : > { %v6831_v60 = vpop.f32.mrb[72].mxu0 }
0x12a0   : > { %v10680_v25 = vpack.i.bf16 %v6831_v60, %v5470_v35  ;;  %v10568_v39 = vpop.f32.mrb[73].mxu0 }
0x12a2   : > { %10681 = vrot.lane.b32.xlu0 %v10680_v25, %s11024_s14  ;;  %s12717_s14 = sld [smem:[#allocation7_spill]] }
0x12a4   : > { %v7001_v60 = vld [vmem:[%s12706_s17] sm:$0xff]  ;;  %v7002_v39 = vld [vmem:[%s12706_s17 + $0x8] sm:$0xff] }
0x12a5   : > { %v7009_v25 = vld [vmem:[%s12706_s17 + $0x40] sm:$0xff] }
0x12a8   : > { %p9877_p5 = scmp.ne.s32.totalorder %s12717_s14, 1 }
0x12eb   : > { %v10652_v37 = vpop.permute.xlu0 %10651 }
0x12ec   : > { %v10654_v34 = vunpack.i.h.bf16 %v10652_v37  ;;  %v10653_v53 = vunpack.i.l.bf16 %v10652_v37  ;;  %v9675_v37 = vcombine.high %v7001_v60, %v7009_v25 }
0x12ee   : > { %v6863_v11 = vsel %vm1109_vm3, %v5669_v27, %v10654_v34  ;;  %v5502_v14 = vsel %vm1109_vm3, %v11978_v38, %v10653_v53  ;;  %7472 = vmatprep.subr.bf16.mxu0 %v9675_v37  ;;  %v7017_v53 = vld [vmem:[%s12706_s17 + $0x80] sm:$0xff]  ;;  %v7035_v37 = vld [vmem:[%s12706_s17 + $0x110] sm:$0xff] }
0x1300   : > { %v10657_v23 = vpop.permute.xlu1 %10656 }
0x1301   : > { %v10659_v42 = vunpack.i.h.bf16 %v10657_v23  ;;  %v10658_v0 = vunpack.i.l.bf16 %v10657_v23  ;;  %v7010_v23 = vld [vmem:[%s12706_s17 + $0x48] sm:$0xff] }
0x1302   : > { %v9677_v34 = vcombine.high %v7002_v39, %v7010_v23 }
0x1303   : > { %v6864_v62 = vsel %vm2469_vm5, %v6863_v11, %v10659_v42  ;;  %v5503_v33 = vsel %vm2469_vm5, %v5502_v14, %v10658_v0  ;;  %v7025_v42 = vld [vmem:[%s12706_s17 + $0xc0] sm:$0xff]  ;;  %v7018_v0 = vld [vmem:[%s12706_s17 + $0x88] sm:$0xff] }
0x1304   : > { %v10662_v6 = vpop.permute.xlu0 %10661  ;;  %7515 = vmatprep.subr.bf16.mxu1 %v9677_v34  ;;  %v7041_v11 = vld [vmem:[%s12706_s17 + $0x140] sm:$0xff]  ;;  %v7034_v14 = vld [vmem:[%s12706_s17 + $0x108] sm:$0xff] }
0x1305   : > { %v10664_v20 = vunpack.i.h.bf16 %v10662_v6  ;;  %v10663_v2 = vunpack.i.l.bf16 %v10662_v6  ;;  %v9674_v6 = vcombine.low %v7001_v60, %v7009_v25 }
0x1307   : > { %v6865_v46 = vsel %vm2471_vm6, %v6864_v62, %v10664_v20  ;;  %v5504_v15 = vsel %vm2471_vm6, %v5503_v33, %v10663_v2  ;;  %7473 = vmatpush1.bf16.msra.mxu0 %v9674_v6  ;;  %v7026_v20 = vld [vmem:[%s12706_s17 + $0xc8] sm:$0xff]  ;;  %v9690_v2 = vcombine.low %v7017_v53, %v7025_v42  ;;  %v7036_v6 = vld [vmem:[%s12706_s17 + $0x118] sm:$0xff] }
0x1308   : > { %v10667_v45 = vpop.permute.xlu1 %10666 }
0x1309   : > { %v10669_v50 = vunpack.i.h.bf16 %v10667_v45  ;;  %v10668_v57 = vunpack.i.l.bf16 %v10667_v45  ;;  %v9676_v45 = vcombine.low %v7002_v39, %v7010_v23  ;;  %v7043_v23 = vld [vmem:[%s12706_s17 + $0x150] sm:$0xff] }
0x130b   : > { %v6866_v12 = vsel %vm2473_vm7, %v6865_v46, %v10669_v50  ;;  %v5505_v52 = vsel %vm2473_vm7, %v5504_v15, %v10668_v57  ;;  %v9692_v50 = vcombine.low %v7018_v0, %v7026_v20  ;;  %v9693_v57 = vcombine.high %v7018_v0, %v7026_v20  ;;  %v7057_v46 = vld [vmem:[%s12706_s17 + $0x1c0] sm:$0xff]  ;;  %v7050_v15 = vld [vmem:[%s12706_s17 + $0x188] sm:$0xff]  ;;  %v7059_v20 = vld [vmem:[%s12706_s17 + $0x1d0] sm:$0xff] }
0x130c   : > { %v10672_v1 = vpop.permute.xlu0 %10671 }
0x130d   : > { %v10674_v56 = vunpack.i.h.bf16 %v10672_v1  ;;  %v10673_v22 = vunpack.i.l.bf16 %v10672_v1  ;;  %v9691_v1 = vcombine.high %v7017_v53, %v7025_v42  ;;  %v9711_v42 = vcombine.high %v7035_v37, %v7043_v23 }
0x130f   : > { %v6867_v38 = vsel %vm2475_vm8, %v6866_v12, %v10674_v56  ;;  %v5506_v63 = vsel %vm2475_vm8, %v5505_v52, %v10673_v22  ;;  %7474 = vmatprep.subr.bf16.mxu0 %v9691_v1  ;;  %v7042_v22 = vld [vmem:[%s12706_s17 + $0x148] sm:$0xff]  ;;  %v7051_v1 = vld [vmem:[%s12706_s17 + $0x190] sm:$0xff] }
0x1310   : > { %v10677_v9 = vpop.permute.xlu1 %10676  ;;  %7475 = vmatpush1.bf16.msra.mxu0 %v9690_v2  ;;  %v9708_v33 = vcombine.low %v7034_v14, %v7042_v22  ;;  %v7058_v52 = vld [vmem:[%s12706_s17 + $0x1c8] sm:$0xff]  ;;  %v7052_v2 = vld [vmem:[%s12706_s17 + $0x198] sm:$0xff] }
0x1311   : > { %v10679_v41 = vunpack.i.h.bf16 %v10677_v9  ;;  %v10678_v54 = vunpack.i.l.bf16 %v10677_v9  ;;  %v7033_v9 = vld [vmem:[%s12706_s17 + $0x100] sm:$0xff] }
0x1312   : > { %v9707_v56 = vcombine.high %v7033_v9, %v7041_v11  ;;  %v9706_v62 = vcombine.low %v7033_v9, %v7041_v11  ;;  %v9727_v11 = vcombine.high %v7051_v1, %v7059_v20 }
0x1313   : > { %v6868_v27 = vsel %vm2477_vm9, %v6867_v38, %v10679_v41  ;;  %v5507_v40 = vsel %vm2477_vm9, %v5506_v63, %v10678_v54  ;;  %v9709_v41 = vcombine.high %v7034_v14, %v7042_v22  ;;  %v7049_v54 = vld [vmem:[%s12706_s17 + $0x180] sm:$0xff]  ;;  %v9724_v38 = vcombine.low %v7050_v15, %v7058_v52 }
0x1314   : > { %v10682_v31 = vpop.permute.xlu0 %10681  ;;  %7476 = vmatprep.subr.bf16.mxu0 %v9707_v56  ;;  %v9723_v12 = vcombine.high %v7049_v54, %v7057_v46  ;;  %v9725_v63 = vcombine.high %v7050_v15, %v7058_v52  ;;  %v7005_v56 = vld [vmem:[%s12706_s17 + $0x20] sm:$0xff] }
0x1315   : > { %v10684_v35 = vunpack.i.h.bf16 %v10682_v31  ;;  %v10683_v55 = vunpack.i.l.bf16 %v10682_v31  ;;  %7477 = vmatpush1.bf16.msra.mxu0 %v9706_v62  ;;  %v9722_v31 = vcombine.low %v7049_v54, %v7057_v46  ;;  %v7013_v22 = vld [vmem:[%s12706_s17 + $0x60] sm:$0xff]  ;;  %v7006_v62 = vld [vmem:[%s12706_s17 + $0x28] sm:$0xff] }
0x1316   : > { %7478 = vmatprep.subr.bf16.mxu0 %v9723_v12  ;;  %v9683_v46 = vcombine.high %v7005_v56, %v7013_v22  ;;  %v7021_v12 = vld [vmem:[%s12706_s17 + $0xa0] sm:$0xff] }
0x1317   : > { %v6869_v5 = vsel %vm2479_vm10, %v6868_v27, %v10684_v35  ;;  %v5508_v43 = vsel %vm2479_vm10, %v5507_v40, %v10683_v55  ;;  %v7003_v35 = vld [vmem:[%s12706_s17 + $0x10] sm:$0xff]  ;;  %v7004_v27 = vld [vmem:[%s12706_s17 + $0x18] sm:$0xff]  ;;  %v7029_v52 = vld [vmem:[%s12706_s17 + $0xe0] sm:$0xff] }
0x1318   : > { %v6870_v7 = vpack.c.bf16 %v6869_v5, %v5508_v43  ;;  %v7011_v55 = vld [vmem:[%s12706_s17 + $0x50] sm:$0xff]  ;;  %v7012_v43 = vld [vmem:[%s12706_s17 + $0x58] sm:$0xff] }
0x1319   : > { %7479 = vmatpush1.bf16.msra.mxu0 %v9722_v31  ;;  %v9678_v40 = vcombine.low %v7003_v35, %v7011_v55  ;;  %v9679_v5 = vcombine.high %v7003_v35, %v7011_v55  ;;  %v7022_v31 = vld [vmem:[%s12706_s17 + $0xa8] sm:$0xff]  ;;  %v9699_v55 = vcombine.high %v7021_v12, %v7029_v52 }
0x131a   : > { %10578 = vmatmul.mubr.msk.bf16.vlgmr.msra.gmra.mrb[72].mxu1 %vm1059_vm1, %v6870_v7  ;;  %v9680_v7 = vcombine.low %v7004_v27, %v7012_v43 }
0x131b   : > { %7547 = vmatprep.mubr.bf16.mxu1 %v11021_v4  ;;  %7516 = vmatpush1.bf16.msra.mxu1 %v9676_v45  ;;  %v7044_v45 = vld [vmem:[%s12706_s17 + $0x158] sm:$0xff] }
0x131c   : > { %7517 = vmatprep.subr.bf16.mxu1 %v9693_v57  ;;  %7558 = vmatprep.subr.bf16.mxu0 %v9679_v5  ;;  %v9713_v0 = vcombine.high %v7036_v6, %v7044_v45  ;;  %v9710_v57 = vcombine.low %v7035_v37, %v7043_v23  ;;  %v9712_v9 = vcombine.low %v7036_v6, %v7044_v45  ;;  %v7045_v5 = vld [vmem:[%s12706_s17 + $0x160] sm:$0xff]  ;;  %v7031_v37 = vld [vmem:[%s12706_s17 + $0xf0] sm:$0xff]  ;;  %v7024_v23 = vld [vmem:[%s12706_s17 + $0xb8] sm:$0xff] }
0x131d   : > { %v7032_v6 = vld [vmem:[%s12706_s17 + $0xf8] sm:$0xff] }
0x131f   : > { %7518 = vmatpush1.bf16.msra.mxu1 %v9692_v50  ;;  %v7060_v50 = vld [vmem:[%s12706_s17 + $0x1d8] sm:$0xff] }
0x1320   : > { %7519 = vmatprep.subr.bf16.mxu1 %v9709_v41  ;;  %v9729_v14 = vcombine.high %v7052_v2, %v7060_v50  ;;  %v9726_v41 = vcombine.low %v7051_v1, %v7059_v20  ;;  %v9728_v54 = vcombine.low %v7052_v2, %v7060_v50  ;;  %v7047_v1 = vld [vmem:[%s12706_s17 + $0x170] sm:$0xff]  ;;  %v7040_v20 = vld [vmem:[%s12706_s17 + $0x138] sm:$0xff] }
0x1321   : > { %v7048_v2 = vld [vmem:[%s12706_s17 + $0x178] sm:$0xff] }
0x1323   : > { %7520 = vmatpush1.bf16.msra.mxu1 %v9708_v33  ;;  %v7014_v33 = vld [vmem:[%s12706_s17 + $0x68] sm:$0xff] }
0x1324   : > { %7521 = vmatprep.subr.bf16.mxu1 %v9725_v63  ;;  %v9685_v15 = vcombine.high %v7006_v62, %v7014_v33  ;;  %v9682_v63 = vcombine.low %v7005_v56, %v7013_v22  ;;  %v9684_v35 = vcombine.low %v7006_v62, %v7014_v33  ;;  %v7063_v56 = vld [vmem:[%s12706_s17 + $0x1f0] sm:$0xff]  ;;  %v7056_v22 = vld [vmem:[%s12706_s17 + $0x1b8] sm:$0xff] }
0x1325   : > { %v7064_v62 = vld [vmem:[%s12706_s17 + $0x1f8] sm:$0xff] }
0x1327   : > { %7522 = vmatpush1.bf16.msra.mxu1 %v9724_v38  ;;  %v7030_v38 = vld [vmem:[%s12706_s17 + $0xe8] sm:$0xff] }
0x13ed   : > { %v6947_v59 = vpop.f32.mrb[72].mxu1 }
0x13ee   : > { %v6948_v36 = vadd.f32 %v9666_v48, %v6947_v59  ;;  %v10579_v10 = vpop.f32.mrb[73].mxu1 }
0x13ef   : > { %v6950_v24 = vpop.f32.mrb[74].mxu1 }
0x13f0   : > { %v6954_v13 = vadd.f32 %v6948_v36, %v11807_v28  ;;  %v6951_v44 = vadd.f32 %v9666_v48, %v6950_v24  ;;  %v10580_v29 = vpop.f32.mrb[75].mxu1  ;;  %v9681_v48 = vcombine.high %v7004_v27, %v7012_v43  ;;  %v9701_v27 = vcombine.high %v7022_v31, %v7030_v38  ;;  %v7038_v43 = vld [vmem:[%s12706_s17 + $0x128] sm:$0xff] }
0x13f2   : > { %v6955_v61 = vadd.f32 %v6951_v44, %v11809_v49  ;;  %v6956_v32 = vsel %vm1059_vm1, %v6954_v13, 0.0  ;;  %7601 = vmatprep.subr.bf16.mxu1 %v9681_v48  ;;  %v9698_v48 = vcombine.low %v7021_v12, %v7029_v52  ;;  %v9736_v12 = vcombine.low %v7056_v22, %v7064_v62  ;;  %v10714_v52 = vld [vmem:[%s11251_s28 + $0xc0] sm:$0xff]  }
0x13f3   : > { %6957 = vadd.xlane.f32.xlu1 %v6956_v32 }
0x13f4   : > { %v6959_v47 = vsel %vm1059_vm1, %v6955_v61, 0.0 }
0x13f5   : > { %6960 = vadd.xlane.f32.xlu0 %v6959_v47 }
0x1480   : > { %v6958_v26 = vpop.xlane.xlu1 %6957 }
0x1481   : > { %v6962_v8 = vmul.f32 0.015625, %v6958_v26 }
0x1482   : > { %v6961_v3 = vpop.xlane.xlu0 %6960 }
0x1483   : > { %v12259_v51 = vsub.f32 %v6954_v13, %v6962_v8  ;;  %v6963_v28 = vmul.f32 0.015625, %v6961_v3  ;;  %v9673_v3 = vld [vmem:[%s12710_s25] ss:$0 sm:$0xff] }
0x1485   : > { %v12261_v18 = vsub.f32 %v6955_v61, %v6963_v28  ;;  %v6966_v49 = vmul.f32 %v12259_v51, %v12259_v51  ;;  %v9672_v61 = vld [vmem:[%s12708_s10] ss:$0 sm:$0xff] }
0x1487   : > { %v6968_v21 = vsel %vm1059_vm1, %v6966_v49, 0.0  ;;  %v6967_v58 = vmul.f32 %v12261_v18, %v12261_v18  ;;  %v7019_v49 = vld [vmem:[%s12706_s17 + $0x90] sm:$0xff] }
0x1488   : > { %6969 = vadd.xlane.f32.xlu0 %v6968_v21  ;;  %v7027_v21 = vld [vmem:[%s12706_s17 + $0xd0] sm:$0xff] }
0x1489   : > { %v6971_v30 = vsel %vm1059_vm1, %v6967_v58, 0.0  ;;  %v7020_v58 = vld [vmem:[%s12706_s17 + $0x98] sm:$0xff]  ;;  %v9695_v39 = vcombine.high %v7019_v49, %v7027_v21  ;;  %v9694_v34 = vcombine.low %v7019_v49, %v7027_v21 }
0x148a   : > { %6972 = vadd.xlane.f32.xlu1 %v6971_v30  ;;  %v7028_v30 = vld [vmem:[%s12706_s17 + $0xd8] sm:$0xff] }
0x148b   : > { %v9696_v53 = vcombine.low %v7020_v58, %v7028_v30  ;;  %v7016_v49 = vld [vmem:[%s12706_s17 + $0x78] sm:$0xff] }
0x1515   : > { %v6970_v59 = vpop.xlane.xlu0 %6969 }
0x1516   : > { %v6974_v36 = vmul.f32 0.015625, %v6970_v59  ;;  %v9700_v59 = vcombine.low %v7022_v31, %v7030_v38  ;;  %v10715_v31 = vld [vmem:[%s11251_s28] sm:$0xff]  }
0x1517   : > { %v6973_v10 = vpop.xlane.xlu1 %6972  ;;  %v10716_v38 = vld [vmem:[%s11251_s28 + $0x80] sm:$0xff]  }
0x1518   : > { %v6976_v24 = vadd.f32 1e-05, %v6974_v36  ;;  %v6975_v13 = vmul.f32 0.015625, %v6973_v10 }
0x151a   : > { %10973 = vrsqrt.f32 %v6976_v24  ;;  %v6977_v44 = vadd.f32 1e-05, %v6975_v13  ;;  %v7053_v24 = vld [vmem:[%s12706_s17 + $0x1a0] sm:$0xff] }
0x151b   : > { %v7061_v13 = vld [vmem:[%s12706_s17 + $0x1e0] sm:$0xff] }
0x151c   : > { %10975 = vrsqrt.f32 %v6977_v44  ;;  %v7054_v44 = vld [vmem:[%s12706_s17 + $0x1a8] sm:$0xff]  ;;  %v9730_v21 = vcombine.low %v7053_v24, %v7061_v13 }
0x1524   : > { %v10974_v29 = vpop.eup %10973 }
0x1525   : > { %v6980_v32 = vmul.f32 %v10974_v29, %v12259_v51  ;;  %v7062_v29 = vld [vmem:[%s12706_s17 + $0x1e8] sm:$0xff] }
0x1526   : > { %v10976_v47 = vpop.eup %10975 }
0x1527   : > { %v6989_v26 = vmul.f32 %v9672_v61, %v6980_v32  ;;  %v6981_v8 = vmul.f32 %v10976_v47, %v12261_v18  ;;  %v9697_v18 = vcombine.high %v7020_v58, %v7028_v30  ;;  %v9731_v47 = vcombine.high %v7053_v24, %v7061_v13  ;;  %v10730_v24 = vld [vmem:[%s11251_s28 + $0xe0] sm:$0xff]  }
0x1528   : > { %v9732_v58 = vcombine.low %v7054_v44, %v7062_v29  ;;  %v10731_v13 = vld [vmem:[%s11251_s28 + $0x20] sm:$0xff]  }
0x1529   : > { %v6990_v28 = vmul.f32 %v9672_v61, %v6981_v8  ;;  %v12305_v60 = vadd.f32 %v9673_v3, %v6989_v26  ;;  %v9733_v26 = vcombine.high %v7054_v44, %v7062_v29  ;;  %v7007_v8 = vld [vmem:[%s12706_s17 + $0x30] sm:$0xff]  ;;  %v10732_v44 = vld [vmem:[%s11251_s28 + $0xa0] sm:$0xff]   ;;  %v10733_v29 = vld [vmem:[%s11251_s28 + $0x68] sm:$0xff]  }
0x152b   : > { %v12307_v51 = vadd.f32 %v9673_v3, %v6990_v28  ;;  %v7015_v3 = vld [vmem:[%s12706_s17 + $0x70] sm:$0xff]  ;;  %v7008_v28 = vld [vmem:[%s12706_s17 + $0x38] sm:$0xff] }
0x152c   : > { %v9687_v30 = vcombine.high %v7007_v8, %v7015_v3  ;;  %v9686_v45 = vcombine.low %v7007_v8, %v7015_v3  ;;  %v10738_v8 = vld [vmem:[%s11251_s28 + $0xf0] sm:$0xff]  }
0x152d   : > { %v12311_v25 = vpack.c.bf16 %v12307_v51, %v12305_v60  ;;  %v10739_v3 = vld [vmem:[%s11251_s28 + $0x30] sm:$0xff]  }
0x152f   : > { %9738 = vmatmul.mubr.msk.bf16.vlgmr.msra.gmra.mrb[76].mxu0 %vm1059_vm1, %v12311_v25  ;;  %9739 = vmatmul.mubr.msk.bf16.vlgmr.msra.gmra.mrb[76].mxu1 %vm1059_vm1, %v12311_v25 }
0x1530   : > { %7559 = vmatpush1.bf16.msra.mxu0 %v9678_v40  ;;  %7602 = vmatpush1.bf16.msra.mxu1 %v9680_v7  ;;  %v7037_v40 = vld [vmem:[%s12706_s17 + $0x120] sm:$0xff]  ;;  %v7046_v7 = vld [vmem:[%s12706_s17 + $0x168] sm:$0xff] }
0x1531   : > { %7560 = vmatprep.subr.bf16.mxu0 %v9695_v39  ;;  %7603 = vmatprep.subr.bf16.mxu1 %v9697_v18  ;;  %v9715_v36 = vcombine.high %v7037_v40, %v7045_v5  ;;  %v9717_v10 = vcombine.high %v7038_v43, %v7046_v7  ;;  %v9714_v61 = vcombine.low %v7037_v40, %v7045_v5  ;;  %v7023_v18 = vld [vmem:[%s12706_s17 + $0xb0] sm:$0xff] }
0x1532   : > { %7590 = vmatprep.mubr.bf16.mxu0 %v11021_v4  ;;  %7633 = vmatprep.mubr.bf16.mxu1 %v11021_v4  ;;  %v9716_v32 = vcombine.low %v7038_v43, %v7046_v7  ;;  %v9689_v39 = vcombine.high %v7008_v28, %v7016_v49  ;;  %v9702_v50 = vcombine.low %v7023_v18, %v7031_v37  ;;  %v10721_v40 = vld [vmem:[%s11251_s28 + $0x50] sm:$0xff]  }
0x1533   : > { %v10722_v5 = vld [vmem:[%s11251_s28 + $0xd0] sm:$0xff]  }
0x1534   : > { %7561 = vmatpush1.bf16.msra.mxu0 %v9694_v34  ;;  %7604 = vmatpush1.bf16.msra.mxu1 %v9696_v53  ;;  %v9688_v34 = vcombine.low %v7008_v28, %v7016_v49  ;;  %v9703_v53 = vcombine.high %v7023_v18, %v7031_v37  ;;  %v10723_v43 = vld [vmem:[%s11251_s28 + $0x10] sm:$0xff]   ;;  %v10741_v49 = vld [vmem:[%s11251_s28 + $0x78] sm:$0xff]   ;;  %v10746_v18 = vld [vmem:[%s11251_s28 + $0x1c0] sm:$0xff]   ;;  %v7095_v37 = vsub.s32 6, %v11284_v16 }
0x1535   : > { %7562 = vmatprep.subr.bf16.mxu0 %v9711_v42  ;;  %7605 = vmatprep.subr.bf16.mxu1 %v9713_v0  ;;  %v9705_v42 = vcombine.high %v7024_v23, %v7032_v6  ;;  %v7039_v0 = vld [vmem:[%s12706_s17 + $0x130] sm:$0xff] }
0x1536   : > { %v9718_v33 = vcombine.low %v7039_v0, %v7047_v1  ;;  %v10724_v7 = vld [vmem:[%s11251_s28 + $0x90] sm:$0xff]  }
0x1537   : > { %v10740_v28 = vld [vmem:[%s11251_s28 + $0xb0] sm:$0xff]  }
0x1538   : > { %7563 = vmatpush1.bf16.msra.mxu0 %v9710_v57  ;;  %7606 = vmatpush1.bf16.msra.mxu1 %v9712_v9  ;;  %v9704_v57 = vcombine.low %v7024_v23, %v7032_v6  ;;  %v9719_v9 = vcombine.high %v7039_v0, %v7047_v1  ;;  %v12411_v23 = vld [vmem:[%s11245_s1 + $0x8] sm:$0xff] }
0x1539   : > { %7564 = vmatprep.subr.bf16.mxu0 %v9727_v11  ;;  %7607 = vmatprep.subr.bf16.mxu1 %v9729_v14  ;;  %v9721_v11 = vcombine.high %v7040_v20, %v7048_v2  ;;  %v7055_v14 = vld [vmem:[%s12706_s17 + $0x1b0] sm:$0xff]  ;;  %v12414_v6 = vrot.slane %v12411_v23, %v7095_v37 }
0x153c   : > { %7565 = vmatpush1.bf16.msra.mxu0 %v9726_v41  ;;  %7608 = vmatpush1.bf16.msra.mxu1 %v9728_v54  ;;  %v9720_v41 = vcombine.low %v7040_v20, %v7048_v2  ;;  %v9735_v54 = vcombine.high %v7055_v14, %v7063_v56 }
0x153d   : > { %7644 = vmatprep.subr.bf16.mxu0 %v9683_v46  ;;  %7687 = vmatprep.subr.bf16.mxu1 %v9685_v15  ;;  %v9737_v46 = vcombine.high %v7056_v22, %v7064_v62  ;;  %v9734_v15 = vcombine.low %v7055_v14, %v7063_v56 }
0x153f   : > { %9740 = vmatmul.mubr.msk.bf16.vlgmr.msra.gmra.mrb[80].mxu0 %vm1059_vm1, %v12311_v25  ;;  %9741 = vmatmul.mubr.msk.bf16.vlgmr.msra.gmra.mrb[80].mxu1 %vm1059_vm1, %v12311_v25 }
0x1540   : > { %7645 = vmatpush1.bf16.msra.mxu0 %v9682_v63  ;;  %7688 = vmatpush1.bf16.msra.mxu1 %v9684_v35  ;;  %v10717_v63 = vld [vmem:[%s11251_s28 + $0x48] sm:$0xff]  }
0x1541   : > { %7646 = vmatprep.subr.bf16.mxu0 %v9699_v55  ;;  %7689 = vmatprep.subr.bf16.mxu1 %v9701_v27  ;;  %v10718_v35 = vld [vmem:[%s11251_s28 + $0xc8] sm:$0xff]  }
0x1542   : > { %7676 = vmatprep.mubr.bf16.mxu0 %v11021_v4  ;;  %7719 = vmatprep.mubr.bf16.mxu1 %v11021_v4  ;;  %v10719_v55 = vld [vmem:[%s11251_s28 + $0x8] sm:$0xff]  }
0x1543   : > { %v10720_v27 = vld [vmem:[%s11251_s28 + $0x88] sm:$0xff]  }
0x1544   : > { %7647 = vmatpush1.bf16.msra.mxu0 %v9698_v48  ;;  %7690 = vmatpush1.bf16.msra.mxu1 %v9700_v59  ;;  %v10726_v48 = vld [vmem:[%s11251_s28 + $0xd8] sm:$0xff]  }
0x1545   : > { %7648 = vmatprep.subr.bf16.mxu0 %v9715_v36  ;;  %7691 = vmatprep.subr.bf16.mxu1 %v9717_v10  ;;  %v10727_v59 = vld [vmem:[%s11251_s28 + $0x18] sm:$0xff]   ;;  %v10729_v10 = vld [vmem:[%s11251_s28 + $0x60] sm:$0xff]  }
0x1546   : > { %v10728_v36 = vld [vmem:[%s11251_s28 + $0x98] sm:$0xff]  }
0x1548   : > { %7649 = vmatpush1.bf16.msra.mxu0 %v9714_v61  ;;  %7692 = vmatpush1.bf16.msra.mxu1 %v9716_v32  ;;  %v10734_v61 = vld [vmem:[%s11251_s28 + $0xe8] sm:$0xff]  }
0x1549   : > { %7650 = vmatprep.subr.bf16.mxu0 %v9731_v47  ;;  %7693 = vmatprep.subr.bf16.mxu1 %v9733_v26  ;;  %v10735_v32 = vld [vmem:[%s11251_s28 + $0x28] sm:$0xff]   ;;  %v10737_v26 = vld [vmem:[%s11251_s28 + $0x70] sm:$0xff]  }
0x154a   : > { %v10736_v47 = vld [vmem:[%s11251_s28 + $0xa8] sm:$0xff]  }
0x154c   : > { %7651 = vmatpush1.bf16.msra.mxu0 %v9730_v21  ;;  %7694 = vmatpush1.bf16.msra.mxu1 %v9732_v58  ;;  %v10742_v21 = vld [vmem:[%s11251_s28 + $0xf8] sm:$0xff]  }
0x154d   : > { %7730 = vmatprep.subr.bf16.mxu0 %v9687_v30  ;;  %7773 = vmatprep.subr.bf16.mxu1 %v9689_v39  ;;  %v10743_v58 = vld [vmem:[%s11251_s28 + $0x38] sm:$0xff]   ;;  %v10745_v39 = vld [vmem:[%s11251_s28 + $0x140] sm:$0xff]  }
0x154e   : > { %v10744_v30 = vld [vmem:[%s11251_s28 + $0xb8] sm:$0xff]  }
0x154f   : > { %9742 = vmatmul.mubr.msk.bf16.vlgmr.msra.gmra.mrb[84].mxu0 %vm1059_vm1, %v12311_v25  ;;  %9743 = vmatmul.mubr.msk.bf16.vlgmr.msra.gmra.mrb[84].mxu1 %vm1059_vm1, %v12311_v25 }
0x1550   : > { %7731 = vmatpush1.bf16.msra.mxu0 %v9686_v45  ;;  %7774 = vmatpush1.bf16.msra.mxu1 %v9688_v34  ;;  %v7079_v45 = vsub.s32 2, %v11284_v16  ;;  %v7065_v34 = vld [vmem:[%s11245_s1] sm:$0xff] }
0x1551   : > { %7732 = vmatprep.subr.bf16.mxu0 %v9703_v53  ;;  %7775 = vmatprep.subr.bf16.mxu1 %v9705_v42  ;;  %v7083_v53 = vsub.s32 3, %v11284_v16  ;;  %v7072_v42 = vrot.slane %v7065_v34, %v11291_v17  ;;  %v7076_v1 = vrot.slane %v7065_v34, %v11295_v19 }
0x1552   : > { %7762 = vmatprep.mubr.bf16.mxu0 %v11021_v4  ;;  %7805 = vmatprep.mubr.bf16.mxu1 %v11021_v4  ;;  %v10713_v4 = vld [vmem:[%s11251_s28 + $0x40] sm:$0xff]   ;;  %v7080_v0 = vrot.slane %v7065_v34, %v7079_v45 }
0x1553   : > { %v7084_v20 = vrot.slane %v7065_v34, %v7083_v53 }
0x1554   : > { %7733 = vmatpush1.bf16.msra.mxu0 %v9702_v50  ;;  %7776 = vmatpush1.bf16.msra.mxu1 %v9704_v57 }
0x1555   : > { %7734 = vmatprep.subr.bf16.mxu0 %v9719_v9  ;;  %7777 = vmatprep.subr.bf16.mxu1 %v9721_v11 }
0x1558   : > { %7735 = vmatpush1.bf16.msra.mxu0 %v9718_v33  ;;  %7778 = vmatpush1.bf16.msra.mxu1 %v9720_v41 }
0x1559   : > { %7736 = vmatprep.subr.bf16.mxu0 %v9735_v54  ;;  %7779 = vmatprep.subr.bf16.mxu1 %v9737_v46 }
0x155c   : > { %7737 = vmatpush1.bf16.msra.mxu0 %v9734_v15  ;;  %7780 = vmatpush1.bf16.msra.mxu1 %v9736_v12 }
0x155d   : > { %10037 = vmatprep.subr.bf16.mxu0 %v10713_v4  ;;  %10059 = vmatprep.subr.bf16.mxu1 %v10714_v52 }
0x155f   : > { %9744 = vmatmul.mubr.msk.bf16.vlgmr.msra.gmra.mrb[88].mxu0 %vm1059_vm1, %v12311_v25  ;;  %9745 = vmatmul.mubr.msk.bf16.vlgmr.msra.gmra.mrb[88].mxu1 %vm1059_vm1, %v12311_v25  ;;  %v10725_v25 = vld [vmem:[%s11251_s28 + $0x58] sm:$0xff]  }
0x1560   : > { %10038 = vmatpush3.bf16.msra.mxu0 %v10715_v31  ;;  %10060 = vmatpush3.bf16.msra.mxu1 %v10716_v38 }
0x1561   : > { %10039 = vmatprep.subr.bf16.mxu0 %v10717_v63  ;;  %10061 = vmatprep.subr.bf16.mxu1 %v10718_v35 }
0x1564   : > { %10040 = vmatpush3.bf16.msra.mxu0 %v10719_v55  ;;  %10062 = vmatpush3.bf16.msra.mxu1 %v10720_v27 }
0x1565   : > { %10041 = vmatprep.subr.bf16.mxu0 %v10721_v40  ;;  %10063 = vmatprep.subr.bf16.mxu1 %v10722_v5 }
0x1568   : > { %10042 = vmatpush3.bf16.msra.mxu0 %v10723_v43  ;;  %10064 = vmatpush3.bf16.msra.mxu1 %v10724_v7 }
0x1569   : > { %10043 = vmatprep.subr.bf16.mxu0 %v10725_v25  ;;  %10065 = vmatprep.subr.bf16.mxu1 %v10726_v48  ;;  %v10747_v48 = vld [vmem:[%s11251_s28 + $0x100] sm:$0xff]  }
0x156c   : > { %10044 = vmatpush3.bf16.msra.mxu0 %v10727_v59  ;;  %10066 = vmatpush3.bf16.msra.mxu1 %v10728_v36  ;;  %v10748_v59 = vld [vmem:[%s11251_s28 + $0x180] sm:$0xff]   ;;  %v10749_v36 = vld [vmem:[%s11251_s28 + $0x148] sm:$0xff]  }
0x156d   : > { %10045 = vmatprep.subr.bf16.mxu0 %v10729_v10  ;;  %10067 = vmatprep.subr.bf16.mxu1 %v10730_v24  ;;  %v10750_v10 = vld [vmem:[%s11251_s28 + $0x1c8] sm:$0xff]   ;;  %v7087_v24 = vsub.s32 4, %v11284_v16 }
0x1570   : > { %10046 = vmatpush3.bf16.msra.mxu0 %v10731_v13  ;;  %10068 = vmatpush3.bf16.msra.mxu1 %v10732_v44  ;;  %v7091_v13 = vsub.s32 5, %v11284_v16  ;;  %v7099_v44 = vsub.s32 7, %v11284_v16 }
0x1571   : > { %10047 = vmatprep.subr.bf16.mxu0 %v10733_v29  ;;  %10069 = vmatprep.subr.bf16.mxu1 %v10734_v61  ;;  %v10751_v29 = vld [vmem:[%s11251_s28 + $0x108] sm:$0xff]  }
0x1572   : > { %v10752_v61 = vld [vmem:[%s11251_s28 + $0x188] sm:$0xff]  }
0x1574   : > { %10048 = vmatpush3.bf16.msra.mxu0 %v10735_v32  ;;  %10070 = vmatpush3.bf16.msra.mxu1 %v10736_v47  ;;  %v7088_v32 = vrot.slane %v7065_v34, %v7087_v24  ;;  %v7096_v47 = vrot.slane %v7065_v34, %v7095_v37 }
0x1575   : > { %10049 = vmatprep.subr.bf16.mxu0 %v10737_v26  ;;  %10071 = vmatprep.subr.bf16.mxu1 %v10738_v8  ;;  %v10753_v26 = vld [vmem:[%s11251_s28 + $0x150] sm:$0xff]  }
0x1576   : > { %v10754_v8 = vld [vmem:[%s11251_s28 + $0x1d0] sm:$0xff]  }
0x1578   : > { %10050 = vmatpush3.bf16.msra.mxu0 %v10739_v3  ;;  %10072 = vmatpush3.bf16.msra.mxu1 %v10740_v28  ;;  %v7092_v3 = vrot.slane %v7065_v34, %v7091_v13  ;;  %v7100_v28 = vrot.slane %v7065_v34, %v7099_v44 }
0x1579   : > { %10051 = vmatprep.subr.bf16.mxu0 %v10741_v49  ;;  %10073 = vmatprep.subr.bf16.mxu1 %v10742_v21 }
0x157c   : > { %10052 = vmatpush3.bf16.msra.mxu0 %v10743_v58  ;;  %10074 = vmatpush3.bf16.msra.mxu1 %v10744_v30  ;;  %v10755_v58 = vld [vmem:[%s11251_s28 + $0x110] sm:$0xff]  }
0x157d   : > { %10081 = vmatprep.subr.bf16.mxu0 %v10745_v39  ;;  %10103 = vmatprep.subr.bf16.mxu1 %v10746_v18  ;;  %v10756_v30 = vld [vmem:[%s11251_s28 + $0x190] sm:$0xff]  }
0x1602   : > { %v7506_v2 = vpop.f32.mrb[76].mxu0  ;;  %v7549_v50 = vpop.f32.mrb[76].mxu1 }
0x1603   : > { %v7507_v57 = vadd.f32 %v7506_v2, %v7072_v42  ;;  %v7550_v9 = vadd.f32 %v7549_v50, %v7080_v0  ;;  %v7508_v11 = vpop.f32.mrb[77].mxu0  ;;  %v7551_v14 = vpop.f32.mrb[77].mxu1 }
0x1604   : > { %v7509_v56 = vadd.f32 %v7508_v11, %v7076_v1  ;;  %v7552_v22 = vadd.f32 %v7551_v14, %v7084_v20  ;;  %v7510_v62 = vpop.f32.mrb[78].mxu0  ;;  %v7553_v33 = vpop.f32.mrb[78].mxu1 }
0x1605   : > { %v7511_v41 = vadd.f32 %v7510_v62, %v7072_v42  ;;  %v7554_v54 = vadd.f32 %v7553_v33, %v7080_v0  ;;  %v7512_v46 = vpop.f32.mrb[79].mxu0  ;;  %v7555_v15 = vpop.f32.mrb[79].mxu1  ;;  %v7816_v52 = vmax.f32 %v7507_v57, 0.0  ;;  %v7818_v31 = vmax.f32 %v7550_v9, 0.0  ;;  %v10757_v0 = vld [vmem:[%s11251_s28 + $0x158] sm:$0xff]  }
0x1606   : > { %v7513_v12 = vadd.f32 %v7512_v46, %v7076_v1  ;;  %v7556_v4 = vadd.f32 %v7555_v15, %v7084_v20  ;;  %v7817_v35 = vmax.f32 %v7509_v56, 0.0  ;;  %v7819_v55 = vmax.f32 %v7552_v22, 0.0  ;;  %v10758_v1 = vld [vmem:[%s11251_s28 + $0x1d8] sm:$0xff]  }
0x1607   : > { %v7832_v38 = vmax.f32 %v7511_v41, 0.0  ;;  %v7834_v63 = vmax.f32 %v7554_v54, 0.0  ;;  %v10759_v62 = vld [vmem:[%s11251_s28 + $0x118] sm:$0xff]  }
0x1608   : > { %v7833_v27 = vmax.f32 %v7513_v12, 0.0  ;;  %v7835_v40 = vmax.f32 %v7556_v4, 0.0  ;;  %v10760_v33 = vld [vmem:[%s11251_s28 + $0x198] sm:$0xff]   ;;  %v10761_v12 = vld [vmem:[%s11251_s28 + $0x160] sm:$0xff]  }
0x1609   : > { %v7848_v5 = vpack.c.bf16 %v7832_v38, %v7816_v52  ;;  %v7850_v43 = vpack.c.bf16 %v7834_v63, %v7818_v31  ;;  %v10762_v4 = vld [vmem:[%s11251_s28 + $0x1e0] sm:$0xff]  }
0x160a   : > { %v7849_v7 = vpack.c.bf16 %v7833_v27, %v7817_v35  ;;  %v7851_v25 = vpack.c.bf16 %v7835_v40, %v7819_v55 }
0x160c   : > { %8927 = vmatprep.mubr.bf16.mxu0 %v7849_v7  ;;  %8968 = vmatprep.mubr.bf16.mxu1 %v7851_v25  ;;  %v10765_v7 = vld [vmem:[%s11251_s28 + $0x168] sm:$0xff]  }
0x160d   : > { %8928 = vmatmul.mubr.bf16.vlgmr.msra.gmra.mrb[92].mxu0 %v7848_v5  ;;  %8969 = vmatmul.mubr.bf16.vlgmr.msra.gmra.mrb[92].mxu1 %v7850_v43  ;;  %v10763_v5 = vld [vmem:[%s11251_s28 + $0x120] sm:$0xff]   ;;  %v10766_v25 = vld [vmem:[%s11251_s28 + $0x1e8] sm:$0xff]  }
0x160e   : > { %10082 = vmatpush3.bf16.msra.mxu0 %v10747_v48  ;;  %10104 = vmatpush3.bf16.msra.mxu1 %v10748_v59  ;;  %v10764_v43 = vld [vmem:[%s11251_s28 + $0x1a0] sm:$0xff]   ;;  %v10767_v48 = vld [vmem:[%s11251_s28 + $0x128] sm:$0xff]  }
0x160f   : > { %10083 = vmatprep.subr.bf16.mxu0 %v10749_v36  ;;  %10105 = vmatprep.subr.bf16.mxu1 %v10750_v10  ;;  %v10768_v59 = vld [vmem:[%s11251_s28 + $0x1a8] sm:$0xff]   ;;  %v7104_v36 = vrot.slane %v12411_v23, %v11291_v17  ;;  %v7112_v10 = vrot.slane %v12411_v23, %v7079_v45  ;;  %v10771_v17 = vld [vmem:[%s11251_s28 + $0x130] sm:$0xff]  }
0x1612   : > { %v7592_v49 = vpop.f32.mrb[80].mxu0  ;;  %v7635_v21 = vpop.f32.mrb[80].mxu1  ;;  %10084 = vmatpush3.bf16.msra.mxu0 %v10751_v29  ;;  %10106 = vmatpush3.bf16.msra.mxu1 %v10752_v61  ;;  %v10769_v29 = vld [vmem:[%s11251_s28 + $0x170] sm:$0xff]  }
0x1613   : > { %v7593_v39 = vadd.f32 %v7592_v49, %v7088_v32  ;;  %v7636_v18 = vadd.f32 %v7635_v21, %v7096_v47  ;;  %v7594_v42 = vpop.f32.mrb[81].mxu0  ;;  %v7637_v37 = vpop.f32.mrb[81].mxu1  ;;  %10085 = vmatprep.subr.bf16.mxu0 %v10753_v26  ;;  %10107 = vmatprep.subr.bf16.mxu1 %v10754_v8  ;;  %v10770_v61 = vld [vmem:[%s11251_s28 + $0x1f0] sm:$0xff]  }
0x1614   : > { %v7595_v20 = vadd.f32 %v7594_v42, %v7092_v3  ;;  %v7638_v2 = vadd.f32 %v7637_v37, %v7100_v28  ;;  %v7596_v50 = vpop.f32.mrb[82].mxu0  ;;  %v7639_v34 = vpop.f32.mrb[82].mxu1 }
0x1615   : > { %v7597_v57 = vadd.f32 %v7596_v50, %v7088_v32  ;;  %v7640_v9 = vadd.f32 %v7639_v34, %v7096_v47  ;;  %v7598_v11 = vpop.f32.mrb[83].mxu0  ;;  %v7641_v14 = vpop.f32.mrb[83].mxu1  ;;  %v7820_v41 = vmax.f32 %v7593_v39, 0.0  ;;  %v7822_v54 = vmax.f32 %v7636_v18, 0.0  ;;  %v10775_v50 = vld [vmem:[%s11251_s28 + $0x138] sm:$0xff]  }
0x1616   : > { %v7599_v56 = vadd.f32 %v7598_v11, %v7092_v3  ;;  %v7642_v22 = vadd.f32 %v7641_v14, %v7100_v28  ;;  %10086 = vmatpush3.bf16.msra.mxu0 %v10755_v58  ;;  %10108 = vmatpush3.bf16.msra.mxu1 %v10756_v30  ;;  %v7821_v52 = vmax.f32 %v7595_v20, 0.0  ;;  %v7823_v31 = vmax.f32 %v7638_v2, 0.0  ;;  %v10772_v3 = vld [vmem:[%s11251_s28 + $0x1b0] sm:$0xff]   ;;  %v10773_v58 = vld [vmem:[%s11251_s28 + $0x178] sm:$0xff]  }
0x1617   : > { %v7836_v46 = vmax.f32 %v7597_v57, 0.0  ;;  %v7838_v15 = vmax.f32 %v7640_v9, 0.0  ;;  %10087 = vmatprep.subr.bf16.mxu0 %v10757_v0  ;;  %10109 = vmatprep.subr.bf16.mxu1 %v10758_v1  ;;  %v7108_v32 = vrot.slane %v12411_v23, %v11295_v19  ;;  %v7116_v47 = vrot.slane %v12411_v23, %v7083_v53  ;;  %v10774_v19 = vld [vmem:[%s11251_s28 + $0x1f8] sm:$0xff]  }
0x1618   : > { %v7837_v38 = vmax.f32 %v7599_v56, 0.0  ;;  %v7839_v63 = vmax.f32 %v7642_v22, 0.0  ;;  %v10776_v34 = vld [vmem:[%s11251_s28 + $0x1b8] sm:$0xff]   ;;  %v10777_v56 = vld [vmem:[%s11251_s28 + $0x240] sm:$0xff]  }
0x1619   : > { %v12450_v35 = vpack.c.bf16 %v7836_v46, %v7820_v41  ;;  %v12452_v55 = vpack.c.bf16 %v7838_v15, %v7822_v54  ;;  %v10778_v22 = vld [vmem:[%s11251_s28 + $0x2c0] sm:$0xff]  }
0x161a   : > { %v7853_v27 = vpack.c.bf16 %v7837_v38, %v7821_v52  ;;  %v7855_v40 = vpack.c.bf16 %v7839_v63, %v7823_v31  ;;  %10088 = vmatpush3.bf16.msra.mxu0 %v10759_v62  ;;  %10110 = vmatpush3.bf16.msra.mxu1 %v10760_v33  ;;  %v10779_v52 = vld [vmem:[%s11251_s28 + $0x200] sm:$0xff]   ;;  %v10781_v38 = vld [vmem:[%s11251_s28 + $0x248] sm:$0xff]  }
0x161b   : > { %10089 = vmatprep.subr.bf16.mxu0 %v10761_v12  ;;  %10111 = vmatprep.subr.bf16.mxu1 %v10762_v4  ;;  %v10780_v31 = vld [vmem:[%s11251_s28 + $0x280] sm:$0xff]   ;;  %v10782_v63 = vld [vmem:[%s11251_s28 + $0x2c8] sm:$0xff]  }
0x161c   : > { %9009 = vmatprep.mubr.bf16.mxu0 %v7853_v27  ;;  %9050 = vmatprep.mubr.bf16.mxu1 %v7855_v40  ;;  %v10783_v27 = vld [vmem:[%s11251_s28 + $0x208] sm:$0xff]   ;;  %v7120_v40 = vrot.slane %v12411_v23, %v7087_v24  ;;  %v10787_v24 = vld [vmem:[%s11251_s28 + $0x210] sm:$0xff]  }
0x161e   : > { %10090 = vmatpush3.bf16.msra.mxu0 %v10763_v5  ;;  %10112 = vmatpush3.bf16.msra.mxu1 %v10764_v43  ;;  %v10784_v5 = vld [vmem:[%s11251_s28 + $0x288] sm:$0xff]   ;;  %v10785_v43 = vld [vmem:[%s11251_s28 + $0x250] sm:$0xff]  }
0x161f   : > { %10091 = vmatprep.subr.bf16.mxu0 %v10765_v7  ;;  %10113 = vmatprep.subr.bf16.mxu1 %v10766_v25  ;;  %v10786_v7 = vld [vmem:[%s11251_s28 + $0x2d0] sm:$0xff]  }
0x1622   : > { %v7678_v26 = vpop.f32.mrb[84].mxu0  ;;  %v7721_v8 = vpop.f32.mrb[84].mxu1  ;;  %10092 = vmatpush3.bf16.msra.mxu0 %v10767_v48  ;;  %10114 = vmatpush3.bf16.msra.mxu1 %v10768_v59 }
0x1623   : > { %v7679_v28 = vadd.f32 %v7678_v26, %v7104_v36  ;;  %v7722_v49 = vadd.f32 %v7721_v8, %v7112_v10  ;;  %v7680_v45 = vpop.f32.mrb[85].mxu0  ;;  %v7723_v21 = vpop.f32.mrb[85].mxu1  ;;  %10093 = vmatprep.subr.bf16.mxu0 %v10769_v29  ;;  %10115 = vmatprep.subr.bf16.mxu1 %v10770_v61  ;;  %v10788_v61 = vld [vmem:[%s11251_s28 + $0x290] sm:$0xff]  }
0x1624   : > { %v7681_v30 = vadd.f32 %v7680_v45, %v7108_v32  ;;  %v7724_v39 = vadd.f32 %v7723_v21, %v7116_v47  ;;  %v7682_v18 = vpop.f32.mrb[86].mxu0  ;;  %v7725_v53 = vpop.f32.mrb[86].mxu1  ;;  %v10791_v45 = vld [vmem:[%s11251_s28 + $0x218] sm:$0xff]  }
0x1625   : > { %v7683_v42 = vadd.f32 %v7682_v18, %v7104_v36  ;;  %v7726_v37 = vadd.f32 %v7725_v53, %v7112_v10  ;;  %v7684_v0 = vpop.f32.mrb[87].mxu0  ;;  %v7727_v1 = vpop.f32.mrb[87].mxu1  ;;  %v7824_v57 = vmax.f32 %v7679_v28, 0.0  ;;  %v7826_v9 = vmax.f32 %v7722_v49, 0.0  ;;  %v10793_v18 = vld [vmem:[%s11251_s28 + $0x260] sm:$0xff]  }
0x1626   : > { %v7685_v20 = vadd.f32 %v7684_v0, %v7108_v32  ;;  %v7728_v2 = vadd.f32 %v7727_v1, %v7116_v47  ;;  %10094 = vmatpush3.bf16.msra.mxu0 %v10771_v17  ;;  %10116 = vmatpush3.bf16.msra.mxu1 %v10772_v3  ;;  %v7825_v62 = vmax.f32 %v7681_v30, 0.0  ;;  %v7827_v33 = vmax.f32 %v7724_v39, 0.0  ;;  %v10792_v39 = vld [vmem:[%s11251_s28 + $0x298] sm:$0xff]   ;;  %v10794_v0 = vld [vmem:[%s11251_s28 + $0x2e0] sm:$0xff]  }
0x1627   : > { %v7840_v11 = vmax.f32 %v7683_v42, 0.0  ;;  %v7842_v14 = vmax.f32 %v7726_v37, 0.0  ;;  %10095 = vmatprep.subr.bf16.mxu0 %v10773_v58  ;;  %10117 = vmatprep.subr.bf16.mxu1 %v10774_v19 }
0x1628   : > { %v7841_v41 = vmax.f32 %v7685_v20, 0.0  ;;  %v7843_v54 = vmax.f32 %v7728_v2, 0.0 }
0x1629   : > { %v12480_v46 = vpack.c.bf16 %v7840_v11, %v7824_v57  ;;  %v12482_v15 = vpack.c.bf16 %v7842_v14, %v7826_v9  ;;  %v10796_v57 = vld [vmem:[%s11251_s28 + $0x2a0] sm:$0xff]   ;;  %v10797_v9 = vld [vmem:[%s11251_s28 + $0x268] sm:$0xff]  }
0x162a   : > { %v7857_v12 = vpack.c.bf16 %v7841_v41, %v7825_v62  ;;  %v7859_v4 = vpack.c.bf16 %v7843_v54, %v7827_v33  ;;  %10096 = vmatpush3.bf16.msra.mxu0 %v10775_v50  ;;  %10118 = vmatpush3.bf16.msra.mxu1 %v10776_v34  ;;  %v10795_v34 = vld [vmem:[%s11251_s28 + $0x220] sm:$0xff]   ;;  %v10798_v11 = vld [vmem:[%s11251_s28 + $0x2e8] sm:$0xff]   ;;  %v10802_v62 = vld [vmem:[%s11251_s28 + $0x2f0] sm:$0xff]  }
0x162b   : > { %10125 = vmatprep.subr.bf16.mxu0 %v10777_v56  ;;  %10147 = vmatprep.subr.bf16.mxu1 %v10778_v22  ;;  %v10799_v14 = vld [vmem:[%s11251_s28 + $0x228] sm:$0xff]   ;;  %v10801_v22 = vld [vmem:[%s11251_s28 + $0x270] sm:$0xff]   ;;  %v10805_v54 = vld [vmem:[%s11251_s28 + $0x278] sm:$0xff]  }
0x162c   : > { %v10800_v56 = vld [vmem:[%s11251_s28 + $0x2a8] sm:$0xff]   ;;  %v10803_v33 = vld [vmem:[%s11251_s28 + $0x230] sm:$0xff]  }
0x162d   : > { %9010 = vmatmul.mubr.bf16.vlgmr.msra.gmra.mrb[96].mxu0 %v12450_v35  ;;  %9051 = vmatmul.mubr.bf16.vlgmr.msra.gmra.mrb[96].mxu1 %v12452_v55  ;;  %v7124_v35 = vrot.slane %v12411_v23, %v7091_v13  ;;  %v7132_v55 = vrot.slane %v12411_v23, %v7099_v44  ;;  %v10789_v13 = vld [vmem:[%s11251_s28 + $0x258] sm:$0xff]   ;;  %v10804_v41 = vld [vmem:[%s11251_s28 + $0x2b0] sm:$0xff]  }
0x162e   : > { %10126 = vmatpush3.bf16.msra.mxu0 %v10779_v52  ;;  %9091 = vmatprep.mubr.bf16.mxu0 %v7857_v12  ;;  %v10790_v44 = vld [vmem:[%s11251_s28 + $0x2d8] sm:$0xff]  }
0x162f   : > { %10148 = vmatpush3.bf16.msra.mxu1 %v10780_v31  ;;  %9132 = vmatprep.mubr.bf16.mxu1 %v7859_v4  ;;  %v10806_v12 = vld [vmem:[%s11251_s28 + $0x2f8] sm:$0xff]   ;;  %v10809_v31 = vld [vmem:[%s11251_s28 + $0x340] sm:$0xff]  }
0x1630   : > { %10127 = vmatprep.subr.bf16.mxu0 %v10781_v38  ;;  %10149 = vmatprep.subr.bf16.mxu1 %v10782_v63  ;;  %v10807_v4 = vld [vmem:[%s11251_s28 + $0x238] sm:$0xff]   ;;  %v10810_v38 = vld [vmem:[%s11251_s28 + $0x3c0] sm:$0xff]  }
0x1631   : > { %v10808_v52 = vld [vmem:[%s11251_s28 + $0x2b8] sm:$0xff]   ;;  %v10811_v63 = vld [vmem:[%s11251_s28 + $0x300] sm:$0xff]  }
0x1632   : > { %v7764_v25 = vpop.f32.mrb[88].mxu0  ;;  %v7807_v48 = vpop.f32.mrb[88].mxu1  ;;  %10128 = vmatpush3.bf16.msra.mxu0 %v10783_v27  ;;  %v10812_v27 = vld [vmem:[%s11251_s28 + $0x380] sm:$0xff]  }
0x1633   : > { %v7765_v59 = vadd.f32 %v7764_v25, %v7120_v40  ;;  %v7808_v36 = vadd.f32 %v7807_v48, %v12414_v6  ;;  %10150 = vmatpush3.bf16.msra.mxu1 %v10784_v5  ;;  %v7766_v10 = vpop.f32.mrb[89].mxu0  ;;  %v7809_v29 = vpop.f32.mrb[89].mxu1  ;;  %10129 = vmatprep.subr.bf16.mxu0 %v10785_v43  ;;  %v10814_v5 = vld [vmem:[%s11251_s28 + $0x3c8] sm:$0xff]   ;;  %v10821_v25 = vld [vmem:[%s11251_s28 + $0x358] sm:$0xff]  }
0x1634   : > { %v7767_v32 = vadd.f32 %v7766_v10, %v7124_v35  ;;  %v7810_v16 = vadd.f32 %v7809_v29, %v7132_v55  ;;  %v7768_v47 = vpop.f32.mrb[90].mxu0  ;;  %v7811_v23 = vpop.f32.mrb[90].mxu1  ;;  %10151 = vmatprep.subr.bf16.mxu1 %v10786_v7  ;;  %v10815_v43 = vld [vmem:[%s11251_s28 + $0x308] sm:$0xff]   ;;  %v10818_v7 = vld [vmem:[%s11251_s28 + $0x3d0] sm:$0xff]   ;;  %v10822_v48 = vld [vmem:[%s11251_s28 + $0x3d8] sm:$0xff]  }
0x1635   : > { %v7769_v26 = vadd.f32 %v7768_v47, %v7120_v40  ;;  %v7812_v8 = vadd.f32 %v7811_v23, %v12414_v6  ;;  %v7770_v17 = vpop.f32.mrb[91].mxu0  ;;  %v7813_v3 = vpop.f32.mrb[91].mxu1  ;;  %v7828_v21 = vmax.f32 %v7765_v59, 0.0  ;;  %v7830_v58 = vmax.f32 %v7808_v36, 0.0  ;;  %v10813_v40 = vld [vmem:[%s11251_s28 + $0x348] sm:$0xff]   ;;  %v10824_v59 = vld [vmem:[%s11251_s28 + $0x398] sm:$0xff]  }
0x1636   : > { %v7771_v28 = vadd.f32 %v7770_v17, %v7124_v35  ;;  %v7814_v49 = vadd.f32 %v7813_v3, %v7132_v55  ;;  %10130 = vmatpush3.bf16.msra.mxu0 %v10787_v24  ;;  %v7829_v53 = vmax.f32 %v7767_v32, 0.0  ;;  %v7831_v6 = vmax.f32 %v7810_v16, 0.0  ;;  %v10816_v35 = vld [vmem:[%s11251_s28 + $0x388] sm:$0xff]   ;;  %v10817_v55 = vld [vmem:[%s11251_s28 + $0x350] sm:$0xff]   ;;  %v10823_v24 = vld [vmem:[%s11251_s28 + $0x318] sm:$0xff]  }
0x1637   : > { %v7844_v19 = vmax.f32 %v7769_v26, 0.0  ;;  %v7846_v30 = vmax.f32 %v7812_v8, 0.0  ;;  %10152 = vmatpush3.bf16.msra.mxu1 %v10788_v61  ;;  %10131 = vmatprep.subr.bf16.mxu0 %v10789_v13  ;;  %v10825_v36 = vld [vmem:[%s11251_s28 + $0x360] sm:$0xff]   ;;  %v10829_v13 = vld [vmem:[%s11251_s28 + $0x368] sm:$0xff]   ;;  %v10833_v23 = vld [vmem:[%s11251_s28 + $0x370] sm:$0xff]  }
0x1638   : > { %v7845_v42 = vmax.f32 %v7771_v28, 0.0  ;;  %v7847_v37 = vmax.f32 %v7814_v49, 0.0  ;;  %10153 = vmatprep.subr.bf16.mxu1 %v10790_v44  ;;  %v10826_v10 = vld [vmem:[%s11251_s28 + $0x3e0] sm:$0xff]   ;;  %v10830_v32 = vld [vmem:[%s11251_s28 + $0x3e8] sm:$0xff]   ;;  %v10834_v44 = vld [vmem:[%s11251_s28 + $0x3f0] sm:$0xff]  }
0x1639   : > { %v12513_v1 = vpack.c.bf16 %v7844_v19, %v7828_v21  ;;  %v12515_v20 = vpack.c.bf16 %v7846_v30, %v7830_v58  ;;  %v10827_v29 = vld [vmem:[%s11251_s28 + $0x320] sm:$0xff]   ;;  %v10831_v16 = vld [vmem:[%s11251_s28 + $0x328] sm:$0xff]   ;;  %v10835_v26 = vld [vmem:[%s11251_s28 + $0x330] sm:$0xff]  }
0x163a   : > { %v7861_v2 = vpack.c.bf16 %v7845_v42, %v7829_v53  ;;  %v7863_v50 = vpack.c.bf16 %v7847_v37, %v7831_v6  ;;  %10132 = vmatpush3.bf16.msra.mxu0 %v10791_v45  ;;  %v10828_v61 = vld [vmem:[%s11251_s28 + $0x3a0] sm:$0xff]   ;;  %v10832_v47 = vld [vmem:[%s11251_s28 + $0x3a8] sm:$0xff]   ;;  %v10836_v8 = vld [vmem:[%s11251_s28 + $0x3b0] sm:$0xff]  }
0x163b   : > { %10154 = vmatpush3.bf16.msra.mxu1 %v10792_v39  ;;  %10133 = vmatprep.subr.bf16.mxu0 %v10793_v18  ;;  %v10837_v17 = vld [vmem:[%s11251_s28 + $0x378] sm:$0xff]   ;;  %v9746_v58 = vld [vmem:[%s12712_s12] ss:$0 sm:$0xff] }
0x163c   : > { %10155 = vmatprep.subr.bf16.mxu1 %v10794_v0  ;;  %v10838_v3 = vld [vmem:[%s11251_s28 + $0x3f8] sm:$0xff]  }
0x163d   : > { %v10839_v28 = vld [vmem:[%s11251_s28 + $0x338] sm:$0xff]  }
0x163e   : > { %10134 = vmatpush3.bf16.msra.mxu0 %v10795_v34  ;;  %v10840_v49 = vld [vmem:[%s11251_s28 + $0x3b8] sm:$0xff]  }
0x163f   : > { %10156 = vmatpush3.bf16.msra.mxu1 %v10796_v57  ;;  %10135 = vmatprep.subr.bf16.mxu0 %v10797_v9 }
0x1640   : > { %10157 = vmatprep.subr.bf16.mxu1 %v10798_v11 }
0x1642   : > { %10136 = vmatpush3.bf16.msra.mxu0 %v10799_v14 }
0x1643   : > { %10158 = vmatpush3.bf16.msra.mxu1 %v10800_v56  ;;  %10137 = vmatprep.subr.bf16.mxu0 %v10801_v22 }
0x1644   : > { %10159 = vmatprep.subr.bf16.mxu1 %v10802_v62 }
0x1646   : > { %10138 = vmatpush3.bf16.msra.mxu0 %v10803_v33 }
0x1647   : > { %10160 = vmatpush3.bf16.msra.mxu1 %v10804_v41  ;;  %10139 = vmatprep.subr.bf16.mxu0 %v10805_v54 }
0x1648   : > { %10161 = vmatprep.subr.bf16.mxu1 %v10806_v12 }
0x164a   : > { %10140 = vmatpush3.bf16.msra.mxu0 %v10807_v4 }
0x164b   : > { %10162 = vmatpush3.bf16.msra.mxu1 %v10808_v52  ;;  %10169 = vmatprep.subr.bf16.mxu0 %v10809_v31 }
0x164c   : > { %10191 = vmatprep.subr.bf16.mxu1 %v10810_v38 }
0x164d   : > { %9092 = vmatmul.mubr.bf16.vlgmr.msra.gmra.mrb[100].mxu0 %v12480_v46  ;;  %v10819_v46 = vld [vmem:[%s11251_s28 + $0x310] sm:$0xff]  }
0x164e   : > { %9133 = vmatmul.mubr.bf16.vlgmr.msra.gmra.mrb[100].mxu1 %v12482_v15  ;;  %10170 = vmatpush3.bf16.msra.mxu0 %v10811_v63  ;;  %v10820_v15 = vld [vmem:[%s11251_s28 + $0x390] sm:$0xff]  }
0x164f   : > { %9173 = vmatprep.mubr.bf16.mxu0 %v7861_v2  ;;  %10192 = vmatpush3.bf16.msra.mxu1 %v10812_v27 }
0x1650   : > { %9214 = vmatprep.mubr.bf16.mxu1 %v7863_v50  ;;  %10171 = vmatprep.subr.bf16.mxu0 %v10813_v40 }
0x1651   : > { %10193 = vmatprep.subr.bf16.mxu1 %v10814_v5 }
0x1652   : > { %10172 = vmatpush3.bf16.msra.mxu0 %v10815_v43 }
0x1653   : > { %10194 = vmatpush3.bf16.msra.mxu1 %v10816_v35  ;;  %10173 = vmatprep.subr.bf16.mxu0 %v10817_v55 }
0x1654   : > { %10195 = vmatprep.subr.bf16.mxu1 %v10818_v7 }
0x1656   : > { %10174 = vmatpush3.bf16.msra.mxu0 %v10819_v46 }
0x1657   : > { %10196 = vmatpush3.bf16.msra.mxu1 %v10820_v15  ;;  %10175 = vmatprep.subr.bf16.mxu0 %v10821_v25 }
0x1658   : > { %10197 = vmatprep.subr.bf16.mxu1 %v10822_v48 }
0x165a   : > { %10176 = vmatpush3.bf16.msra.mxu0 %v10823_v24 }
0x165b   : > { %10198 = vmatpush3.bf16.msra.mxu1 %v10824_v59  ;;  %10177 = vmatprep.subr.bf16.mxu0 %v10825_v36 }
0x165c   : > { %10199 = vmatprep.subr.bf16.mxu1 %v10826_v10 }
0x165e   : > { %10178 = vmatpush3.bf16.msra.mxu0 %v10827_v29 }
0x165f   : > { %10200 = vmatpush3.bf16.msra.mxu1 %v10828_v61  ;;  %10179 = vmatprep.subr.bf16.mxu0 %v10829_v13 }
0x1660   : > { %10201 = vmatprep.subr.bf16.mxu1 %v10830_v32 }
0x1662   : > { %10180 = vmatpush3.bf16.msra.mxu0 %v10831_v16 }
0x1663   : > { %10202 = vmatpush3.bf16.msra.mxu1 %v10832_v47  ;;  %10181 = vmatprep.subr.bf16.mxu0 %v10833_v23 }
0x1664   : > { %10203 = vmatprep.subr.bf16.mxu1 %v10834_v44 }
0x1666   : > { %10182 = vmatpush3.bf16.msra.mxu0 %v10835_v26 }
0x1667   : > { %10204 = vmatpush3.bf16.msra.mxu1 %v10836_v8  ;;  %10183 = vmatprep.subr.bf16.mxu0 %v10837_v17 }
0x1668   : > { %10205 = vmatprep.subr.bf16.mxu1 %v10838_v3 }
0x166a   : > { %10184 = vmatpush3.bf16.msra.mxu0 %v10839_v28 }
0x166b   : > { %10206 = vmatpush3.bf16.msra.mxu1 %v10840_v49 }
0x166d   : > { %9174 = vmatmul.mubr.bf16.vlgmr.msra.gmra.mrb[104].mxu0 %v12513_v1 }
0x166e   : > { %9215 = vmatmul.mubr.bf16.vlgmr.msra.gmra.mrb[104].mxu1 %v12515_v20 }
0x16e0   : > { %v10053_v45 = vpop.f32.mrb[92].mxu0  ;;  %v10075_v21 = vpop.f32.mrb[92].mxu1 }
0x16e1   : > { %v10054_v19 = vpop.f32.mrb[93].mxu0  ;;  %v10076_v30 = vpop.f32.mrb[93].mxu1 }
0x16e2   : > { %v10055_v39 = vadd.f32 %v10054_v19, %v10053_v45  ;;  %v10077_v18 = vadd.f32 %v10076_v30, %v10075_v21  ;;  %v10056_v53 = vpop.f32.mrb[94].mxu0  ;;  %v10078_v6 = vpop.f32.mrb[94].mxu1 }
0x16e3   : > { %v10057_v42 = vpop.f32.mrb[95].mxu0  ;;  %v10079_v37 = vpop.f32.mrb[95].mxu1 }
0x16e4   : > { %v8930_v0 = vadd.f32 %v10055_v39, %v9746_v58  ;;  %v10058_v2 = vadd.f32 %v10057_v42, %v10056_v53  ;;  %v10080_v1 = vadd.f32 %v10079_v37, %v10078_v6 }
0x16e6   : > { %v8971_v50 = vadd.f32 %v10077_v18, %v8930_v0  ;;  %v8933_v20 = vadd.f32 %v10058_v2, %v9746_v58 }
0x16e8   : > { %v8974_v34 = vadd.f32 %v10080_v1, %v8933_v20 }
0x1700   : > { %v10097_v57 = vpop.f32.mrb[96].mxu0  ;;  %v10119_v9 = vpop.f32.mrb[96].mxu1 }
0x1701   : > { %v10098_v11 = vpop.f32.mrb[97].mxu0  ;;  %v10120_v14 = vpop.f32.mrb[97].mxu1 }
0x1702   : > { %v10099_v56 = vadd.f32 %v10098_v11, %v10097_v57  ;;  %v10121_v22 = vadd.f32 %v10120_v14, %v10119_v9  ;;  %v10100_v62 = vpop.f32.mrb[98].mxu0  ;;  %v10122_v33 = vpop.f32.mrb[98].mxu1 }
0x1703   : > { %v10101_v41 = vpop.f32.mrb[99].mxu0  ;;  %v10123_v54 = vpop.f32.mrb[99].mxu1 }
0x1704   : > { %v9012_v12 = vadd.f32 %v10099_v56, %v8971_v50  ;;  %v10102_v4 = vadd.f32 %v10101_v41, %v10100_v62  ;;  %v10124_v52 = vadd.f32 %v10123_v54, %v10122_v33  ;;  %v9876_v41 = vld [vmem:[%s12716_s6] ss:$0 sm:$0xff] }
0x1706   : > { %v9053_v31 = vadd.f32 %v10121_v22, %v9012_v12  ;;  %v9015_v38 = vadd.f32 %v10102_v4, %v8974_v34  ;;  %v9875_v22 = vld [vmem:[%s12714_s27] ss:$0 sm:$0xff] }
0x1708   : > { %v9056_v63 = vadd.f32 %v10124_v52, %v9015_v38 }
0x1720   : > { %v10141_v27 = vpop.f32.mrb[100].mxu0 }
0x1721   : > { %v10163_v40 = vpop.f32.mrb[100].mxu1  ;;  %v10142_v5 = vpop.f32.mrb[101].mxu0 }
0x1722   : > { %v10143_v43 = vadd.f32 %v10142_v5, %v10141_v27  ;;  %v10164_v35 = vpop.f32.mrb[101].mxu1  ;;  %v10144_v55 = vpop.f32.mrb[102].mxu0 }
0x1723   : > { %v10165_v7 = vadd.f32 %v10164_v35, %v10163_v40  ;;  %v10166_v46 = vpop.f32.mrb[102].mxu1  ;;  %v10145_v15 = vpop.f32.mrb[103].mxu0 }
0x1724   : > { %v9094_v25 = vadd.f32 %v10143_v43, %v9053_v31  ;;  %v10146_v48 = vadd.f32 %v10145_v15, %v10144_v55  ;;  %v10167_v24 = vpop.f32.mrb[103].mxu1 }
0x1725   : > { %v10168_v59 = vadd.f32 %v10167_v24, %v10166_v46 }
0x1726   : > { %v9135_v36 = vadd.f32 %v10165_v7, %v9094_v25  ;;  %v9097_v10 = vadd.f32 %v10146_v48, %v9056_v63 }
0x1728   : > { %v9138_v29 = vadd.f32 %v10168_v59, %v9097_v10 }
0x1740   : > { %v10185_v61 = vpop.f32.mrb[104].mxu0 }
0x1741   : > { %v10207_v13 = vpop.f32.mrb[104].mxu1  ;;  %v10186_v32 = vpop.f32.mrb[105].mxu0 }
0x1742   : > { %v10187_v16 = vadd.f32 %v10186_v32, %v10185_v61  ;;  %v10208_v47 = vpop.f32.mrb[105].mxu1  ;;  %v10188_v23 = vpop.f32.mrb[106].mxu0 }
0x1743   : > { %v10209_v44 = vadd.f32 %v10208_v47, %v10207_v13  ;;  %v10210_v26 = vpop.f32.mrb[106].mxu1  ;;  %v10189_v8 = vpop.f32.mrb[107].mxu0 }
0x1744   : > { %v9176_v17 = vadd.f32 %v10187_v16, %v9135_v36  ;;  %v10190_v3 = vadd.f32 %v10189_v8, %v10188_v23  ;;  %v10211_v28 = vpop.f32.mrb[107].mxu1 }
0x1745   : > { %v10212_v49 = vadd.f32 %v10211_v28, %v10210_v26 }
0x1746   : > { %v9217_v45 = vadd.f32 %v10209_v44, %v9176_v17  ;;  %v9179_v21 = vadd.f32 %v10190_v3, %v9138_v29 }
0x1748   : > { %v9220_v58 = vadd.f32 %v10212_v49, %v9179_v21  ;;  %v9223_v19 = vadd.f32 %v9217_v45, %v12305_v60 }
0x174a   : > { %v9225_v30 = vsel %vm1059_vm1, %v9223_v19, 0.0  ;;  %v9224_v39 = vadd.f32 %v9220_v58, %v12307_v51 }
0x174b   : > { %9226 = vadd.xlane.f32.xlu0 %v9225_v30 }
0x174c   : > { %v9228_v18 = vsel %vm1059_vm1, %v9224_v39, 0.0 }
0x174d   : > { %9229 = vadd.xlane.f32.xlu1 %v9228_v18 }
0x17d8   : > { %v9227_v53 = vpop.xlane.xlu0 %9226 }
0x17d9   : > { %v9231_v6 = vmul.f32 0.015625, %v9227_v53 }
0x17da   : > { %v9230_v42 = vpop.xlane.xlu1 %9229 }
0x17db   : > { %v9233_v37 = vsub.f32 %v9223_v19, %v9231_v6  ;;  %v9232_v0 = vmul.f32 0.015625, %v9230_v42 }
0x17dd   : > { %v9234_v2 = vsub.f32 %v9224_v39, %v9232_v0  ;;  %v9235_v1 = vmul.f32 %v9233_v37, %v9233_v37 }
0x17df   : > { %v9237_v50 = vsel %vm1059_vm1, %v9235_v1, 0.0  ;;  %v9236_v20 = vmul.f32 %v9234_v2, %v9234_v2 }
0x17e0   : > { %9238 = vadd.xlane.f32.xlu0 %v9237_v50 }
0x17e1   : > { %v9240_v60 = vsel %vm1059_vm1, %v9236_v20, 0.0 }
0x17e2   : > { %9241 = vadd.xlane.f32.xlu1 %v9240_v60 }
0x186d   : > { %v9239_v51 = vpop.xlane.xlu0 %9238 }
0x186e   : > { %v9243_v34 = vmul.f32 0.015625, %v9239_v51 }
0x186f   : > { %v9242_v57 = vpop.xlane.xlu1 %9241 }
0x1870   : > { %v9245_v9 = vadd.f32 1e-05, %v9243_v34  ;;  %v9244_v11 = vmul.f32 0.015625, %v9242_v57 }
0x1872   : > { %10977 = vrsqrt.f32 %v9245_v9  ;;  %v9246_v14 = vadd.f32 1e-05, %v9244_v11 }
0x1874   : > { %10979 = vrsqrt.f32 %v9246_v14 }
0x187c   : > { %v10978_v56 = vpop.eup %10977 }
0x187d   : > { %v9249_v62 = vmul.f32 %v10978_v56, %v9233_v37 }
0x187e   : > { %v10980_v33 = vpop.eup %10979 }
0x187f   : > { %v9258_v54 = vmul.f32 %v9875_v22, %v9249_v62  ;;  %v9250_v12 = vmul.f32 %v10980_v33, %v9234_v2  ;;  %9274 = sbr.rel (%p9877_p5) target bundleno = 6278 (0x1886), region = 116 }
0x1881   : > { %v9267_v4 = vadd.f32 %v9876_v41, %v9258_v54  ;;  %v9259_v52 = vmul.f32 %v9875_v22, %v9250_v12 }
0x1883   : > { %9269 = vst.msk [vmem:[#allocation2] sm:$0xff] %vm1059_vm1, %v9267_v4  ;;  %v9268_v31 = vadd.f32 %v9876_v41, %v9259_v52  ;;  %9275 = vst.msk [vmem:[#allocation3] sm:$0xff] (!%p9877_p5), %vm1059_vm1, %v9267_v4 }
0x1885   : > { %9270 = vst.msk [vmem:[#allocation2 + $0x8] sm:$0xff] %vm1059_vm1, %v9268_v31  ;;  %9276 = vst.msk [vmem:[#allocation3 + $0x8] sm:$0xff] (!%p9877_p5), %vm1059_vm1, %v9268_v31 }
0x1886 PF: > { %s12718_s15 = sld [smem:[#allocation7_spill]]  ;;  %s11039_s29 = smov [#allocation3]  }
0x1887   : > { %s9283_s17 = sshll.u32 %s11039_s29, 4  ;;  %s9284_s17 = int_to_ptr.vmem [resolvable:$true] %s9283_s17 }
0x1888   : > { %s10983_s26 = scalar_lea.vmem %s9284_s17, 256  ;;  %p10990_p10 = scmp.lt.s32.totalorder %s9284_s17, %s9284_s17 }
0x1889   : > { %p10984_p7 = scmp.ne.s32.totalorder %s9284_s17, %s10983_s26  ;;  %p10991_p11 = scmp.lt.s32.totalorder %s10983_s26, %s10983_s26 }
0x188b   : > { %p10992_p12 = por %p10991_p11, %p10990_p10 }
0x188c   : > { %p10585_p6 = scmp.eq.s32.totalorder %s12718_s15, 1 }
0x188e   : > { %p10985_p8 = pnand %p10984_p7, %p10585_p6 }
0x1890   : > { %p10986_p9 = pneg %p10985_p8 }
0x1892   : > { %p10993_p13 = pnand %p10992_p12, %p10986_p9 }
0x1894   : > { %10996 = shalt.err (!%p10993_p13)
}
0x1895   : > { %s12719_s10 = sld [smem:[#allocation28_spill]] }
0x189b   : > { %s10997_s2 = scalar_lea.hbm %s12719_s10, 256 }
0x189c   : > { %p10998_p0 = scmp.ne.s32.totalorder %s12719_s10, %s10997_s2  ;;  %p11003_p3 = scmp.lt.u32.totalorder %s10997_s2, %s12719_s10 }
0x189e   : > { %p10999_p1 = pnand %p10998_p0, %p10585_p6 }
0x18a0   : > { %p11000_p2 = pneg %p10999_p1 }
0x18a2   : > { %p11005_p4 = pnand %p11003_p3, %p11000_p2 }
0x18a4   : > { %11008 = shalt.err (!%p11005_p4)
}
0x18a5   : > { %s11040_s20 = smov 128  }
0x18a6   : > { %10582 = dma.vmem_to_hbm [thread:$0]  (%p10585_p6), %s9284_s17, 256, %s12719_s10, [#allocation4], %s11040_s20, %s11040_s20, %s11032_s30  }
0x18a7   : > { %11014 = dma.done.wait (%p10585_p6), [#allocation4], 256  }
0x18a8   : > { %11016 = vsyncadd (%p10585_p6), [#allocation4], 4294967040 }
0x18a9 PF: > { %s12720_s28 = sld [smem:[#allocation6_spill]] }
0x18af   : > { %s33_s3 = sadd.s32 1, %s12720_s28  }
0x18b0   : > { %p30_p5 = scmp.ge.s32.totalorder %s33_s3, 4  }
0x18b2   :  { %32 = sbr.rel (!%p30_p5) target bundleno = 21 (0x15), region = 200 }
0x18b9   :  { %9299 = vsyncpa [#allocation4], 1 }
0x18ba   :  { %9301 = vsyncpa [#allocation4 + $0x1], 1 }

</bundles_post_ra>
